<compile_context>
chip_gen: v6e
topology: v6e:2x2x1
jax: 0.10.0
libtpu: 0.0.40
codegen_flags: <defaults>
</compile_context>

<pallas_src>
import functools

import jax
import jax.numpy as jnp
from jax import lax
from jax.experimental import pallas as pl
from jax.experimental.pallas import tpu as pltpu

# ----- scaled-down GPT hyperparameters (consistent with the module's forward) -----
N_EMBD = 128
N_HEADS = 4
HEAD_SIZE = 32           # N_HEADS * HEAD_SIZE == N_EMBD
BLOCK_SIZE = 32          # sequence length T
N_LAYER = 2
VOCAB_SIZE = 512
FF_MULT = 4
LN_EPS = 1e-5


def _layernorm(x, gamma, beta):
    mu = jnp.mean(x, axis=-1, keepdims=True)
    xc = x - mu
    var = jnp.mean(xc * xc, axis=-1, keepdims=True)
    return xc * lax.rsqrt(var + LN_EPS) * gamma + beta


# --------------------------- fused transformer-block kernel ---------------------------
def _block_kernel(n_heads, head_size,
                  x_ref, g1_ref, b1_ref, wqkv_ref, wproj_ref, bproj_ref,
                  g2_ref, b2_ref, w1_ref, bf1_ref, w2_ref, bf2_ref, o_ref):
    # x_ref: (1, T, C) for the current batch element; parameters are full blocks.
    x0 = x_ref[0].astype(jnp.float32)                       # (T, C)
    T, C = x0.shape
    HD = n_heads * head_size

    # ---- LayerNorm 1 (f32 elementwise) ----
    ln1 = _layernorm(x0, g1_ref[...].astype(jnp.float32), b1_ref[...].astype(jnp.float32))

    # ---- fused QKV projection: one (T,C)@(C,3*H*D) matmul, bf16 operands, f32 acc ----
    qkv = jnp.dot(ln1.astype(jnp.bfloat16), wqkv_ref[...].astype(jnp.bfloat16),
                  preferred_element_type=jnp.float32)        # (T, 3*H*D)

    # causal mask: computed once per batch tile (shared by all heads)
    row = lax.broadcasted_iota(jnp.int32, (T, T), 0)
    col = lax.broadcasted_iota(jnp.int32, (T, T), 1)
    causal = col <= row
    scale = head_size ** -0.5

    wproj = wproj_ref[...].astype(jnp.bfloat16)              # (H*D, C)
    attn_proj = jnp.zeros((T, C), jnp.float32)
    for h in range(n_heads):
        lo = h * head_size
        hi = lo + head_size
        q = qkv[:, lo:hi]                                    # (T, D)
        k = qkv[:, HD + lo:HD + hi]
        v = qkv[:, 2 * HD + lo:2 * HD + hi]

        # scores = q @ k^T without materializing a transpose of k
        s = lax.dot_general(q.astype(jnp.bfloat16), k.astype(jnp.bfloat16),
                            (((1,), (1,)), ((), ())),
                            preferred_element_type=jnp.float32) * scale
        s = jnp.where(causal, s, -jnp.inf)

        m = jnp.max(s, axis=-1, keepdims=True)
        p = jnp.exp(s - m)
        denom = jnp.sum(p, axis=-1, keepdims=True)
        p = p * pl.reciprocal(denom, approx=True)
        # TODO(synk): attention-weight dropout omitted (eval-mode identity).

        head_out = jnp.dot(p.astype(jnp.bfloat16), v.astype(jnp.bfloat16),
                           preferred_element_type=jnp.float32)           # (T, D)
        # fused output projection: accumulate this head's slice of W_proj in f32
        attn_proj = attn_proj + jnp.dot(head_out.astype(jnp.bfloat16),
                                        wproj[lo:hi, :],
                                        preferred_element_type=jnp.float32)

    x1 = x0 + attn_proj + bproj_ref[...].astype(jnp.float32)    # residual (proj dropout = identity)

    # ---- LayerNorm 2 + FeedForward (fused) ----
    ln2 = _layernorm(x1, g2_ref[...].astype(jnp.float32), b2_ref[...].astype(jnp.float32))
    h1 = jnp.dot(ln2.astype(jnp.bfloat16), w1_ref[...].astype(jnp.bfloat16),
                 preferred_element_type=jnp.float32) + bf1_ref[...].astype(jnp.float32)
    h1 = jnp.maximum(h1, 0.0)                                   # ReLU
    h2 = jnp.dot(h1.astype(jnp.bfloat16), w2_ref[...].astype(jnp.bfloat16),
                 preferred_element_type=jnp.float32) + bf2_ref[...].astype(jnp.float32)

    o_ref[0] = (x1 + h2).astype(o_ref.dtype)                    # residual (ffn dropout = identity)


def transformer_block(x, blk):
    B, T, C = x.shape
    HD = N_HEADS * HEAD_SIZE
    FDIM = FF_MULT * C
    kernel = functools.partial(_block_kernel, N_HEADS, HEAD_SIZE)
    return pl.pallas_call(
        kernel,
        out_shape=jax.ShapeDtypeStruct((B, T, C), jnp.float32),
        grid_spec=pltpu.PrefetchScalarGridSpec(
            num_scalar_prefetch=0,
            grid=(B,),
            in_specs=[
                pl.BlockSpec((1, T, C), lambda b: (b, 0, 0)),        # x
                pl.BlockSpec((1, C), lambda b: (0, 0)),              # ln1 gamma
                pl.BlockSpec((1, C), lambda b: (0, 0)),              # ln1 beta
                pl.BlockSpec((C, 3 * HD), lambda b: (0, 0)),         # packed W_qkv
                pl.BlockSpec((HD, C), lambda b: (0, 0)),             # W_proj
                pl.BlockSpec((1, C), lambda b: (0, 0)),              # b_proj
                pl.BlockSpec((1, C), lambda b: (0, 0)),              # ln2 gamma
                pl.BlockSpec((1, C), lambda b: (0, 0)),              # ln2 beta
                pl.BlockSpec((C, FDIM), lambda b: (0, 0)),           # W_ffn1
                pl.BlockSpec((1, FDIM), lambda b: (0, 0)),           # b_ffn1
                pl.BlockSpec((FDIM, C), lambda b: (0, 0)),           # W_ffn2
                pl.BlockSpec((1, C), lambda b: (0, 0)),              # b_ffn2
            ],
            out_specs=pl.BlockSpec((1, T, C), lambda b: (b, 0, 0)),
        ),
        compiler_params=pltpu.CompilerParams(
            dimension_semantics=("parallel",),   # batch axis can shard across v7x TensorCores
        ),
    )(x, blk["g1"], blk["b1"], blk["wqkv"], blk["wproj"], blk["bproj"],
      blk["g2"], blk["b2"], blk["w1"], blk["bf1"], blk["w2"], blk["bf2"])


# --------------------------- fused ln_f + lm_head kernel ---------------------------
def _lm_head_kernel(x_ref, g_ref, b_ref, w_ref, bias_ref, o_ref):
    x = x_ref[0].astype(jnp.float32)
    ln = _layernorm(x, g_ref[...].astype(jnp.float32), b_ref[...].astype(jnp.float32))
    logits = jnp.dot(ln.astype(jnp.bfloat16), w_ref[...].astype(jnp.bfloat16),
                     preferred_element_type=jnp.float32) + bias_ref[...].astype(jnp.float32)
    o_ref[0] = logits.astype(o_ref.dtype)


def lm_head(x, gamma, beta, w, bias):
    B, T, C = x.shape
    V = w.shape[1]
    return pl.pallas_call(
        _lm_head_kernel,
        out_shape=jax.ShapeDtypeStruct((B, T, V), jnp.float32),
        grid_spec=pltpu.PrefetchScalarGridSpec(
            num_scalar_prefetch=0,
            grid=(B,),
            in_specs=[
                pl.BlockSpec((1, T, C), lambda b: (b, 0, 0)),
                pl.BlockSpec((1, C), lambda b: (0, 0)),
                pl.BlockSpec((1, C), lambda b: (0, 0)),
                pl.BlockSpec((C, V), lambda b: (0, 0)),
                pl.BlockSpec((1, V), lambda b: (0, 0)),
            ],
            out_specs=pl.BlockSpec((1, T, V), lambda b: (b, 0, 0)),
        ),
        compiler_params=pltpu.CompilerParams(dimension_semantics=("parallel",)),
    )(x, gamma, beta, w, bias)


# --------------------------------- full forward ---------------------------------
@jax.jit
def gpt_forward(idx, params):
    # token / position embedding gather kept in plain JAX (data-dependent table lookup).
    T = idx.shape[1]
    tok = jnp.take(params["tok_emb"], idx, axis=0)              # (B, T, C)
    pos = params["pos_emb"][:T]                                 # (T, C)
    x = tok + pos[None]
    for blk in params["blocks"]:
        x = transformer_block(x, blk)
    logits = lm_head(x, params["gf"], params["bfn"], params["w_lm"], params["b_lm"])
    return logits                                               # loss path (targets) not exercised


# ------------------------------ pure-JAX reference ------------------------------
def reference_forward(idx, params):
    T = idx.shape[1]
    x = jnp.take(params["tok_emb"], idx, axis=0) + params["pos_emb"][:T][None]
    H, D = N_HEADS, HEAD_SIZE
    HD = H * D
    for blk in params["blocks"]:
        ln1 = _layernorm(x, blk["g1"][0], blk["b1"][0])
        qkv = ln1 @ blk["wqkv"]
        q = qkv[..., :HD].reshape(x.shape[0], T, H, D)
        k = qkv[..., HD:2 * HD].reshape(x.shape[0], T, H, D)
        v = qkv[..., 2 * HD:].reshape(x.shape[0], T, H, D)
        s = jnp.einsum("bthd,bshd->bhts", q, k) * (D ** -0.5)
        mask = jnp.tril(jnp.ones((T, T), bool))
        s = jnp.where(mask, s, -jnp.inf)
        p = jax.nn.softmax(s, axis=-1)
        o = jnp.einsum("bhts,bshd->bthd", p, v).reshape(x.shape[0], T, HD)
        x = x + o @ blk["wproj"] + blk["bproj"][0]
        ln2 = _layernorm(x, blk["g2"][0], blk["b2"][0])
        h = jnp.maximum(ln2 @ blk["w1"] + blk["bf1"][0], 0.0)
        x = x + h @ blk["w2"] + blk["bf2"][0]
    lnf = _layernorm(x, params["gf"][0], params["bfn"][0])
    return lnf @ params["w_lm"] + params["b_lm"][0]


# ---------------------------------- param init ----------------------------------
def init_params(key):
    C, H, D, V = N_EMBD, N_HEADS, HEAD_SIZE, VOCAB_SIZE
    FDIM = FF_MULT * C
    std = 0.02
    k_tok, k_pos, k_lm, k_blm, key = jax.random.split(key, 5)
    params = {
        "tok_emb": 0.1 + std * jax.random.normal(k_tok, (V, C), jnp.float32),
        "pos_emb": 0.1 + std * jax.random.normal(k_pos, (BLOCK_SIZE, C), jnp.float32),
        "gf": jnp.ones((1, C), jnp.float32),
        "bfn": jnp.zeros((1, C), jnp.float32),
        "w_lm": std * jax.random.normal(k_lm, (C, V), jnp.float32),
        "b_lm": std * jax.random.normal(k_blm, (1, V), jnp.float32),
        "blocks": [],
    }
    for _ in range(N_LAYER):
        kq, kk, kv, kp, kbp, k1, kb1, k2, kb2, key = jax.random.split(key, 10)
        wq = std * jax.random.normal(kq, (H, C, D), jnp.float32)
        wk = std * jax.random.normal(kk, (H, C, D), jnp.float32)
        wv = std * jax.random.normal(kv, (H, C, D), jnp.float32)
        # host-side packing of per-head Q/K/V weights into one (C, 3*H*D) matrix
        wqkv = jnp.concatenate(
            [jnp.concatenate([wq[h] for h in range(H)], axis=1),
             jnp.concatenate([wk[h] for h in range(H)], axis=1),
             jnp.concatenate([wv[h] for h in range(H)], axis=1)], axis=1)
        params["blocks"].append({
            "g1": jnp.ones((1, C), jnp.float32),
            "b1": jnp.zeros((1, C), jnp.float32),
            "wqkv": wqkv,
            "wproj": std * jax.random.normal(kp, (H * D, C), jnp.float32),
            "bproj": std * jax.random.normal(kbp, (1, C), jnp.float32),
            "g2": jnp.ones((1, C), jnp.float32),
            "b2": jnp.zeros((1, C), jnp.float32),
            "w1": std * jax.random.normal(k1, (C, FDIM), jnp.float32),
            "bf1": std * jax.random.normal(kb1, (1, FDIM), jnp.float32),
            "w2": std * jax.random.normal(k2, (FDIM, C), jnp.float32),
            "bf2": std * jax.random.normal(kb2, (1, C), jnp.float32),
        })
    return params


if __name__ == "__main__":
    key = jax.random.PRNGKey(0)
    k_idx, k_params = jax.random.split(key)
    params = init_params(k_params)

    B, T = 2, BLOCK_SIZE
    idx = jax.random.randint(k_idx, (B, T), 0, VOCAB_SIZE, dtype=jnp.int32)

    logits = gpt_forward(idx, params)
    logits = jax.block_until_ready(logits)

    ref = reference_forward(idx, params)
    assert logits.shape == (B, T, VOCAB_SIZE)
    max_err = float(jnp.max(jnp.abs(logits - ref)))
    # bf16 MXU operands vs f32 reference -> loosened tolerance
    assert jnp.allclose(logits, ref, atol=5e-2, rtol=5e-2), f"mismatch vs reference, max abs err={max_err}"

    print("KERNEL_OK")
</pallas_src>

<mosaic_0001>
module attributes {stable_mosaic.version = 11 : i64} {
  func.func @_block_kernel(%arg0: i32, %arg1: memref<1x32x128xf32, #tpu.memory_space<vmem>>, %arg2: memref<1x128xf32, #tpu.memory_space<vmem>>, %arg3: memref<1x128xf32, #tpu.memory_space<vmem>>, %arg4: memref<128x384xf32, #tpu.memory_space<vmem>>, %arg5: memref<128x128xf32, #tpu.memory_space<vmem>>, %arg6: memref<1x128xf32, #tpu.memory_space<vmem>>, %arg7: memref<1x128xf32, #tpu.memory_space<vmem>>, %arg8: memref<1x128xf32, #tpu.memory_space<vmem>>, %arg9: memref<128x512xf32, #tpu.memory_space<vmem>>, %arg10: memref<1x512xf32, #tpu.memory_space<vmem>>, %arg11: memref<512x128xf32, #tpu.memory_space<vmem>>, %arg12: memref<1x128xf32, #tpu.memory_space<vmem>>, %arg13: memref<1x32x128xf32, #tpu.memory_space<vmem>>) attributes {dimension_semantics = [#tpu.dimension_semantics<parallel>], iteration_bounds = array<i64: 2>, scalar_prefetch = 0 : i64, scratch_operands = 0 : i64, tpu.core_type = #tpu.core_type<tc>, window_params = [{transform_indices = @transform_0, window_bounds = array<i64: 1, 32, 128>}, {pipeline_mode = #tpu.pipeline_mode<synchronous>, transform_indices = @transform_1, window_bounds = array<i64: 1, 128>}, {pipeline_mode = #tpu.pipeline_mode<synchronous>, transform_indices = @transform_2, window_bounds = array<i64: 1, 128>}, {pipeline_mode = #tpu.pipeline_mode<synchronous>, transform_indices = @transform_3, window_bounds = array<i64: 128, 384>}, {pipeline_mode = #tpu.pipeline_mode<synchronous>, transform_indices = @transform_4, window_bounds = array<i64: 128, 128>}, {pipeline_mode = #tpu.pipeline_mode<synchronous>, transform_indices = @transform_5, window_bounds = array<i64: 1, 128>}, {pipeline_mode = #tpu.pipeline_mode<synchronous>, transform_indices = @transform_6, window_bounds = array<i64: 1, 128>}, {pipeline_mode = #tpu.pipeline_mode<synchronous>, transform_indices = @transform_7, window_bounds = array<i64: 1, 128>}, {pipeline_mode = #tpu.pipeline_mode<synchronous>, transform_indices = @transform_8, window_bounds = array<i64: 128, 512>}, {pipeline_mode = #tpu.pipeline_mode<synchronous>, transform_indices = @transform_9, window_bounds = array<i64: 1, 512>}, {pipeline_mode = #tpu.pipeline_mode<synchronous>, transform_indices = @transform_10, window_bounds = array<i64: 512, 128>}, {pipeline_mode = #tpu.pipeline_mode<synchronous>, transform_indices = @transform_11, window_bounds = array<i64: 1, 128>}, {transform_indices = @transform_12, window_bounds = array<i64: 1, 32, 128>}]} {
    %c0 = arith.constant 0 : index
    %c0_0 = arith.constant 0 : index
    %c0_1 = arith.constant 0 : index
    %0 = vector.load %arg1[%c0, %c0_0, %c0_1] : memref<1x32x128xf32, #tpu.memory_space<vmem>>, vector<1x32x128xf32>
    %1 = vector.shape_cast %0 : vector<1x32x128xf32> to vector<32x128xf32>
    %c0_2 = arith.constant 0 : index
    %c0_3 = arith.constant 0 : index
    %2 = vector.load %arg2[%c0_2, %c0_3] : memref<1x128xf32, #tpu.memory_space<vmem>>, vector<1x128xf32>
    %c0_4 = arith.constant 0 : index
    %c0_5 = arith.constant 0 : index
    %3 = vector.load %arg3[%c0_4, %c0_5] : memref<1x128xf32, #tpu.memory_space<vmem>>, vector<1x128xf32>
    %cst = arith.constant dense<0.000000e+00> : vector<32xf32>
    %4 = vector.multi_reduction <add>, %1, %cst [1] : vector<32x128xf32> to vector<32xf32>
    %5 = vector.shape_cast %4 : vector<32xf32> to vector<32x1xf32>
    %cst_6 = arith.constant 1.280000e+02 : f32
    %6 = vector.broadcast %cst_6 : f32 to vector<32x1xf32>
    %7 = arith.divf %5, %6 : vector<32x1xf32>
    %8 = vector.broadcast %7 : vector<32x1xf32> to vector<32x128xf32>
    %9 = arith.subf %1, %8 : vector<32x128xf32>
    %10 = arith.mulf %9, %9 : vector<32x128xf32>
    %cst_7 = arith.constant dense<0.000000e+00> : vector<32xf32>
    %11 = vector.multi_reduction <add>, %10, %cst_7 [1] : vector<32x128xf32> to vector<32xf32>
    %12 = vector.shape_cast %11 : vector<32xf32> to vector<32x1xf32>
    %cst_8 = arith.constant 1.280000e+02 : f32
    %13 = vector.broadcast %cst_8 : f32 to vector<32x1xf32>
    %14 = arith.divf %12, %13 : vector<32x1xf32>
    %cst_9 = arith.constant 9.99999974E-6 : f32
    %15 = vector.broadcast %cst_9 : f32 to vector<32x1xf32>
    %16 = arith.addf %14, %15 : vector<32x1xf32>
    %17 = math.rsqrt %16 : vector<32x1xf32>
    %18 = vector.broadcast %17 : vector<32x1xf32> to vector<32x128xf32>
    %19 = arith.mulf %9, %18 : vector<32x128xf32>
    %20 = vector.broadcast %2 : vector<1x128xf32> to vector<32x128xf32>
    %21 = arith.mulf %19, %20 : vector<32x128xf32>
    %22 = vector.broadcast %3 : vector<1x128xf32> to vector<32x128xf32>
    %23 = arith.addf %21, %22 : vector<32x128xf32>
    %24 = arith.truncf %23 : vector<32x128xf32> to vector<32x128xbf16>
    %c0_10 = arith.constant 0 : index
    %c0_11 = arith.constant 0 : index
    %25 = vector.load %arg4[%c0_10, %c0_11] : memref<128x384xf32, #tpu.memory_space<vmem>>, vector<128x384xf32>
    %26 = arith.truncf %25 : vector<128x384xf32> to vector<128x384xbf16>
    %cst_12 = arith.constant dense<0.000000e+00> : vector<32x384xf32>
    %27 = tpu.matmul %24, %26, %cst_12 {dimension_numbers = #tpu.dot_dimension_numbers<[1], [0], [0], [1], [0, 0, 1, 1], [], []>} : vector<32x128xbf16>, vector<128x384xbf16>, vector<32x384xf32> -> vector<32x384xf32>
    %28 = tpu.iota {dimensions = array<i32: 0>} : vector<32x32xi32>
    %29 = tpu.iota {dimensions = array<i32: 1>} : vector<32x32xi32>
    %30 = arith.cmpi sle, %29, %28 : vector<32x32xi32>
    %c0_13 = arith.constant 0 : index
    %c0_14 = arith.constant 0 : index
    %31 = vector.load %arg5[%c0_13, %c0_14] : memref<128x128xf32, #tpu.memory_space<vmem>>, vector<128x128xf32>
    %32 = arith.truncf %31 : vector<128x128xf32> to vector<128x128xbf16>
    %cst_15 = arith.constant 0.000000e+00 : f32
    %33 = vector.broadcast %cst_15 : f32 to vector<32x128xf32>
    %34 = vector.extract_strided_slice %27 {offsets = [0, 0], sizes = [32, 32], strides = [1, 1]} : vector<32x384xf32> to vector<32x32xf32>
    %35 = vector.extract_strided_slice %27 {offsets = [0, 128], sizes = [32, 32], strides = [1, 1]} : vector<32x384xf32> to vector<32x32xf32>
    %36 = vector.extract_strided_slice %27 {offsets = [0, 256], sizes = [32, 32], strides = [1, 1]} : vector<32x384xf32> to vector<32x32xf32>
    %37 = arith.truncf %34 : vector<32x32xf32> to vector<32x32xbf16>
    %38 = arith.truncf %35 : vector<32x32xf32> to vector<32x32xbf16>
    %cst_16 = arith.constant dense<0.000000e+00> : vector<32x32xf32>
    %39 = tpu.matmul %37, %38, %cst_16 {dimension_numbers = #tpu.dot_dimension_numbers<[1], [1], [0], [0], [0, 0, 1, 0], [], []>} : vector<32x32xbf16>, vector<32x32xbf16>, vector<32x32xf32> -> vector<32x32xf32>
    %cst_17 = arith.constant 0.176776692 : f32
    %40 = vector.broadcast %cst_17 : f32 to vector<32x32xf32>
    %41 = arith.mulf %39, %40 : vector<32x32xf32>
    %cst_18 = arith.constant 0xFF800000 : f32
    %42 = vector.broadcast %cst_18 : f32 to vector<32x32xf32>
    %43 = arith.select %30, %41, %42 : vector<32x32xi1>, vector<32x32xf32>
    %cst_19 = arith.constant dense<0xFF800000> : vector<32xf32>
    %44 = vector.multi_reduction <maximumf>, %43, %cst_19 [1] : vector<32x32xf32> to vector<32xf32>
    %45 = vector.shape_cast %44 : vector<32xf32> to vector<32x1xf32>
    %46 = vector.broadcast %45 : vector<32x1xf32> to vector<32x32xf32>
    %47 = arith.subf %43, %46 : vector<32x32xf32>
    %48 = math.exp %47 : vector<32x32xf32>
    %cst_20 = arith.constant dense<0.000000e+00> : vector<32xf32>
    %49 = vector.multi_reduction <add>, %48, %cst_20 [1] : vector<32x32xf32> to vector<32xf32>
    %50 = vector.shape_cast %49 : vector<32xf32> to vector<32x1xf32>
    %51 = tpu.reciprocal %50 {approx = true} : vector<32x1xf32> -> vector<32x1xf32>
    %52 = vector.broadcast %51 : vector<32x1xf32> to vector<32x32xf32>
    %53 = arith.mulf %48, %52 : vector<32x32xf32>
    %54 = arith.truncf %53 : vector<32x32xf32> to vector<32x32xbf16>
    %55 = arith.truncf %36 : vector<32x32xf32> to vector<32x32xbf16>
    %cst_21 = arith.constant dense<0.000000e+00> : vector<32x32xf32>
    %56 = tpu.matmul %54, %55, %cst_21 {dimension_numbers = #tpu.dot_dimension_numbers<[1], [0], [0], [1], [0, 0, 1, 1], [], []>} : vector<32x32xbf16>, vector<32x32xbf16>, vector<32x32xf32> -> vector<32x32xf32>
    %57 = arith.truncf %56 : vector<32x32xf32> to vector<32x32xbf16>
    %58 = vector.extract_strided_slice %32 {offsets = [0, 0], sizes = [32, 128], strides = [1, 1]} : vector<128x128xbf16> to vector<32x128xbf16>
    %cst_22 = arith.constant dense<0.000000e+00> : vector<32x128xf32>
    %59 = tpu.matmul %57, %58, %cst_22 {dimension_numbers = #tpu.dot_dimension_numbers<[1], [0], [0], [1], [0, 0, 1, 1], [], []>} : vector<32x32xbf16>, vector<32x128xbf16>, vector<32x128xf32> -> vector<32x128xf32>
    %60 = arith.addf %33, %59 : vector<32x128xf32>
    %61 = vector.extract_strided_slice %27 {offsets = [0, 32], sizes = [32, 32], strides = [1, 1]} : vector<32x384xf32> to vector<32x32xf32>
    %62 = vector.extract_strided_slice %27 {offsets = [0, 160], sizes = [32, 32], strides = [1, 1]} : vector<32x384xf32> to vector<32x32xf32>
    %63 = vector.extract_strided_slice %27 {offsets = [0, 288], sizes = [32, 32], strides = [1, 1]} : vector<32x384xf32> to vector<32x32xf32>
    %64 = arith.truncf %61 : vector<32x32xf32> to vector<32x32xbf16>
    %65 = arith.truncf %62 : vector<32x32xf32> to vector<32x32xbf16>
    %cst_23 = arith.constant dense<0.000000e+00> : vector<32x32xf32>
    %66 = tpu.matmul %64, %65, %cst_23 {dimension_numbers = #tpu.dot_dimension_numbers<[1], [1], [0], [0], [0, 0, 1, 0], [], []>} : vector<32x32xbf16>, vector<32x32xbf16>, vector<32x32xf32> -> vector<32x32xf32>
    %cst_24 = arith.constant 0.176776692 : f32
    %67 = vector.broadcast %cst_24 : f32 to vector<32x32xf32>
    %68 = arith.mulf %66, %67 : vector<32x32xf32>
    %cst_25 = arith.constant 0xFF800000 : f32
    %69 = vector.broadcast %cst_25 : f32 to vector<32x32xf32>
    %70 = arith.select %30, %68, %69 : vector<32x32xi1>, vector<32x32xf32>
    %cst_26 = arith.constant dense<0xFF800000> : vector<32xf32>
    %71 = vector.multi_reduction <maximumf>, %70, %cst_26 [1] : vector<32x32xf32> to vector<32xf32>
    %72 = vector.shape_cast %71 : vector<32xf32> to vector<32x1xf32>
    %73 = vector.broadcast %72 : vector<32x1xf32> to vector<32x32xf32>
    %74 = arith.subf %70, %73 : vector<32x32xf32>
    %75 = math.exp %74 : vector<32x32xf32>
    %cst_27 = arith.constant dense<0.000000e+00> : vector<32xf32>
    %76 = vector.multi_reduction <add>, %75, %cst_27 [1] : vector<32x32xf32> to vector<32xf32>
    %77 = vector.shape_cast %76 : vector<32xf32> to vector<32x1xf32>
    %78 = tpu.reciprocal %77 {approx = true} : vector<32x1xf32> -> vector<32x1xf32>
    %79 = vector.broadcast %78 : vector<32x1xf32> to vector<32x32xf32>
    %80 = arith.mulf %75, %79 : vector<32x32xf32>
    %81 = arith.truncf %80 : vector<32x32xf32> to vector<32x32xbf16>
    %82 = arith.truncf %63 : vector<32x32xf32> to vector<32x32xbf16>
    %cst_28 = arith.constant dense<0.000000e+00> : vector<32x32xf32>
    %83 = tpu.matmul %81, %82, %cst_28 {dimension_numbers = #tpu.dot_dimension_numbers<[1], [0], [0], [1], [0, 0, 1, 1], [], []>} : vector<32x32xbf16>, vector<32x32xbf16>, vector<32x32xf32> -> vector<32x32xf32>
    %84 = arith.truncf %83 : vector<32x32xf32> to vector<32x32xbf16>
    %85 = vector.extract_strided_slice %32 {offsets = [32, 0], sizes = [32, 128], strides = [1, 1]} : vector<128x128xbf16> to vector<32x128xbf16>
    %cst_29 = arith.constant dense<0.000000e+00> : vector<32x128xf32>
    %86 = tpu.matmul %84, %85, %cst_29 {dimension_numbers = #tpu.dot_dimension_numbers<[1], [0], [0], [1], [0, 0, 1, 1], [], []>} : vector<32x32xbf16>, vector<32x128xbf16>, vector<32x128xf32> -> vector<32x128xf32>
    %87 = arith.addf %60, %86 : vector<32x128xf32>
    %88 = vector.extract_strided_slice %27 {offsets = [0, 64], sizes = [32, 32], strides = [1, 1]} : vector<32x384xf32> to vector<32x32xf32>
    %89 = vector.extract_strided_slice %27 {offsets = [0, 192], sizes = [32, 32], strides = [1, 1]} : vector<32x384xf32> to vector<32x32xf32>
    %90 = vector.extract_strided_slice %27 {offsets = [0, 320], sizes = [32, 32], strides = [1, 1]} : vector<32x384xf32> to vector<32x32xf32>
    %91 = arith.truncf %88 : vector<32x32xf32> to vector<32x32xbf16>
    %92 = arith.truncf %89 : vector<32x32xf32> to vector<32x32xbf16>
    %cst_30 = arith.constant dense<0.000000e+00> : vector<32x32xf32>
    %93 = tpu.matmul %91, %92, %cst_30 {dimension_numbers = #tpu.dot_dimension_numbers<[1], [1], [0], [0], [0, 0, 1, 0], [], []>} : vector<32x32xbf16>, vector<32x32xbf16>, vector<32x32xf32> -> vector<32x32xf32>
    %cst_31 = arith.constant 0.176776692 : f32
    %94 = vector.broadcast %cst_31 : f32 to vector<32x32xf32>
    %95 = arith.mulf %93, %94 : vector<32x32xf32>
    %cst_32 = arith.constant 0xFF800000 : f32
    %96 = vector.broadcast %cst_32 : f32 to vector<32x32xf32>
    %97 = arith.select %30, %95, %96 : vector<32x32xi1>, vector<32x32xf32>
    %cst_33 = arith.constant dense<0xFF800000> : vector<32xf32>
    %98 = vector.multi_reduction <maximumf>, %97, %cst_33 [1] : vector<32x32xf32> to vector<32xf32>
    %99 = vector.shape_cast %98 : vector<32xf32> to vector<32x1xf32>
    %100 = vector.broadcast %99 : vector<32x1xf32> to vector<32x32xf32>
    %101 = arith.subf %97, %100 : vector<32x32xf32>
    %102 = math.exp %101 : vector<32x32xf32>
    %cst_34 = arith.constant dense<0.000000e+00> : vector<32xf32>
    %103 = vector.multi_reduction <add>, %102, %cst_34 [1] : vector<32x32xf32> to vector<32xf32>
    %104 = vector.shape_cast %103 : vector<32xf32> to vector<32x1xf32>
    %105 = tpu.reciprocal %104 {approx = true} : vector<32x1xf32> -> vector<32x1xf32>
    %106 = vector.broadcast %105 : vector<32x1xf32> to vector<32x32xf32>
    %107 = arith.mulf %102, %106 : vector<32x32xf32>
    %108 = arith.truncf %107 : vector<32x32xf32> to vector<32x32xbf16>
    %109 = arith.truncf %90 : vector<32x32xf32> to vector<32x32xbf16>
    %cst_35 = arith.constant dense<0.000000e+00> : vector<32x32xf32>
    %110 = tpu.matmul %108, %109, %cst_35 {dimension_numbers = #tpu.dot_dimension_numbers<[1], [0], [0], [1], [0, 0, 1, 1], [], []>} : vector<32x32xbf16>, vector<32x32xbf16>, vector<32x32xf32> -> vector<32x32xf32>
    %111 = arith.truncf %110 : vector<32x32xf32> to vector<32x32xbf16>
    %112 = vector.extract_strided_slice %32 {offsets = [64, 0], sizes = [32, 128], strides = [1, 1]} : vector<128x128xbf16> to vector<32x128xbf16>
    %cst_36 = arith.constant dense<0.000000e+00> : vector<32x128xf32>
    %113 = tpu.matmul %111, %112, %cst_36 {dimension_numbers = #tpu.dot_dimension_numbers<[1], [0], [0], [1], [0, 0, 1, 1], [], []>} : vector<32x32xbf16>, vector<32x128xbf16>, vector<32x128xf32> -> vector<32x128xf32>
    %114 = arith.addf %87, %113 : vector<32x128xf32>
    %115 = vector.extract_strided_slice %27 {offsets = [0, 96], sizes = [32, 32], strides = [1, 1]} : vector<32x384xf32> to vector<32x32xf32>
    %116 = vector.extract_strided_slice %27 {offsets = [0, 224], sizes = [32, 32], strides = [1, 1]} : vector<32x384xf32> to vector<32x32xf32>
    %117 = vector.extract_strided_slice %27 {offsets = [0, 352], sizes = [32, 32], strides = [1, 1]} : vector<32x384xf32> to vector<32x32xf32>
    %118 = arith.truncf %115 : vector<32x32xf32> to vector<32x32xbf16>
    %119 = arith.truncf %116 : vector<32x32xf32> to vector<32x32xbf16>
    %cst_37 = arith.constant dense<0.000000e+00> : vector<32x32xf32>
    %120 = tpu.matmul %118, %119, %cst_37 {dimension_numbers = #tpu.dot_dimension_numbers<[1], [1], [0], [0], [0, 0, 1, 0], [], []>} : vector<32x32xbf16>, vector<32x32xbf16>, vector<32x32xf32> -> vector<32x32xf32>
    %cst_38 = arith.constant 0.176776692 : f32
    %121 = vector.broadcast %cst_38 : f32 to vector<32x32xf32>
    %122 = arith.mulf %120, %121 : vector<32x32xf32>
    %cst_39 = arith.constant 0xFF800000 : f32
    %123 = vector.broadcast %cst_39 : f32 to vector<32x32xf32>
    %124 = arith.select %30, %122, %123 : vector<32x32xi1>, vector<32x32xf32>
    %cst_40 = arith.constant dense<0xFF800000> : vector<32xf32>
    %125 = vector.multi_reduction <maximumf>, %124, %cst_40 [1] : vector<32x32xf32> to vector<32xf32>
    %126 = vector.shape_cast %125 : vector<32xf32> to vector<32x1xf32>
    %127 = vector.broadcast %126 : vector<32x1xf32> to vector<32x32xf32>
    %128 = arith.subf %124, %127 : vector<32x32xf32>
    %129 = math.exp %128 : vector<32x32xf32>
    %cst_41 = arith.constant dense<0.000000e+00> : vector<32xf32>
    %130 = vector.multi_reduction <add>, %129, %cst_41 [1] : vector<32x32xf32> to vector<32xf32>
    %131 = vector.shape_cast %130 : vector<32xf32> to vector<32x1xf32>
    %132 = tpu.reciprocal %131 {approx = true} : vector<32x1xf32> -> vector<32x1xf32>
    %133 = vector.broadcast %132 : vector<32x1xf32> to vector<32x32xf32>
    %134 = arith.mulf %129, %133 : vector<32x32xf32>
    %135 = arith.truncf %134 : vector<32x32xf32> to vector<32x32xbf16>
    %136 = arith.truncf %117 : vector<32x32xf32> to vector<32x32xbf16>
    %cst_42 = arith.constant dense<0.000000e+00> : vector<32x32xf32>
    %137 = tpu.matmul %135, %136, %cst_42 {dimension_numbers = #tpu.dot_dimension_numbers<[1], [0], [0], [1], [0, 0, 1, 1], [], []>} : vector<32x32xbf16>, vector<32x32xbf16>, vector<32x32xf32> -> vector<32x32xf32>
    %138 = arith.truncf %137 : vector<32x32xf32> to vector<32x32xbf16>
    %139 = vector.extract_strided_slice %32 {offsets = [96, 0], sizes = [32, 128], strides = [1, 1]} : vector<128x128xbf16> to vector<32x128xbf16>
    %cst_43 = arith.constant dense<0.000000e+00> : vector<32x128xf32>
    %140 = tpu.matmul %138, %139, %cst_43 {dimension_numbers = #tpu.dot_dimension_numbers<[1], [0], [0], [1], [0, 0, 1, 1], [], []>} : vector<32x32xbf16>, vector<32x128xbf16>, vector<32x128xf32> -> vector<32x128xf32>
    %141 = arith.addf %114, %140 : vector<32x128xf32>
    %142 = arith.addf %1, %141 : vector<32x128xf32>
    %c0_44 = arith.constant 0 : index
    %c0_45 = arith.constant 0 : index
    %143 = vector.load %arg6[%c0_44, %c0_45] : memref<1x128xf32, #tpu.memory_space<vmem>>, vector<1x128xf32>
    %144 = vector.broadcast %143 : vector<1x128xf32> to vector<32x128xf32>
    %145 = arith.addf %142, %144 : vector<32x128xf32>
    %c0_46 = arith.constant 0 : index
    %c0_47 = arith.constant 0 : index
    %146 = vector.load %arg7[%c0_46, %c0_47] : memref<1x128xf32, #tpu.memory_space<vmem>>, vector<1x128xf32>
    %c0_48 = arith.constant 0 : index
    %c0_49 = arith.constant 0 : index
    %147 = vector.load %arg8[%c0_48, %c0_49] : memref<1x128xf32, #tpu.memory_space<vmem>>, vector<1x128xf32>
    %cst_50 = arith.constant dense<0.000000e+00> : vector<32xf32>
    %148 = vector.multi_reduction <add>, %145, %cst_50 [1] : vector<32x128xf32> to vector<32xf32>
    %149 = vector.shape_cast %148 : vector<32xf32> to vector<32x1xf32>
    %cst_51 = arith.constant 1.280000e+02 : f32
    %150 = vector.broadcast %cst_51 : f32 to vector<32x1xf32>
    %151 = arith.divf %149, %150 : vector<32x1xf32>
    %152 = vector.broadcast %151 : vector<32x1xf32> to vector<32x128xf32>
    %153 = arith.subf %145, %152 : vector<32x128xf32>
    %154 = arith.mulf %153, %153 : vector<32x128xf32>
    %cst_52 = arith.constant dense<0.000000e+00> : vector<32xf32>
    %155 = vector.multi_reduction <add>, %154, %cst_52 [1] : vector<32x128xf32> to vector<32xf32>
    %156 = vector.shape_cast %155 : vector<32xf32> to vector<32x1xf32>
    %cst_53 = arith.constant 1.280000e+02 : f32
    %157 = vector.broadcast %cst_53 : f32 to vector<32x1xf32>
    %158 = arith.divf %156, %157 : vector<32x1xf32>
    %cst_54 = arith.constant 9.99999974E-6 : f32
    %159 = vector.broadcast %cst_54 : f32 to vector<32x1xf32>
    %160 = arith.addf %158, %159 : vector<32x1xf32>
    %161 = math.rsqrt %160 : vector<32x1xf32>
    %162 = vector.broadcast %161 : vector<32x1xf32> to vector<32x128xf32>
    %163 = arith.mulf %153, %162 : vector<32x128xf32>
    %164 = vector.broadcast %146 : vector<1x128xf32> to vector<32x128xf32>
    %165 = arith.mulf %163, %164 : vector<32x128xf32>
    %166 = vector.broadcast %147 : vector<1x128xf32> to vector<32x128xf32>
    %167 = arith.addf %165, %166 : vector<32x128xf32>
    %168 = arith.truncf %167 : vector<32x128xf32> to vector<32x128xbf16>
    %c0_55 = arith.constant 0 : index
    %c0_56 = arith.constant 0 : index
    %169 = vector.load %arg9[%c0_55, %c0_56] : memref<128x512xf32, #tpu.memory_space<vmem>>, vector<128x512xf32>
    %170 = arith.truncf %169 : vector<128x512xf32> to vector<128x512xbf16>
    %cst_57 = arith.constant dense<0.000000e+00> : vector<32x512xf32>
    %171 = tpu.matmul %168, %170, %cst_57 {dimension_numbers = #tpu.dot_dimension_numbers<[1], [0], [0], [1], [0, 0, 1, 1], [], []>} : vector<32x128xbf16>, vector<128x512xbf16>, vector<32x512xf32> -> vector<32x512xf32>
    %c0_58 = arith.constant 0 : index
    %c0_59 = arith.constant 0 : index
    %172 = vector.load %arg10[%c0_58, %c0_59] : memref<1x512xf32, #tpu.memory_space<vmem>>, vector<1x512xf32>
    %173 = vector.broadcast %172 : vector<1x512xf32> to vector<32x512xf32>
    %174 = arith.addf %171, %173 : vector<32x512xf32>
    %cst_60 = arith.constant 0.000000e+00 : f32
    %175 = vector.broadcast %cst_60 : f32 to vector<32x512xf32>
    %176 = arith.maximumf %174, %175 : vector<32x512xf32>
    %177 = arith.truncf %176 : vector<32x512xf32> to vector<32x512xbf16>
    %c0_61 = arith.constant 0 : index
    %c0_62 = arith.constant 0 : index
    %178 = vector.load %arg11[%c0_61, %c0_62] : memref<512x128xf32, #tpu.memory_space<vmem>>, vector<512x128xf32>
    %179 = arith.truncf %178 : vector<512x128xf32> to vector<512x128xbf16>
    %cst_63 = arith.constant dense<0.000000e+00> : vector<32x128xf32>
    %180 = tpu.matmul %177, %179, %cst_63 {dimension_numbers = #tpu.dot_dimension_numbers<[1], [0], [0], [1], [0, 0, 1, 1], [], []>} : vector<32x512xbf16>, vector<512x128xbf16>, vector<32x128xf32> -> vector<32x128xf32>
    %c0_64 = arith.constant 0 : index
    %c0_65 = arith.constant 0 : index
    %181 = vector.load %arg12[%c0_64, %c0_65] : memref<1x128xf32, #tpu.memory_space<vmem>>, vector<1x128xf32>
    %182 = vector.broadcast %181 : vector<1x128xf32> to vector<32x128xf32>
    %183 = arith.addf %180, %182 : vector<32x128xf32>
    %184 = arith.addf %145, %183 : vector<32x128xf32>
    %c0_66 = arith.constant 0 : index
    %c0_67 = arith.constant 0 : index
    %c0_68 = arith.constant 0 : index
    %185 = vector.load %arg13[%c0_66, %c0_67, %c0_68] : memref<1x32x128xf32, #tpu.memory_space<vmem>>, vector<1x32x128xf32>
    %186 = vector.shape_cast %185 : vector<1x32x128xf32> to vector<32x128xf32>
    %187 = vector.shape_cast %184 : vector<32x128xf32> to vector<1x32x128xf32>
    tpu.vector_store %arg13[%c0_66, %c0_67, %c0_68], %187 {strides = array<i32>} : memref<1x32x128xf32, #tpu.memory_space<vmem>>, vector<1x32x128xf32>,
    return
  }
  func.func @transform_0(%arg0: i32) -> (i32, i32, i32) {
    %c0_i32 = arith.constant 0 : i32
    %c0_i32_0 = arith.constant 0 : i32
    %c0_i32_1 = arith.constant 0 : i32
    return %arg0, %c0_i32, %c0_i32_0 : i32, i32, i32
  }
  func.func @transform_1(%arg0: i32) -> (i32, i32) {
    %c0_i32 = arith.constant 0 : i32
    %c0_i32_0 = arith.constant 0 : i32
    %c0_i32_1 = arith.constant 0 : i32
    return %c0_i32, %c0_i32_0 : i32, i32
  }
  func.func @transform_2(%arg0: i32) -> (i32, i32) {
    %c0_i32 = arith.constant 0 : i32
    %c0_i32_0 = arith.constant 0 : i32
    %c0_i32_1 = arith.constant 0 : i32
    return %c0_i32, %c0_i32_0 : i32, i32
  }
  func.func @transform_3(%arg0: i32) -> (i32, i32) {
    %c0_i32 = arith.constant 0 : i32
    %c0_i32_0 = arith.constant 0 : i32
    %c0_i32_1 = arith.constant 0 : i32
    return %c0_i32, %c0_i32_0 : i32, i32
  }
  func.func @transform_4(%arg0: i32) -> (i32, i32) {
    %c0_i32 = arith.constant 0 : i32
    %c0_i32_0 = arith.constant 0 : i32
    %c0_i32_1 = arith.constant 0 : i32
    return %c0_i32, %c0_i32_0 : i32, i32
  }
  func.func @transform_5(%arg0: i32) -> (i32, i32) {
    %c0_i32 = arith.constant 0 : i32
    %c0_i32_0 = arith.constant 0 : i32
    %c0_i32_1 = arith.constant 0 : i32
    return %c0_i32, %c0_i32_0 : i32, i32
  }
  func.func @transform_6(%arg0: i32) -> (i32, i32) {
    %c0_i32 = arith.constant 0 : i32
    %c0_i32_0 = arith.constant 0 : i32
    %c0_i32_1 = arith.constant 0 : i32
    return %c0_i32, %c0_i32_0 : i32, i32
  }
  func.func @transform_7(%arg0: i32) -> (i32, i32) {
    %c0_i32 = arith.constant 0 : i32
    %c0_i32_0 = arith.constant 0 : i32
    %c0_i32_1 = arith.constant 0 : i32
    return %c0_i32, %c0_i32_0 : i32, i32
  }
  func.func @transform_8(%arg0: i32) -> (i32, i32) {
    %c0_i32 = arith.constant 0 : i32
    %c0_i32_0 = arith.constant 0 : i32
    %c0_i32_1 = arith.constant 0 : i32
    return %c0_i32, %c0_i32_0 : i32, i32
  }
  func.func @transform_9(%arg0: i32) -> (i32, i32) {
    %c0_i32 = arith.constant 0 : i32
    %c0_i32_0 = arith.constant 0 : i32
    %c0_i32_1 = arith.constant 0 : i32
    return %c0_i32, %c0_i32_0 : i32, i32
  }
  func.func @transform_10(%arg0: i32) -> (i32, i32) {
    %c0_i32 = arith.constant 0 : i32
    %c0_i32_0 = arith.constant 0 : i32
    %c0_i32_1 = arith.constant 0 : i32
    return %c0_i32, %c0_i32_0 : i32, i32
  }
  func.func @transform_11(%arg0: i32) -> (i32, i32) {
    %c0_i32 = arith.constant 0 : i32
    %c0_i32_0 = arith.constant 0 : i32
    %c0_i32_1 = arith.constant 0 : i32
    return %c0_i32, %c0_i32_0 : i32, i32
  }
  func.func @transform_12(%arg0: i32) -> (i32, i32, i32) {
    %c0_i32 = arith.constant 0 : i32
    %c0_i32_0 = arith.constant 0 : i32
    %c0_i32_1 = arith.constant 0 : i32
    return %arg0, %c0_i32, %c0_i32_0 : i32, i32, i32
  }
}

module attributes {stable_mosaic.version = 11 : i64} {
  func.func @_block_kernel(%arg0: i32, %arg1: memref<1x32x128xf32, #tpu.memory_space<vmem>>, %arg2: memref<1x128xf32, #tpu.memory_space<vmem>>, %arg3: memref<1x128xf32, #tpu.memory_space<vmem>>, %arg4: memref<128x384xf32, #tpu.memory_space<vmem>>, %arg5: memref<128x128xf32, #tpu.memory_space<vmem>>, %arg6: memref<1x128xf32, #tpu.memory_space<vmem>>, %arg7: memref<1x128xf32, #tpu.memory_space<vmem>>, %arg8: memref<1x128xf32, #tpu.memory_space<vmem>>, %arg9: memref<128x512xf32, #tpu.memory_space<vmem>>, %arg10: memref<1x512xf32, #tpu.memory_space<vmem>>, %arg11: memref<512x128xf32, #tpu.memory_space<vmem>>, %arg12: memref<1x128xf32, #tpu.memory_space<vmem>>, %arg13: memref<1x32x128xf32, #tpu.memory_space<vmem>>) attributes {dimension_semantics = [#tpu.dimension_semantics<parallel>], iteration_bounds = array<i64: 2>, scalar_prefetch = 0 : i64, scratch_operands = 0 : i64, tpu.core_type = #tpu.core_type<tc>, window_params = [{transform_indices = @transform_0, window_bounds = array<i64: 1, 32, 128>}, {pipeline_mode = #tpu.pipeline_mode<synchronous>, transform_indices = @transform_1, window_bounds = array<i64: 1, 128>}, {pipeline_mode = #tpu.pipeline_mode<synchronous>, transform_indices = @transform_2, window_bounds = array<i64: 1, 128>}, {pipeline_mode = #tpu.pipeline_mode<synchronous>, transform_indices = @transform_3, window_bounds = array<i64: 128, 384>}, {pipeline_mode = #tpu.pipeline_mode<synchronous>, transform_indices = @transform_4, window_bounds = array<i64: 128, 128>}, {pipeline_mode = #tpu.pipeline_mode<synchronous>, transform_indices = @transform_5, window_bounds = array<i64: 1, 128>}, {pipeline_mode = #tpu.pipeline_mode<synchronous>, transform_indices = @transform_6, window_bounds = array<i64: 1, 128>}, {pipeline_mode = #tpu.pipeline_mode<synchronous>, transform_indices = @transform_7, window_bounds = array<i64: 1, 128>}, {pipeline_mode = #tpu.pipeline_mode<synchronous>, transform_indices = @transform_8, window_bounds = array<i64: 128, 512>}, {pipeline_mode = #tpu.pipeline_mode<synchronous>, transform_indices = @transform_9, window_bounds = array<i64: 1, 512>}, {pipeline_mode = #tpu.pipeline_mode<synchronous>, transform_indices = @transform_10, window_bounds = array<i64: 512, 128>}, {pipeline_mode = #tpu.pipeline_mode<synchronous>, transform_indices = @transform_11, window_bounds = array<i64: 1, 128>}, {transform_indices = @transform_12, window_bounds = array<i64: 1, 32, 128>}]} {
    %c0 = arith.constant 0 : index
    %c0_0 = arith.constant 0 : index
    %c0_1 = arith.constant 0 : index
    %0 = vector.load %arg1[%c0, %c0_0, %c0_1] : memref<1x32x128xf32, #tpu.memory_space<vmem>>, vector<1x32x128xf32>
    %1 = vector.shape_cast %0 : vector<1x32x128xf32> to vector<32x128xf32>
    %c0_2 = arith.constant 0 : index
    %c0_3 = arith.constant 0 : index
    %2 = vector.load %arg2[%c0_2, %c0_3] : memref<1x128xf32, #tpu.memory_space<vmem>>, vector<1x128xf32>
    %c0_4 = arith.constant 0 : index
    %c0_5 = arith.constant 0 : index
    %3 = vector.load %arg3[%c0_4, %c0_5] : memref<1x128xf32, #tpu.memory_space<vmem>>, vector<1x128xf32>
    %cst = arith.constant dense<0.000000e+00> : vector<32xf32>
    %4 = vector.multi_reduction <add>, %1, %cst [1] : vector<32x128xf32> to vector<32xf32>
    %5 = vector.shape_cast %4 : vector<32xf32> to vector<32x1xf32>
    %cst_6 = arith.constant 1.280000e+02 : f32
    %6 = vector.broadcast %cst_6 : f32 to vector<32x1xf32>
    %7 = arith.divf %5, %6 : vector<32x1xf32>
    %8 = vector.broadcast %7 : vector<32x1xf32> to vector<32x128xf32>
    %9 = arith.subf %1, %8 : vector<32x128xf32>
    %10 = arith.mulf %9, %9 : vector<32x128xf32>
    %cst_7 = arith.constant dense<0.000000e+00> : vector<32xf32>
    %11 = vector.multi_reduction <add>, %10, %cst_7 [1] : vector<32x128xf32> to vector<32xf32>
    %12 = vector.shape_cast %11 : vector<32xf32> to vector<32x1xf32>
    %cst_8 = arith.constant 1.280000e+02 : f32
    %13 = vector.broadcast %cst_8 : f32 to vector<32x1xf32>
    %14 = arith.divf %12, %13 : vector<32x1xf32>
    %cst_9 = arith.constant 9.99999974E-6 : f32
    %15 = vector.broadcast %cst_9 : f32 to vector<32x1xf32>
    %16 = arith.addf %14, %15 : vector<32x1xf32>
    %17 = math.rsqrt %16 : vector<32x1xf32>
    %18 = vector.broadcast %17 : vector<32x1xf32> to vector<32x128xf32>
    %19 = arith.mulf %9, %18 : vector<32x128xf32>
    %20 = vector.broadcast %2 : vector<1x128xf32> to vector<32x128xf32>
    %21 = arith.mulf %19, %20 : vector<32x128xf32>
    %22 = vector.broadcast %3 : vector<1x128xf32> to vector<32x128xf32>
    %23 = arith.addf %21, %22 : vector<32x128xf32>
    %24 = arith.truncf %23 : vector<32x128xf32> to vector<32x128xbf16>
    %c0_10 = arith.constant 0 : index
    %c0_11 = arith.constant 0 : index
    %25 = vector.load %arg4[%c0_10, %c0_11] : memref<128x384xf32, #tpu.memory_space<vmem>>, vector<128x384xf32>
    %26 = arith.truncf %25 : vector<128x384xf32> to vector<128x384xbf16>
    %cst_12 = arith.constant dense<0.000000e+00> : vector<32x384xf32>
    %27 = tpu.matmul %24, %26, %cst_12 {dimension_numbers = #tpu.dot_dimension_numbers<[1], [0], [0], [1], [0, 0, 1, 1], [], []>} : vector<32x128xbf16>, vector<128x384xbf16>, vector<32x384xf32> -> vector<32x384xf32>
    %28 = tpu.iota {dimensions = array<i32: 0>} : vector<32x32xi32>
    %29 = tpu.iota {dimensions = array<i32: 1>} : vector<32x32xi32>
    %30 = arith.cmpi sle, %29, %28 : vector<32x32xi32>
    %c0_13 = arith.constant 0 : index
    %c0_14 = arith.constant 0 : index
    %31 = vector.load %arg5[%c0_13, %c0_14] : memref<128x128xf32, #tpu.memory_space<vmem>>, vector<128x128xf32>
    %32 = arith.truncf %31 : vector<128x128xf32> to vector<128x128xbf16>
    %cst_15 = arith.constant 0.000000e+00 : f32
    %33 = vector.broadcast %cst_15 : f32 to vector<32x128xf32>
    %34 = vector.extract_strided_slice %27 {offsets = [0, 0], sizes = [32, 32], strides = [1, 1]} : vector<32x384xf32> to vector<32x32xf32>
    %35 = vector.extract_strided_slice %27 {offsets = [0, 128], sizes = [32, 32], strides = [1, 1]} : vector<32x384xf32> to vector<32x32xf32>
    %36 = vector.extract_strided_slice %27 {offsets = [0, 256], sizes = [32, 32], strides = [1, 1]} : vector<32x384xf32> to vector<32x32xf32>
    %37 = arith.truncf %34 : vector<32x32xf32> to vector<32x32xbf16>
    %38 = arith.truncf %35 : vector<32x32xf32> to vector<32x32xbf16>
    %cst_16 = arith.constant dense<0.000000e+00> : vector<32x32xf32>
    %39 = tpu.matmul %37, %38, %cst_16 {dimension_numbers = #tpu.dot_dimension_numbers<[1], [1], [0], [0], [0, 0, 1, 0], [], []>} : vector<32x32xbf16>, vector<32x32xbf16>, vector<32x32xf32> -> vector<32x32xf32>
    %cst_17 = arith.constant 0.176776692 : f32
    %40 = vector.broadcast %cst_17 : f32 to vector<32x32xf32>
    %41 = arith.mulf %39, %40 : vector<32x32xf32>
    %cst_18 = arith.constant 0xFF800000 : f32
    %42 = vector.broadcast %cst_18 : f32 to vector<32x32xf32>
    %43 = arith.select %30, %41, %42 : vector<32x32xi1>, vector<32x32xf32>
    %cst_19 = arith.constant dense<0xFF800000> : vector<32xf32>
    %44 = vector.multi_reduction <maximumf>, %43, %cst_19 [1] : vector<32x32xf32> to vector<32xf32>
    %45 = vector.shape_cast %44 : vector<32xf32> to vector<32x1xf32>
    %46 = vector.broadcast %45 : vector<32x1xf32> to vector<32x32xf32>
    %47 = arith.subf %43, %46 : vector<32x32xf32>
    %48 = math.exp %47 : vector<32x32xf32>
    %cst_20 = arith.constant dense<0.000000e+00> : vector<32xf32>
    %49 = vector.multi_reduction <add>, %48, %cst_20 [1] : vector<32x32xf32> to vector<32xf32>
    %50 = vector.shape_cast %49 : vector<32xf32> to vector<32x1xf32>
    %51 = tpu.reciprocal %50 {approx = true} : vector<32x1xf32> -> vector<32x1xf32>
    %52 = vector.broadcast %51 : vector<32x1xf32> to vector<32x32xf32>
    %53 = arith.mulf %48, %52 : vector<32x32xf32>
    %54 = arith.truncf %53 : vector<32x32xf32> to vector<32x32xbf16>
    %55 = arith.truncf %36 : vector<32x32xf32> to vector<32x32xbf16>
    %cst_21 = arith.constant dense<0.000000e+00> : vector<32x32xf32>
    %56 = tpu.matmul %54, %55, %cst_21 {dimension_numbers = #tpu.dot_dimension_numbers<[1], [0], [0], [1], [0, 0, 1, 1], [], []>} : vector<32x32xbf16>, vector<32x32xbf16>, vector<32x32xf32> -> vector<32x32xf32>
    %57 = arith.truncf %56 : vector<32x32xf32> to vector<32x32xbf16>
    %58 = vector.extract_strided_slice %32 {offsets = [0, 0], sizes = [32, 128], strides = [1, 1]} : vector<128x128xbf16> to vector<32x128xbf16>
    %cst_22 = arith.constant dense<0.000000e+00> : vector<32x128xf32>
    %59 = tpu.matmul %57, %58, %cst_22 {dimension_numbers = #tpu.dot_dimension_numbers<[1], [0], [0], [1], [0, 0, 1, 1], [], []>} : vector<32x32xbf16>, vector<32x128xbf16>, vector<32x128xf32> -> vector<32x128xf32>
    %60 = arith.addf %33, %59 : vector<32x128xf32>
    %61 = vector.extract_strided_slice %27 {offsets = [0, 32], sizes = [32, 32], strides = [1, 1]} : vector<32x384xf32> to vector<32x32xf32>
    %62 = vector.extract_strided_slice %27 {offsets = [0, 160], sizes = [32, 32], strides = [1, 1]} : vector<32x384xf32> to vector<32x32xf32>
    %63 = vector.extract_strided_slice %27 {offsets = [0, 288], sizes = [32, 32], strides = [1, 1]} : vector<32x384xf32> to vector<32x32xf32>
    %64 = arith.truncf %61 : vector<32x32xf32> to vector<32x32xbf16>
    %65 = arith.truncf %62 : vector<32x32xf32> to vector<32x32xbf16>
    %cst_23 = arith.constant dense<0.000000e+00> : vector<32x32xf32>
    %66 = tpu.matmul %64, %65, %cst_23 {dimension_numbers = #tpu.dot_dimension_numbers<[1], [1], [0], [0], [0, 0, 1, 0], [], []>} : vector<32x32xbf16>, vector<32x32xbf16>, vector<32x32xf32> -> vector<32x32xf32>
    %cst_24 = arith.constant 0.176776692 : f32
    %67 = vector.broadcast %cst_24 : f32 to vector<32x32xf32>
    %68 = arith.mulf %66, %67 : vector<32x32xf32>
    %cst_25 = arith.constant 0xFF800000 : f32
    %69 = vector.broadcast %cst_25 : f32 to vector<32x32xf32>
    %70 = arith.select %30, %68, %69 : vector<32x32xi1>, vector<32x32xf32>
    %cst_26 = arith.constant dense<0xFF800000> : vector<32xf32>
    %71 = vector.multi_reduction <maximumf>, %70, %cst_26 [1] : vector<32x32xf32> to vector<32xf32>
    %72 = vector.shape_cast %71 : vector<32xf32> to vector<32x1xf32>
    %73 = vector.broadcast %72 : vector<32x1xf32> to vector<32x32xf32>
    %74 = arith.subf %70, %73 : vector<32x32xf32>
    %75 = math.exp %74 : vector<32x32xf32>
    %cst_27 = arith.constant dense<0.000000e+00> : vector<32xf32>
    %76 = vector.multi_reduction <add>, %75, %cst_27 [1] : vector<32x32xf32> to vector<32xf32>
    %77 = vector.shape_cast %76 : vector<32xf32> to vector<32x1xf32>
    %78 = tpu.reciprocal %77 {approx = true} : vector<32x1xf32> -> vector<32x1xf32>
    %79 = vector.broadcast %78 : vector<32x1xf32> to vector<32x32xf32>
    %80 = arith.mulf %75, %79 : vector<32x32xf32>
    %81 = arith.truncf %80 : vector<32x32xf32> to vector<32x32xbf16>
    %82 = arith.truncf %63 : vector<32x32xf32> to vector<32x32xbf16>
    %cst_28 = arith.constant dense<0.000000e+00> : vector<32x32xf32>
    %83 = tpu.matmul %81, %82, %cst_28 {dimension_numbers = #tpu.dot_dimension_numbers<[1], [0], [0], [1], [0, 0, 1, 1], [], []>} : vector<32x32xbf16>, vector<32x32xbf16>, vector<32x32xf32> -> vector<32x32xf32>
    %84 = arith.truncf %83 : vector<32x32xf32> to vector<32x32xbf16>
    %85 = vector.extract_strided_slice %32 {offsets = [32, 0], sizes = [32, 128], strides = [1, 1]} : vector<128x128xbf16> to vector<32x128xbf16>
    %cst_29 = arith.constant dense<0.000000e+00> : vector<32x128xf32>
    %86 = tpu.matmul %84, %85, %cst_29 {dimension_numbers = #tpu.dot_dimension_numbers<[1], [0], [0], [1], [0, 0, 1, 1], [], []>} : vector<32x32xbf16>, vector<32x128xbf16>, vector<32x128xf32> -> vector<32x128xf32>
    %87 = arith.addf %60, %86 : vector<32x128xf32>
    %88 = vector.extract_strided_slice %27 {offsets = [0, 64], sizes = [32, 32], strides = [1, 1]} : vector<32x384xf32> to vector<32x32xf32>
    %89 = vector.extract_strided_slice %27 {offsets = [0, 192], sizes = [32, 32], strides = [1, 1]} : vector<32x384xf32> to vector<32x32xf32>
    %90 = vector.extract_strided_slice %27 {offsets = [0, 320], sizes = [32, 32], strides = [1, 1]} : vector<32x384xf32> to vector<32x32xf32>
    %91 = arith.truncf %88 : vector<32x32xf32> to vector<32x32xbf16>
    %92 = arith.truncf %89 : vector<32x32xf32> to vector<32x32xbf16>
    %cst_30 = arith.constant dense<0.000000e+00> : vector<32x32xf32>
    %93 = tpu.matmul %91, %92, %cst_30 {dimension_numbers = #tpu.dot_dimension_numbers<[1], [1], [0], [0], [0, 0, 1, 0], [], []>} : vector<32x32xbf16>, vector<32x32xbf16>, vector<32x32xf32> -> vector<32x32xf32>
    %cst_31 = arith.constant 0.176776692 : f32
    %94 = vector.broadcast %cst_31 : f32 to vector<32x32xf32>
    %95 = arith.mulf %93, %94 : vector<32x32xf32>
    %cst_32 = arith.constant 0xFF800000 : f32
    %96 = vector.broadcast %cst_32 : f32 to vector<32x32xf32>
    %97 = arith.select %30, %95, %96 : vector<32x32xi1>, vector<32x32xf32>
    %cst_33 = arith.constant dense<0xFF800000> : vector<32xf32>
    %98 = vector.multi_reduction <maximumf>, %97, %cst_33 [1] : vector<32x32xf32> to vector<32xf32>
    %99 = vector.shape_cast %98 : vector<32xf32> to vector<32x1xf32>
    %100 = vector.broadcast %99 : vector<32x1xf32> to vector<32x32xf32>
    %101 = arith.subf %97, %100 : vector<32x32xf32>
    %102 = math.exp %101 : vector<32x32xf32>
    %cst_34 = arith.constant dense<0.000000e+00> : vector<32xf32>
    %103 = vector.multi_reduction <add>, %102, %cst_34 [1] : vector<32x32xf32> to vector<32xf32>
    %104 = vector.shape_cast %103 : vector<32xf32> to vector<32x1xf32>
    %105 = tpu.reciprocal %104 {approx = true} : vector<32x1xf32> -> vector<32x1xf32>
    %106 = vector.broadcast %105 : vector<32x1xf32> to vector<32x32xf32>
    %107 = arith.mulf %102, %106 : vector<32x32xf32>
    %108 = arith.truncf %107 : vector<32x32xf32> to vector<32x32xbf16>
    %109 = arith.truncf %90 : vector<32x32xf32> to vector<32x32xbf16>
    %cst_35 = arith.constant dense<0.000000e+00> : vector<32x32xf32>
    %110 = tpu.matmul %108, %109, %cst_35 {dimension_numbers = #tpu.dot_dimension_numbers<[1], [0], [0], [1], [0, 0, 1, 1], [], []>} : vector<32x32xbf16>, vector<32x32xbf16>, vector<32x32xf32> -> vector<32x32xf32>
    %111 = arith.truncf %110 : vector<32x32xf32> to vector<32x32xbf16>
    %112 = vector.extract_strided_slice %32 {offsets = [64, 0], sizes = [32, 128], strides = [1, 1]} : vector<128x128xbf16> to vector<32x128xbf16>
    %cst_36 = arith.constant dense<0.000000e+00> : vector<32x128xf32>
    %113 = tpu.matmul %111, %112, %cst_36 {dimension_numbers = #tpu.dot_dimension_numbers<[1], [0], [0], [1], [0, 0, 1, 1], [], []>} : vector<32x32xbf16>, vector<32x128xbf16>, vector<32x128xf32> -> vector<32x128xf32>
    %114 = arith.addf %87, %113 : vector<32x128xf32>
    %115 = vector.extract_strided_slice %27 {offsets = [0, 96], sizes = [32, 32], strides = [1, 1]} : vector<32x384xf32> to vector<32x32xf32>
    %116 = vector.extract_strided_slice %27 {offsets = [0, 224], sizes = [32, 32], strides = [1, 1]} : vector<32x384xf32> to vector<32x32xf32>
    %117 = vector.extract_strided_slice %27 {offsets = [0, 352], sizes = [32, 32], strides = [1, 1]} : vector<32x384xf32> to vector<32x32xf32>
    %118 = arith.truncf %115 : vector<32x32xf32> to vector<32x32xbf16>
    %119 = arith.truncf %116 : vector<32x32xf32> to vector<32x32xbf16>
    %cst_37 = arith.constant dense<0.000000e+00> : vector<32x32xf32>
    %120 = tpu.matmul %118, %119, %cst_37 {dimension_numbers = #tpu.dot_dimension_numbers<[1], [1], [0], [0], [0, 0, 1, 0], [], []>} : vector<32x32xbf16>, vector<32x32xbf16>, vector<32x32xf32> -> vector<32x32xf32>
    %cst_38 = arith.constant 0.176776692 : f32
    %121 = vector.broadcast %cst_38 : f32 to vector<32x32xf32>
    %122 = arith.mulf %120, %121 : vector<32x32xf32>
    %cst_39 = arith.constant 0xFF800000 : f32
    %123 = vector.broadcast %cst_39 : f32 to vector<32x32xf32>
    %124 = arith.select %30, %122, %123 : vector<32x32xi1>, vector<32x32xf32>
    %cst_40 = arith.constant dense<0xFF800000> : vector<32xf32>
    %125 = vector.multi_reduction <maximumf>, %124, %cst_40 [1] : vector<32x32xf32> to vector<32xf32>
    %126 = vector.shape_cast %125 : vector<32xf32> to vector<32x1xf32>
    %127 = vector.broadcast %126 : vector<32x1xf32> to vector<32x32xf32>
    %128 = arith.subf %124, %127 : vector<32x32xf32>
    %129 = math.exp %128 : vector<32x32xf32>
    %cst_41 = arith.constant dense<0.000000e+00> : vector<32xf32>
    %130 = vector.multi_reduction <add>, %129, %cst_41 [1] : vector<32x32xf32> to vector<32xf32>
    %131 = vector.shape_cast %130 : vector<32xf32> to vector<32x1xf32>
    %132 = tpu.reciprocal %131 {approx = true} : vector<32x1xf32> -> vector<32x1xf32>
    %133 = vector.broadcast %132 : vector<32x1xf32> to vector<32x32xf32>
    %134 = arith.mulf %129, %133 : vector<32x32xf32>
    %135 = arith.truncf %134 : vector<32x32xf32> to vector<32x32xbf16>
    %136 = arith.truncf %117 : vector<32x32xf32> to vector<32x32xbf16>
    %cst_42 = arith.constant dense<0.000000e+00> : vector<32x32xf32>
    %137 = tpu.matmul %135, %136, %cst_42 {dimension_numbers = #tpu.dot_dimension_numbers<[1], [0], [0], [1], [0, 0, 1, 1], [], []>} : vector<32x32xbf16>, vector<32x32xbf16>, vector<32x32xf32> -> vector<32x32xf32>
    %138 = arith.truncf %137 : vector<32x32xf32> to vector<32x32xbf16>
    %139 = vector.extract_strided_slice %32 {offsets = [96, 0], sizes = [32, 128], strides = [1, 1]} : vector<128x128xbf16> to vector<32x128xbf16>
    %cst_43 = arith.constant dense<0.000000e+00> : vector<32x128xf32>
    %140 = tpu.matmul %138, %139, %cst_43 {dimension_numbers = #tpu.dot_dimension_numbers<[1], [0], [0], [1], [0, 0, 1, 1], [], []>} : vector<32x32xbf16>, vector<32x128xbf16>, vector<32x128xf32> -> vector<32x128xf32>
    %141 = arith.addf %114, %140 : vector<32x128xf32>
    %142 = arith.addf %1, %141 : vector<32x128xf32>
    %c0_44 = arith.constant 0 : index
    %c0_45 = arith.constant 0 : index
    %143 = vector.load %arg6[%c0_44, %c0_45] : memref<1x128xf32, #tpu.memory_space<vmem>>, vector<1x128xf32>
    %144 = vector.broadcast %143 : vector<1x128xf32> to vector<32x128xf32>
    %145 = arith.addf %142, %144 : vector<32x128xf32>
    %c0_46 = arith.constant 0 : index
    %c0_47 = arith.constant 0 : index
    %146 = vector.load %arg7[%c0_46, %c0_47] : memref<1x128xf32, #tpu.memory_space<vmem>>, vector<1x128xf32>
    %c0_48 = arith.constant 0 : index
    %c0_49 = arith.constant 0 : index
    %147 = vector.load %arg8[%c0_48, %c0_49] : memref<1x128xf32, #tpu.memory_space<vmem>>, vector<1x128xf32>
    %cst_50 = arith.constant dense<0.000000e+00> : vector<32xf32>
    %148 = vector.multi_reduction <add>, %145, %cst_50 [1] : vector<32x128xf32> to vector<32xf32>
    %149 = vector.shape_cast %148 : vector<32xf32> to vector<32x1xf32>
    %cst_51 = arith.constant 1.280000e+02 : f32
    %150 = vector.broadcast %cst_51 : f32 to vector<32x1xf32>
    %151 = arith.divf %149, %150 : vector<32x1xf32>
    %152 = vector.broadcast %151 : vector<32x1xf32> to vector<32x128xf32>
    %153 = arith.subf %145, %152 : vector<32x128xf32>
    %154 = arith.mulf %153, %153 : vector<32x128xf32>
    %cst_52 = arith.constant dense<0.000000e+00> : vector<32xf32>
    %155 = vector.multi_reduction <add>, %154, %cst_52 [1] : vector<32x128xf32> to vector<32xf32>
    %156 = vector.shape_cast %155 : vector<32xf32> to vector<32x1xf32>
    %cst_53 = arith.constant 1.280000e+02 : f32
    %157 = vector.broadcast %cst_53 : f32 to vector<32x1xf32>
    %158 = arith.divf %156, %157 : vector<32x1xf32>
    %cst_54 = arith.constant 9.99999974E-6 : f32
    %159 = vector.broadcast %cst_54 : f32 to vector<32x1xf32>
    %160 = arith.addf %158, %159 : vector<32x1xf32>
    %161 = math.rsqrt %160 : vector<32x1xf32>
    %162 = vector.broadcast %161 : vector<32x1xf32> to vector<32x128xf32>
    %163 = arith.mulf %153, %162 : vector<32x128xf32>
    %164 = vector.broadcast %146 : vector<1x128xf32> to vector<32x128xf32>
    %165 = arith.mulf %163, %164 : vector<32x128xf32>
    %166 = vector.broadcast %147 : vector<1x128xf32> to vector<32x128xf32>
    %167 = arith.addf %165, %166 : vector<32x128xf32>
    %168 = arith.truncf %167 : vector<32x128xf32> to vector<32x128xbf16>
    %c0_55 = arith.constant 0 : index
    %c0_56 = arith.constant 0 : index
    %169 = vector.load %arg9[%c0_55, %c0_56] : memref<128x512xf32, #tpu.memory_space<vmem>>, vector<128x512xf32>
    %170 = arith.truncf %169 : vector<128x512xf32> to vector<128x512xbf16>
    %cst_57 = arith.constant dense<0.000000e+00> : vector<32x512xf32>
    %171 = tpu.matmul %168, %170, %cst_57 {dimension_numbers = #tpu.dot_dimension_numbers<[1], [0], [0], [1], [0, 0, 1, 1], [], []>} : vector<32x128xbf16>, vector<128x512xbf16>, vector<32x512xf32> -> vector<32x512xf32>
    %c0_58 = arith.constant 0 : index
    %c0_59 = arith.constant 0 : index
    %172 = vector.load %arg10[%c0_58, %c0_59] : memref<1x512xf32, #tpu.memory_space<vmem>>, vector<1x512xf32>
    %173 = vector.broadcast %172 : vector<1x512xf32> to vector<32x512xf32>
    %174 = arith.addf %171, %173 : vector<32x512xf32>
    %cst_60 = arith.constant 0.000000e+00 : f32
    %175 = vector.broadcast %cst_60 : f32 to vector<32x512xf32>
    %176 = arith.maximumf %174, %175 : vector<32x512xf32>
    %177 = arith.truncf %176 : vector<32x512xf32> to vector<32x512xbf16>
    %c0_61 = arith.constant 0 : index
    %c0_62 = arith.constant 0 : index
    %178 = vector.load %arg11[%c0_61, %c0_62] : memref<512x128xf32, #tpu.memory_space<vmem>>, vector<512x128xf32>
    %179 = arith.truncf %178 : vector<512x128xf32> to vector<512x128xbf16>
    %cst_63 = arith.constant dense<0.000000e+00> : vector<32x128xf32>
    %180 = tpu.matmul %177, %179, %cst_63 {dimension_numbers = #tpu.dot_dimension_numbers<[1], [0], [0], [1], [0, 0, 1, 1], [], []>} : vector<32x512xbf16>, vector<512x128xbf16>, vector<32x128xf32> -> vector<32x128xf32>
    %c0_64 = arith.constant 0 : index
    %c0_65 = arith.constant 0 : index
    %181 = vector.load %arg12[%c0_64, %c0_65] : memref<1x128xf32, #tpu.memory_space<vmem>>, vector<1x128xf32>
    %182 = vector.broadcast %181 : vector<1x128xf32> to vector<32x128xf32>
    %183 = arith.addf %180, %182 : vector<32x128xf32>
    %184 = arith.addf %145, %183 : vector<32x128xf32>
    %c0_66 = arith.constant 0 : index
    %c0_67 = arith.constant 0 : index
    %c0_68 = arith.constant 0 : index
    %185 = vector.load %arg13[%c0_66, %c0_67, %c0_68] : memref<1x32x128xf32, #tpu.memory_space<vmem>>, vector<1x32x128xf32>
    %186 = vector.shape_cast %185 : vector<1x32x128xf32> to vector<32x128xf32>
    %187 = vector.shape_cast %184 : vector<32x128xf32> to vector<1x32x128xf32>
    tpu.vector_store %arg13[%c0_66, %c0_67, %c0_68], %187 {strides = array<i32>} : memref<1x32x128xf32, #tpu.memory_space<vmem>>, vector<1x32x128xf32>,
    return
  }
  func.func @transform_0(%arg0: i32) -> (i32, i32, i32) {
    %c0_i32 = arith.constant 0 : i32
    %c0_i32_0 = arith.constant 0 : i32
    %c0_i32_1 = arith.constant 0 : i32
    return %arg0, %c0_i32, %c0_i32_0 : i32, i32, i32
  }
  func.func @transform_1(%arg0: i32) -> (i32, i32) {
    %c0_i32 = arith.constant 0 : i32
    %c0_i32_0 = arith.constant 0 : i32
    %c0_i32_1 = arith.constant 0 : i32
    return %c0_i32, %c0_i32_0 : i32, i32
  }
  func.func @transform_2(%arg0: i32) -> (i32, i32) {
    %c0_i32 = arith.constant 0 : i32
    %c0_i32_0 = arith.constant 0 : i32
    %c0_i32_1 = arith.constant 0 : i32
    return %c0_i32, %c0_i32_0 : i32, i32
  }
  func.func @transform_3(%arg0: i32) -> (i32, i32) {
    %c0_i32 = arith.constant 0 : i32
    %c0_i32_0 = arith.constant 0 : i32
    %c0_i32_1 = arith.constant 0 : i32
    return %c0_i32, %c0_i32_0 : i32, i32
  }
  func.func @transform_4(%arg0: i32) -> (i32, i32) {
    %c0_i32 = arith.constant 0 : i32
    %c0_i32_0 = arith.constant 0 : i32
    %c0_i32_1 = arith.constant 0 : i32
    return %c0_i32, %c0_i32_0 : i32, i32
  }
  func.func @transform_5(%arg0: i32) -> (i32, i32) {
    %c0_i32 = arith.constant 0 : i32
    %c0_i32_0 = arith.constant 0 : i32
    %c0_i32_1 = arith.constant 0 : i32
    return %c0_i32, %c0_i32_0 : i32, i32
  }
  func.func @transform_6(%arg0: i32) -> (i32, i32) {
    %c0_i32 = arith.constant 0 : i32
    %c0_i32_0 = arith.constant 0 : i32
    %c0_i32_1 = arith.constant 0 : i32
    return %c0_i32, %c0_i32_0 : i32, i32
  }
  func.func @transform_7(%arg0: i32) -> (i32, i32) {
    %c0_i32 = arith.constant 0 : i32
    %c0_i32_0 = arith.constant 0 : i32
    %c0_i32_1 = arith.constant 0 : i32
    return %c0_i32, %c0_i32_0 : i32, i32
  }
  func.func @transform_8(%arg0: i32) -> (i32, i32) {
    %c0_i32 = arith.constant 0 : i32
    %c0_i32_0 = arith.constant 0 : i32
    %c0_i32_1 = arith.constant 0 : i32
    return %c0_i32, %c0_i32_0 : i32, i32
  }
  func.func @transform_9(%arg0: i32) -> (i32, i32) {
    %c0_i32 = arith.constant 0 : i32
    %c0_i32_0 = arith.constant 0 : i32
    %c0_i32_1 = arith.constant 0 : i32
    return %c0_i32, %c0_i32_0 : i32, i32
  }
  func.func @transform_10(%arg0: i32) -> (i32, i32) {
    %c0_i32 = arith.constant 0 : i32
    %c0_i32_0 = arith.constant 0 : i32
    %c0_i32_1 = arith.constant 0 : i32
    return %c0_i32, %c0_i32_0 : i32, i32
  }
  func.func @transform_11(%arg0: i32) -> (i32, i32) {
    %c0_i32 = arith.constant 0 : i32
    %c0_i32_0 = arith.constant 0 : i32
    %c0_i32_1 = arith.constant 0 : i32
    return %c0_i32, %c0_i32_0 : i32, i32
  }
  func.func @transform_12(%arg0: i32) -> (i32, i32, i32) {
    %c0_i32 = arith.constant 0 : i32
    %c0_i32_0 = arith.constant 0 : i32
    %c0_i32_1 = arith.constant 0 : i32
    return %arg0, %c0_i32, %c0_i32_0 : i32, i32, i32
  }
}

module attributes {stable_mosaic.version = 11 : i64} {
  func.func @_lm_head_kernel(%arg0: i32, %arg1: memref<1x32x128xf32, #tpu.memory_space<vmem>>, %arg2: memref<1x128xf32, #tpu.memory_space<vmem>>, %arg3: memref<1x128xf32, #tpu.memory_space<vmem>>, %arg4: memref<128x512xf32, #tpu.memory_space<vmem>>, %arg5: memref<1x512xf32, #tpu.memory_space<vmem>>, %arg6: memref<1x32x512xf32, #tpu.memory_space<vmem>>) attributes {dimension_semantics = [#tpu.dimension_semantics<parallel>], iteration_bounds = array<i64: 2>, scalar_prefetch = 0 : i64, scratch_operands = 0 : i64, tpu.core_type = #tpu.core_type<tc>, window_params = [{transform_indices = @transform_0, window_bounds = array<i64: 1, 32, 128>}, {pipeline_mode = #tpu.pipeline_mode<synchronous>, transform_indices = @transform_1, window_bounds = array<i64: 1, 128>}, {pipeline_mode = #tpu.pipeline_mode<synchronous>, transform_indices = @transform_2, window_bounds = array<i64: 1, 128>}, {pipeline_mode = #tpu.pipeline_mode<synchronous>, transform_indices = @transform_3, window_bounds = array<i64: 128, 512>}, {pipeline_mode = #tpu.pipeline_mode<synchronous>, transform_indices = @transform_4, window_bounds = array<i64: 1, 512>}, {transform_indices = @transform_5, window_bounds = array<i64: 1, 32, 512>}]} {
    %c0 = arith.constant 0 : index
    %c0_0 = arith.constant 0 : index
    %c0_1 = arith.constant 0 : index
    %0 = vector.load %arg1[%c0, %c0_0, %c0_1] : memref<1x32x128xf32, #tpu.memory_space<vmem>>, vector<1x32x128xf32>
    %1 = vector.shape_cast %0 : vector<1x32x128xf32> to vector<32x128xf32>
    %c0_2 = arith.constant 0 : index
    %c0_3 = arith.constant 0 : index
    %2 = vector.load %arg2[%c0_2, %c0_3] : memref<1x128xf32, #tpu.memory_space<vmem>>, vector<1x128xf32>
    %c0_4 = arith.constant 0 : index
    %c0_5 = arith.constant 0 : index
    %3 = vector.load %arg3[%c0_4, %c0_5] : memref<1x128xf32, #tpu.memory_space<vmem>>, vector<1x128xf32>
    %cst = arith.constant dense<0.000000e+00> : vector<32xf32>
    %4 = vector.multi_reduction <add>, %1, %cst [1] : vector<32x128xf32> to vector<32xf32>
    %5 = vector.shape_cast %4 : vector<32xf32> to vector<32x1xf32>
    %cst_6 = arith.constant 1.280000e+02 : f32
    %6 = vector.broadcast %cst_6 : f32 to vector<32x1xf32>
    %7 = arith.divf %5, %6 : vector<32x1xf32>
    %8 = vector.broadcast %7 : vector<32x1xf32> to vector<32x128xf32>
    %9 = arith.subf %1, %8 : vector<32x128xf32>
    %10 = arith.mulf %9, %9 : vector<32x128xf32>
    %cst_7 = arith.constant dense<0.000000e+00> : vector<32xf32>
    %11 = vector.multi_reduction <add>, %10, %cst_7 [1] : vector<32x128xf32> to vector<32xf32>
    %12 = vector.shape_cast %11 : vector<32xf32> to vector<32x1xf32>
    %cst_8 = arith.constant 1.280000e+02 : f32
    %13 = vector.broadcast %cst_8 : f32 to vector<32x1xf32>
    %14 = arith.divf %12, %13 : vector<32x1xf32>
    %cst_9 = arith.constant 9.99999974E-6 : f32
    %15 = vector.broadcast %cst_9 : f32 to vector<32x1xf32>
    %16 = arith.addf %14, %15 : vector<32x1xf32>
    %17 = math.rsqrt %16 : vector<32x1xf32>
    %18 = vector.broadcast %17 : vector<32x1xf32> to vector<32x128xf32>
    %19 = arith.mulf %9, %18 : vector<32x128xf32>
    %20 = vector.broadcast %2 : vector<1x128xf32> to vector<32x128xf32>
    %21 = arith.mulf %19, %20 : vector<32x128xf32>
    %22 = vector.broadcast %3 : vector<1x128xf32> to vector<32x128xf32>
    %23 = arith.addf %21, %22 : vector<32x128xf32>
    %24 = arith.truncf %23 : vector<32x128xf32> to vector<32x128xbf16>
    %c0_10 = arith.constant 0 : index
    %c0_11 = arith.constant 0 : index
    %25 = vector.load %arg4[%c0_10, %c0_11] : memref<128x512xf32, #tpu.memory_space<vmem>>, vector<128x512xf32>
    %26 = arith.truncf %25 : vector<128x512xf32> to vector<128x512xbf16>
    %cst_12 = arith.constant dense<0.000000e+00> : vector<32x512xf32>
    %27 = tpu.matmul %24, %26, %cst_12 {dimension_numbers = #tpu.dot_dimension_numbers<[1], [0], [0], [1], [0, 0, 1, 1], [], []>} : vector<32x128xbf16>, vector<128x512xbf16>, vector<32x512xf32> -> vector<32x512xf32>
    %c0_13 = arith.constant 0 : index
    %c0_14 = arith.constant 0 : index
    %28 = vector.load %arg5[%c0_13, %c0_14] : memref<1x512xf32, #tpu.memory_space<vmem>>, vector<1x512xf32>
    %29 = vector.broadcast %28 : vector<1x512xf32> to vector<32x512xf32>
    %30 = arith.addf %27, %29 : vector<32x512xf32>
    %c0_15 = arith.constant 0 : index
    %c0_16 = arith.constant 0 : index
    %c0_17 = arith.constant 0 : index
    %31 = vector.load %arg6[%c0_15, %c0_16, %c0_17] : memref<1x32x512xf32, #tpu.memory_space<vmem>>, vector<1x32x512xf32>
    %32 = vector.shape_cast %31 : vector<1x32x512xf32> to vector<32x512xf32>
    %33 = vector.shape_cast %30 : vector<32x512xf32> to vector<1x32x512xf32>
    tpu.vector_store %arg6[%c0_15, %c0_16, %c0_17], %33 {strides = array<i32>} : memref<1x32x512xf32, #tpu.memory_space<vmem>>, vector<1x32x512xf32>,
    return
  }
  func.func @transform_0(%arg0: i32) -> (i32, i32, i32) {
    %c0_i32 = arith.constant 0 : i32
    %c0_i32_0 = arith.constant 0 : i32
    %c0_i32_1 = arith.constant 0 : i32
    return %arg0, %c0_i32, %c0_i32_0 : i32, i32, i32
  }
  func.func @transform_1(%arg0: i32) -> (i32, i32) {
    %c0_i32 = arith.constant 0 : i32
    %c0_i32_0 = arith.constant 0 : i32
    %c0_i32_1 = arith.constant 0 : i32
    return %c0_i32, %c0_i32_0 : i32, i32
  }
  func.func @transform_2(%arg0: i32) -> (i32, i32) {
    %c0_i32 = arith.constant 0 : i32
    %c0_i32_0 = arith.constant 0 : i32
    %c0_i32_1 = arith.constant 0 : i32
    return %c0_i32, %c0_i32_0 : i32, i32
  }
  func.func @transform_3(%arg0: i32) -> (i32, i32) {
    %c0_i32 = arith.constant 0 : i32
    %c0_i32_0 = arith.constant 0 : i32
    %c0_i32_1 = arith.constant 0 : i32
    return %c0_i32, %c0_i32_0 : i32, i32
  }
  func.func @transform_4(%arg0: i32) -> (i32, i32) {
    %c0_i32 = arith.constant 0 : i32
    %c0_i32_0 = arith.constant 0 : i32
    %c0_i32_1 = arith.constant 0 : i32
    return %c0_i32, %c0_i32_0 : i32, i32
  }
  func.func @transform_5(%arg0: i32) -> (i32, i32, i32) {
    %c0_i32 = arith.constant 0 : i32
    %c0_i32_0 = arith.constant 0 : i32
    %c0_i32_1 = arith.constant 0 : i32
    return %arg0, %c0_i32, %c0_i32_0 : i32, i32, i32
  }
}

</mosaic_0001>

<bundles_post_ra>
// kernel: gpt_forward.5
= control target key start
LH: loop header
LB: loop body
LE: loop exit
PB: predicated region body
PF: predicated region fallthrough
CT: control target
= control target key end

     0   :  { %10 = vsyncpa [#allocation3], 0  ;;  %s1125_s0 = inlined_call_operand.vmem [shape: f32[2,32,128], index: 0, kind: input, shape index: {}]   ;;  %s1126_s1 = inlined_call_operand.vmem [shape: f32[1,128], index: 1, kind: input, shape index: {}]   ;;  %s1127_s2 = inlined_call_operand.vmem [shape: f32[1,128], index: 2, kind: input, shape index: {}]   ;;  %s1128_s3 = inlined_call_operand.vmem [shape: f32[128,512], index: 3, kind: input, shape index: {}]   ;;  %s1129_s4 = inlined_call_operand.vmem [shape: f32[1,512], index: 4, kind: input, shape index: {}]   ;;  %s1130_s5 = inlined_call_operand.hbm [shape: f32[2,32,512], index: 5, kind: output, shape index: {}]  }
   0x1   :  { %12 = vsyncpa [#allocation3 + $0x1], 0  ;;  %s775_s18 = smov 0   ;;  %s777_s19 = smov 0  }
   0x2   :  { %s779_s20 = smov 0   ;;  %s781_s21 = smov 0  }
   0x3 LB: > { %s796_s22 = sadd.s32 4294967295, %s739_s21   ;;  %s613_s23 = sadd.s32 4294967294, %s739_s21   ;;  %s739_s21 = sphi %s781_s21, %s1136_s21   ;;  %s735_s20 = sphi %s779_s20, %s1135_s20   ;;  %s731_s19 = sphi %s777_s19, %s1134_s19   ;;  %s727_s18 = sphi %s775_s18, %s1133_s18  }
   0x4   : > { %s800_s24 = sadd.s32 1, %s739_s21   ;;  %s135_s25 = sadd.s32 1, %s735_s20 }
   0x5   : > { %s132_s26 = ssub.s32 %s739_s21, %s800_s24  ;;  %p145_p0 = scmp.ne.s32.totalorder %s735_s20, %s731_s19 }
   0x6   : > { %p133_p1 = scmp.eq.s32.totalorder %s132_s26, 0  ;;  %p146_p2 = scmp.eq.s32.totalorder %s796_s22, 1 }
   0x7   : > { %p151_p3 = scmp.ne.s32.totalorder %s731_s19, %s727_s18  ;;  %p152_p4 = scmp.eq.s32.totalorder %s613_s23, 1 }
   0x8   : > { %s811_s27 = scalar_select %p133_p1, %s735_s20, %s135_s25  }
   0x9   : > { %p813_p5 = por %p146_p2, %p145_p0  ;;  %p817_p6 = por %p152_p4, %p151_p3 }
   0xa   : > { %p616_p7 = scmp.ge.s32.totalorder %s739_s21, 1  ;;  %p190_p8 = scmp.lt.s32.totalorder %s739_s21, 3 }
   0xc   : > { %p191_p9 = pnand %p616_p7, %p190_p8 }
   0xd   : > { %p218_p10 = scmp.lt.s32.totalorder (!%p191_p9), %s796_s22, 1  ;;  %s215_s14 = sand.u32 (!%p191_p9), 1, %s731_s19  }
   0xe   : > { %194 = sbr.rel (%p191_p9) target bundleno = 559 (0x22f), region = 40  ;;  %s617_s17 = sshll.u32 (!%p191_p9), %s215_s14, 7 }
   0xf   : > { %s1056_s23 = scalar_lea.vmem (!%p191_p9), [#allocation2], %s617_s17  ;;  %s628_s25 = sshll.u32 (!%p191_p9), %s796_s22, 11 }
  0x10   : > { %s551_s26 = sshll.u32 (!%p191_p9), %s1056_s23, 4  ;;  %s1075_s7 = scalar_lea.hbm (!%p191_p9), %s1130_s5, %s628_s25  ;;  %s1077_s26 = int_to_ptr.vmem [resolvable:$true] %s551_s26 }
  0x11   : > { %s679_s8 = scalar_lea.vmem (!%p191_p9), %s1077_s26, 2048 }
  0x12   : > { %p680_p11 = scmp.ne.s32.totalorder (!%p191_p9), %s1077_s26, %s679_s8 }
  0x13   : > { %s219_s30 = scalar_select %p218_p10, %s796_s22, 1  ;;  %v354_v4 = vld [vmem:[%s1128_s3 + $0x1c8] sm:$0xff]  ;;  %v356_v6 = vld [vmem:[%s1128_s3 + $0x1d8] sm:$0xff]  ;;  %v353_v9 = vld [vmem:[%s1128_s3 + $0x1c0] sm:$0xff] }
  0x14   : > { %v358_v5 = vld [vmem:[%s1128_s3 + $0x1e8] sm:$0xff]  ;;  %v360_v8 = vld [vmem:[%s1128_s3 + $0x1f8] sm:$0xff]  ;;  %v357_v10 = vld [vmem:[%s1128_s3 + $0x1e0] sm:$0xff]  ;;  %s1085_s22 = scalar_lea.sflag [#allocation3], %s215_s14  ;;  %p681_p12 = pnand %p680_p11, %p813_p5 }
  0x15   : > { %s627_s6 = sshll.u32 %s219_s30, 5  ;;  %v390_v7 = vpack.c.bf16 %v358_v5, %v354_v4  ;;  %v392_v11 = vpack.c.bf16 %v360_v8, %v356_v6  ;;  %v389_v12 = vpack.c.bf16 %v357_v10, %v353_v9  ;;  %v355_v13 = vld [vmem:[%s1128_s3 + $0x1d0] sm:$0xff]  ;;  %v346_v32 = vld [vmem:[%s1128_s3 + $0x188] sm:$0xff]  ;;  %v348_v34 = vld [vmem:[%s1128_s3 + $0x198] sm:$0xff] }
  0x16   : > { %s222_s9 = scalar_lea.vmem %s1125_s0, %s627_s6  ;;  %v359_v14 = vld [vmem:[%s1128_s3 + $0x1f0] sm:$0xff]  ;;  %v350_v33 = vld [vmem:[%s1128_s3 + $0x1a8] sm:$0xff]  ;;  %v352_v36 = vld [vmem:[%s1128_s3 + $0x1b8] sm:$0xff]  ;;  %p682_p13 = pneg %p681_p12 }
  0x17   : > { %v224_v0 = vld [vmem:[%s222_s9] sm:$0xff]  ;;  %v226_v1 = vld [vmem:[%s222_s9 + $0x10] sm:$0xff]  ;;  %v225_v2 = vld [vmem:[%s222_s9 + $0x8] sm:$0xff]  ;;  %415 = vmatprep.subr.bf16.mxu0 %v390_v7  ;;  %v391_v15 = vpack.c.bf16 %v359_v14, %v355_v13  ;;  %468 = vmatprep.subr.bf16.mxu1 %v392_v11  ;;  %v386_v35 = vpack.c.bf16 %v350_v33, %v346_v32  ;;  %v388_v39 = vpack.c.bf16 %v352_v36, %v348_v34  ;;  %v741_v11 = vmov 0  }
  0x18   : > { %230 = vadd.xlane.f32.xlu0 %v224_v0  ;;  %234 = vadd.xlane.f32.xlu1 %v226_v1  ;;  %v227_v3 = vld [vmem:[%s222_s9 + $0x18] sm:$0xff]  ;;  %v345_v37 = vld [vmem:[%s1128_s3 + $0x180] sm:$0xff]  ;;  %v347_v41 = vld [vmem:[%s1128_s3 + $0x190] sm:$0xff]  ;;  %s742_s9 = smov [#allocation2]  }
  0x19   : > { %416 = vmatpush1.bf16.msra.mxu0 %v389_v12  ;;  %469 = vmatpush1.bf16.msra.mxu1 %v391_v15  ;;  %v349_v38 = vld [vmem:[%s1128_s3 + $0x1a0] sm:$0xff]  ;;  %v351_v42 = vld [vmem:[%s1128_s3 + $0x1b0] sm:$0xff]  ;;  %v338_v44 = vld [vmem:[%s1128_s3 + $0x148] sm:$0xff]  ;;  %s683_s10 = sshll.u32 %s742_s9, 4  ;;  %s684_s10 = int_to_ptr.vmem [resolvable:$false] %s683_s10 }
  0x1a   : > { %v385_v40 = vpack.c.bf16 %v349_v38, %v345_v37  ;;  %417 = vmatprep.subr.bf16.mxu0 %v386_v35  ;;  %v387_v43 = vpack.c.bf16 %v351_v42, %v347_v41  ;;  %470 = vmatprep.subr.bf16.mxu1 %v388_v39  ;;  %v342_v45 = vld [vmem:[%s1128_s3 + $0x168] sm:$0xff]  ;;  %v340_v46 = vld [vmem:[%s1128_s3 + $0x158] sm:$0xff]  ;;  %v337_v49 = vld [vmem:[%s1128_s3 + $0x140] sm:$0xff]  ;;  %s685_s11 = scalar_lea.vmem %s684_s10, 4096  ;;  %p686_p0 = scmp.lt.s32.totalorder %s1077_s26, %s684_s10 }
  0x1b   : > { %v382_v47 = vpack.c.bf16 %v342_v45, %v338_v44  ;;  %v344_v48 = vld [vmem:[%s1128_s3 + $0x178] sm:$0xff]  ;;  %v341_v50 = vld [vmem:[%s1128_s3 + $0x160] sm:$0xff]  ;;  %v339_v53 = vld [vmem:[%s1128_s3 + $0x150] sm:$0xff]  ;;  %447 = vmatprep.mubr.bf16.mxu0 %v741_v11  ;;  %500 = vmatprep.mubr.bf16.mxu1 %v741_v11  ;;  %p687_p1 = scmp.lt.s32.totalorder %s685_s11, %s679_s8 }
  0x1c   : > { %232 = vadd.xlane.f32.xlu0 %v225_v2  ;;  %236 = vadd.xlane.f32.xlu1 %v227_v3  ;;  %v384_v51 = vpack.c.bf16 %v344_v48, %v340_v46  ;;  %v381_v52 = vpack.c.bf16 %v341_v50, %v337_v49  ;;  %v343_v54 = vld [vmem:[%s1128_s3 + $0x170] sm:$0xff]  ;;  %v330_v56 = vld [vmem:[%s1128_s3 + $0x108] sm:$0xff]  ;;  %v332_v58 = vld [vmem:[%s1128_s3 + $0x118] sm:$0xff] }
  0x1d   : > { %418 = vmatpush1.bf16.msra.mxu0 %v385_v40  ;;  %471 = vmatpush1.bf16.msra.mxu1 %v387_v43  ;;  %v383_v55 = vpack.c.bf16 %v343_v54, %v339_v53  ;;  %v334_v57 = vld [vmem:[%s1128_s3 + $0x128] sm:$0xff]  ;;  %v336_v60 = vld [vmem:[%s1128_s3 + $0x138] sm:$0xff]  ;;  %v329_v61 = vld [vmem:[%s1128_s3 + $0x100] sm:$0xff]  ;;  %p688_p2 = por %p687_p1, %p686_p0 }
  0x1e   : > { %419 = vmatprep.subr.bf16.mxu0 %v382_v47  ;;  %472 = vmatprep.subr.bf16.mxu1 %v384_v51  ;;  %v378_v59 = vpack.c.bf16 %v334_v57, %v330_v56  ;;  %v333_v62 = vld [vmem:[%s1128_s3 + $0x120] sm:$0xff]  ;;  %v380_v63 = vpack.c.bf16 %v336_v60, %v332_v58  ;;  %v322_v4 = vld [vmem:[%s1128_s3 + $0xc8] sm:$0xff]  ;;  %v324_v6 = vld [vmem:[%s1128_s3 + $0xd8] sm:$0xff] }
  0x1f   : > { %v326_v5 = vld [vmem:[%s1128_s3 + $0xe8] sm:$0xff]  ;;  %v328_v8 = vld [vmem:[%s1128_s3 + $0xf8] sm:$0xff]  ;;  %v321_v9 = vld [vmem:[%s1128_s3 + $0xc0] sm:$0xff]  ;;  %p689_p3 = pnand %p688_p2, %p682_p13 }
  0x20   : > { %v374_v7 = vpack.c.bf16 %v326_v5, %v322_v4  ;;  %v325_v10 = vld [vmem:[%s1128_s3 + $0xe0] sm:$0xff]  ;;  %v376_v12 = vpack.c.bf16 %v328_v8, %v324_v6  ;;  %v323_v14 = vld [vmem:[%s1128_s3 + $0xd0] sm:$0xff]  ;;  %v306_v32 = vld [vmem:[%s1128_s3 + $0x48] sm:$0xff] }
  0x21   : > { %420 = vmatpush1.bf16.msra.mxu0 %v381_v52  ;;  %473 = vmatpush1.bf16.msra.mxu1 %v383_v55  ;;  %v373_v13 = vpack.c.bf16 %v325_v10, %v321_v9  ;;  %v327_v15 = vld [vmem:[%s1128_s3 + $0xf0] sm:$0xff]  ;;  %v310_v33 = vld [vmem:[%s1128_s3 + $0x68] sm:$0xff]  ;;  %v308_v36 = vld [vmem:[%s1128_s3 + $0x58] sm:$0xff] }
  0x22   : > { %421 = vmatprep.subr.bf16.mxu0 %v378_v59  ;;  %474 = vmatprep.subr.bf16.mxu1 %v380_v63  ;;  %v366_v35 = vpack.c.bf16 %v310_v33, %v306_v32  ;;  %v312_v37 = vld [vmem:[%s1128_s3 + $0x78] sm:$0xff]  ;;  %v305_v38 = vld [vmem:[%s1128_s3 + $0x40] sm:$0xff]  ;;  %v307_v41 = vld [vmem:[%s1128_s3 + $0x50] sm:$0xff] }
  0x23   : > { %v368_v39 = vpack.c.bf16 %v312_v37, %v308_v36  ;;  %v309_v40 = vld [vmem:[%s1128_s3 + $0x60] sm:$0xff]  ;;  %v311_v42 = vld [vmem:[%s1128_s3 + $0x70] sm:$0xff]  ;;  %v298_v44 = vld [vmem:[%s1128_s3 + $0x8] sm:$0xff] }
  0x24   : > { %v365_v43 = vpack.c.bf16 %v309_v40, %v305_v38  ;;  %v302_v45 = vld [vmem:[%s1128_s3 + $0x28] sm:$0xff]  ;;  %v300_v46 = vld [vmem:[%s1128_s3 + $0x18] sm:$0xff]  ;;  %v367_v47 = vpack.c.bf16 %v311_v42, %v307_v41  ;;  %v297_v50 = vld [vmem:[%s1128_s3] sm:$0xff] }
  0x25   : > { %v362_v48 = vpack.c.bf16 %v302_v45, %v298_v44  ;;  %v304_v49 = vld [vmem:[%s1128_s3 + $0x38] sm:$0xff]  ;;  %v301_v51 = vld [vmem:[%s1128_s3 + $0x20] sm:$0xff]  ;;  %v299_v53 = vld [vmem:[%s1128_s3 + $0x10] sm:$0xff] }
  0x26   : > { %v364_v52 = vpack.c.bf16 %v304_v49, %v300_v46  ;;  %v303_v54 = vld [vmem:[%s1128_s3 + $0x30] sm:$0xff]  ;;  %v361_v55 = vpack.c.bf16 %v301_v51, %v297_v50 }
  0x27   : > { %v363_v56 = vpack.c.bf16 %v303_v54, %v299_v53 }
  0xa1   : > { %v231_v16 = vpop.xlane.xlu0 %230  ;;  %v235_v17 = vpop.xlane.xlu1 %234 }
  0xa2   : > { %v239_v18 = vmul.f32 0.0078125, %v231_v16  ;;  %v241_v19 = vmul.f32 0.0078125, %v235_v17  ;;  %v314_v16 = vld [vmem:[%s1128_s3 + $0x88] sm:$0xff]  ;;  %v375_v17 = vpack.c.bf16 %v327_v15, %v323_v14 }
  0xa4   : > { %v852_v20 = vsub.f32 %v224_v0, %v239_v18  ;;  %v854_v21 = vsub.f32 %v226_v1, %v241_v19  ;;  %v377_v0 = vpack.c.bf16 %v333_v62, %v329_v61  ;;  %v331_v1 = vld [vmem:[%s1128_s3 + $0x110] sm:$0xff]  ;;  %v318_v18 = vld [vmem:[%s1128_s3 + $0xa8] sm:$0xff]  ;;  %v316_v19 = vld [vmem:[%s1128_s3 + $0x98] sm:$0xff] }
  0xa5   : > { %v233_v22 = vpop.xlane.xlu0 %232  ;;  %v237_v23 = vpop.xlane.xlu1 %236 }
  0xa6   : > { %v240_v24 = vmul.f32 0.0078125, %v233_v22  ;;  %v247_v25 = vmul.f32 %v852_v20, %v852_v20  ;;  %v242_v26 = vmul.f32 0.0078125, %v237_v23  ;;  %v249_v29 = vmul.f32 %v854_v21, %v854_v21  ;;  %422 = vmatpush1.bf16.msra.mxu0 %v377_v0  ;;  %v320_v22 = vld [vmem:[%s1128_s3 + $0xb8] sm:$0xff] }
  0xa7   : > { %423 = vmatprep.subr.bf16.mxu0 %v374_v7  ;;  %v370_v23 = vpack.c.bf16 %v318_v18, %v314_v16  ;;  %v620_v7 = vld [vmem:[%s1126_s1] ss:$0 sm:$0xff] }
  0xa8   : > { %v858_v27 = vsub.f32 %v225_v2, %v240_v24  ;;  %251 = vadd.xlane.f32.xlu0 %v247_v25  ;;  %v860_v28 = vsub.f32 %v227_v3, %v242_v26  ;;  %v335_v2 = vld [vmem:[%s1128_s3 + $0x130] sm:$0xff]  ;;  %v372_v24 = vpack.c.bf16 %v320_v22, %v316_v19  ;;  %v313_v25 = vld [vmem:[%s1128_s3 + $0x80] sm:$0xff] }
  0xa9   : > { %v379_v3 = vpack.c.bf16 %v335_v2, %v331_v1  ;;  %v317_v26 = vld [vmem:[%s1128_s3 + $0xa0] sm:$0xff] }
  0xaa   : > { %v248_v30 = vmul.f32 %v858_v27, %v858_v27  ;;  %v250_v31 = vmul.f32 %v860_v28, %v860_v28  ;;  %424 = vmatpush1.bf16.msra.mxu0 %v373_v13  ;;  %v621_v13 = vld [vmem:[%s1127_s2] ss:$0 sm:$0xff] }
  0xab   : > { %475 = vmatpush1.bf16.msra.mxu1 %v379_v3  ;;  %425 = vmatprep.subr.bf16.mxu0 %v370_v23 }
  0xac   : > { %255 = vadd.xlane.f32.xlu0 %v249_v29  ;;  %253 = vadd.xlane.f32.xlu1 %v248_v30  ;;  %v315_v29 = vld [vmem:[%s1128_s3 + $0x90] sm:$0xff]  ;;  %v369_v30 = vpack.c.bf16 %v317_v26, %v313_v25  ;;  %v395_v26 = vlaneseq }
  0xad   : > { %476 = vmatprep.subr.bf16.mxu1 %v376_v12 }
  0xae   : > { %426 = vmatpush1.bf16.msra.mxu0 %v369_v30  ;;  %v393_v30 = vld [vmem:[%s1129_s4] sm:$0xf] }
  0xaf   : > { %477 = vmatpush1.bf16.msra.mxu1 %v375_v17  ;;  %427 = vmatprep.subr.bf16.mxu0 %v366_v35 }
  0xb0   : > { %257 = vadd.xlane.f32.xlu1 %v250_v31  ;;  %v319_v31 = vld [vmem:[%s1128_s3 + $0xb0] sm:$0xff]  ;;  %478 = vmatprep.subr.bf16.mxu1 %v372_v24 }
  0xb1   : > { %v371_v34 = vpack.c.bf16 %v319_v31, %v315_v29 }
  0xb2   : > { %428 = vmatpush1.bf16.msra.mxu0 %v365_v43 }
  0xb3   : > { %479 = vmatpush1.bf16.msra.mxu1 %v371_v34  ;;  %429 = vmatprep.subr.bf16.mxu0 %v362_v48 }
  0xb4   : > { %480 = vmatprep.subr.bf16.mxu1 %v368_v39 }
  0xb6   : > { %430 = vmatpush1.bf16.msra.mxu0 %v361_v55 }
  0xb7   : > { %481 = vmatpush1.bf16.msra.mxu1 %v367_v47 }
  0xb8   : > { %482 = vmatprep.subr.bf16.mxu1 %v364_v52 }
  0xbb   : > { %483 = vmatpush1.bf16.msra.mxu1 %v363_v56 }
 0x131   : > { %v252_v57 = vpop.xlane.xlu0 %251 }
 0x132   : > { %v259_v58 = vmul.f32 0.0078125, %v252_v57 }
 0x134   : > { %v263_v59 = vadd.f32 1e-05, %v259_v58 }
 0x135   : > { %v254_v60 = vpop.xlane.xlu1 %253  ;;  %v256_v61 = vpop.xlane.xlu0 %255 }
 0x136   : > { %671 = vrsqrt.f32 %v263_v59  ;;  %v260_v62 = vmul.f32 0.0078125, %v254_v60  ;;  %v261_v63 = vmul.f32 0.0078125, %v256_v61 }
 0x138   : > { %v264_v0 = vadd.f32 1e-05, %v260_v62  ;;  %v265_v1 = vadd.f32 1e-05, %v261_v63 }
 0x139   : > { %v258_v2 = vpop.xlane.xlu1 %257 }
 0x13a   : > { %673 = vrsqrt.f32 %v264_v0  ;;  %v262_v3 = vmul.f32 0.0078125, %v258_v2 }
 0x13b   : > { %675 = vrsqrt.f32 %v265_v1 }
 0x13c   : > { %v266_v4 = vadd.f32 1e-05, %v262_v3 }
 0x13e   : > { %677 = vrsqrt.f32 %v266_v4 }
 0x143   : > { %v672_v5 = vpop.eup %671 }
 0x144   : > { %v271_v6 = vmul.f32 %v672_v5, %v852_v20 }
 0x146   : > { %v281_v10 = vmul.f32 %v620_v7, %v271_v6 }
 0x147   : > { %v674_v8 = vpop.eup %673 }
 0x148   : > { %v272_v9 = vmul.f32 %v674_v8, %v858_v27  ;;  %v676_v12 = vpop.eup %675  ;;  %v291_v16 = vadd.f32 %v621_v13, %v281_v10 }
 0x149   : > { %v273_v18 = vmul.f32 %v676_v12, %v854_v21  ;;  %v396_v21 = vshrl.u32 %v395_v26, 7 }
 0x14a   : > { %v282_v14 = vmul.f32 %v620_v7, %v272_v9 }
 0x14b   : > { %v678_v15 = vpop.eup %677  ;;  %v283_v27 = vmul.f32 %v620_v7, %v273_v18  ;;  %v397_v29 = vsub.s32 0, %v396_v21  ;;  %v401_v31 = vsub.s32 1, %v396_v21  ;;  %v409_v32 = vsub.s32 3, %v396_v21 }
 0x14c   : > { %v292_v17 = vadd.f32 %v621_v13, %v282_v14  ;;  %v274_v20 = vmul.f32 %v678_v15, %v860_v28  ;;  %v405_v28 = vsub.s32 2, %v396_v21 }
 0x14d   : > { %v293_v24 = vadd.f32 %v621_v13, %v283_v27  ;;  %v398_v33 = vrot.slane %v393_v30, %v397_v29  ;;  %v402_v34 = vrot.slane %v393_v30, %v401_v31  ;;  %v410_v35 = vrot.slane %v393_v30, %v409_v32 }
 0x14e   : > { %v295_v19 = vpack.c.bf16 %v292_v17, %v291_v16  ;;  %v284_v22 = vmul.f32 %v620_v7, %v274_v20 }
 0x150   : > { %448 = vmatmul.mubr.bf16.vlgmr.msra.gmra.mxu0 %v295_v19  ;;  %501 = vmatmul.mubr.bf16.vlgmr.msra.gmra.mxu1 %v295_v19  ;;  %v294_v23 = vadd.f32 %v621_v13, %v284_v22 }
 0x151   : > { %457 = vmatprep.mubr.bf16.mxu0 %v741_v11  ;;  %510 = vmatprep.mubr.bf16.mxu1 %v741_v11  ;;  %v406_v11 = vrot.slane %v393_v30, %v405_v28 }
 0x152   : > { %v296_v25 = vpack.c.bf16 %v294_v23, %v293_v24 }
 0x158   : > { %458 = vmatmul.mubr.bf16.gmra.mxu0 %v296_v25  ;;  %511 = vmatmul.mubr.bf16.gmra.mxu1 %v296_v25 }
 0x210   : > { %v449_v36 = vpop.f32.mrf.mxu0  ;;  %v502_v37 = vpop.f32.mrf.mxu1 }
 0x211   : > { %v450_v38 = vadd.f32 %v449_v36, %v398_v33  ;;  %v503_v39 = vadd.f32 %v502_v37, %v406_v11 }
 0x212   : > { %v451_v40 = vpop.f32.mrf.mxu0  ;;  %v504_v41 = vpop.f32.mrf.mxu1 }
 0x213   : > { %521 = vst [vmem:[%s1056_s23] sm:$0xff] %v450_v38  ;;  %523 = vst [vmem:[%s1056_s23 + $0x10] sm:$0xff] %v503_v39  ;;  %v452_v42 = vadd.f32 %v451_v40, %v402_v34  ;;  %v505_v43 = vadd.f32 %v504_v41, %v410_v35 }
 0x214   : > { %v453_v44 = vpop.f32.mrf.mxu0  ;;  %v506_v45 = vpop.f32.mrf.mxu1 }
 0x215   : > { %522 = vst [vmem:[%s1056_s23 + $0x8] sm:$0xff] %v452_v42  ;;  %524 = vst [vmem:[%s1056_s23 + $0x18] sm:$0xff] %v505_v43  ;;  %v454_v46 = vadd.f32 %v453_v44, %v398_v33  ;;  %v507_v47 = vadd.f32 %v506_v45, %v406_v11 }
 0x216   : > { %v455_v48 = vpop.f32.mrf.mxu0  ;;  %v508_v49 = vpop.f32.mrf.mxu1 }
 0x217   : > { %525 = vst [vmem:[%s1056_s23 + $0x20] sm:$0xff] %v454_v46  ;;  %527 = vst [vmem:[%s1056_s23 + $0x30] sm:$0xff] %v507_v47  ;;  %v456_v50 = vadd.f32 %v455_v48, %v402_v34  ;;  %v509_v51 = vadd.f32 %v508_v49, %v410_v35 }
 0x218   : > { %v459_v52 = vpop.f32.mrf.mxu0  ;;  %v512_v53 = vpop.f32.mrf.mxu1 }
 0x219   : > { %526 = vst [vmem:[%s1056_s23 + $0x28] sm:$0xff] %v456_v50  ;;  %528 = vst [vmem:[%s1056_s23 + $0x38] sm:$0xff] %v509_v51  ;;  %v460_v54 = vadd.f32 %v459_v52, %v398_v33  ;;  %v513_v55 = vadd.f32 %v512_v53, %v406_v11 }
 0x21a   : > { %v461_v56 = vpop.f32.mrf.mxu0  ;;  %v514_v57 = vpop.f32.mrf.mxu1 }
 0x21b   : > { %529 = vst [vmem:[%s1056_s23 + $0x40] sm:$0xff] %v460_v54  ;;  %531 = vst [vmem:[%s1056_s23 + $0x50] sm:$0xff] %v513_v55  ;;  %v462_v58 = vadd.f32 %v461_v56, %v402_v34  ;;  %v515_v59 = vadd.f32 %v514_v57, %v410_v35 }
 0x21c   : > { %v463_v60 = vpop.f32.mrf.mxu0  ;;  %v516_v61 = vpop.f32.mrf.mxu1 }
 0x21d   : > { %530 = vst [vmem:[%s1056_s23 + $0x48] sm:$0xff] %v462_v58  ;;  %532 = vst [vmem:[%s1056_s23 + $0x58] sm:$0xff] %v515_v59  ;;  %v464_v62 = vadd.f32 %v463_v60, %v398_v33  ;;  %v517_v63 = vadd.f32 %v516_v61, %v406_v11 }
 0x21e   : > { %v465_v0 = vpop.f32.mrf.mxu0  ;;  %v518_v1 = vpop.f32.mrf.mxu1 }
 0x21f   : > { %533 = vst [vmem:[%s1056_s23 + $0x60] sm:$0xff] %v464_v62  ;;  %535 = vst [vmem:[%s1056_s23 + $0x70] sm:$0xff] %v517_v63  ;;  %v466_v2 = vadd.f32 %v465_v0, %v402_v34  ;;  %v519_v3 = vadd.f32 %v518_v1, %v410_v35 }
 0x221   : > { %534 = vst [vmem:[%s1056_s23 + $0x68] sm:$0xff] %v466_v2  ;;  %536 = vst [vmem:[%s1056_s23 + $0x78] sm:$0xff] %v519_v3 }
 0x222   : > { %692 = shalt.err (!%p689_p3)
}
 0x223   : > { %s693_s12 = scalar_lea.hbm %s1075_s7, 2048  ;;  %s697_s15 = scalar_lea.hbm %s1130_s5, 4096 }
 0x224   : > { %p694_p4 = scmp.ne.s32.totalorder %s1075_s7, %s693_s12  ;;  %p698_p9 = scmp.lt.s32.totalorder %s1075_s7, %s1130_s5 }
 0x225   : > { %p699_p10 = scmp.lt.s32.totalorder %s697_s15, %s693_s12 }
 0x226   : > { %p695_p7 = pnand %p694_p4, %p813_p5 }
 0x227   : > { %p700_p11 = por %p699_p10, %p698_p9 }
 0x228   : > { %p696_p8 = pneg %p695_p7 }
 0x22a   : > { %p701_p12 = pnand %p700_p11, %p696_p8 }
 0x22c   : > { %704 = shalt.err (!%p701_p12)
}
 0x22d   : > { %s743_s23 = smov 512   ;;  %s744_s25 = smov 32  }
 0x22e   : > { %629 = dma.vmem_to_hbm [thread:$0]  (%p813_p5), %s1077_s26, 2048, %s1075_s7, %s1085_s22, %s743_s23, %s743_s23, %s744_s25  }
 0x22f PF: > { %p635_p13 = scmp.ge.s32.totalorder %s739_s21, 2  ;;  %s566_s30 = sand.u32 1, %s727_s18  }
 0x230   : > { %s567_s6 = scalar_lea.sflag [#allocation3], %s566_s30 }
 0x231   : > { %p632_p0 = pnand %p635_p13, %p817_p6 }
 0x233   : > { %p633_p1 = pneg %p632_p0 }
 0x235   : > { %722 = dma.done.wait (%p633_p1), %s567_s6, 2048  }
 0x236   : > { %724 = vsyncadd (%p633_p1), %s567_s6, 4294965248  ;;  %p15_p2 = scmp.ge.s32.totalorder %s800_s24, 4   ;;  %s1133_s18 = smov %s731_s19 }
 0x237   : > { %s1134_s19 = smov %s735_s20  ;;  %s1135_s20 = smov %s811_s27 }
 0x238   : > { %s1136_s21 = smov %s800_s24  ;;  %17 = sbr.rel (!%p15_p2) target bundleno = 3 (0x3), region = 75 }
 0x23d   :  { %572 = vsyncpa [#allocation3], 1 }
 0x23e   :  { %574 = vsyncpa [#allocation3 + $0x1], 1 }

// kernel: gpt_forward.3
= control target key start
LH: loop header
LB: loop body
LE: loop exit
PB: predicated region body
PF: predicated region fallthrough
CT: control target
= control target key end

     0   :  { %17 = vsyncpa [#allocation3], 0  ;;  %s3485_s0 = inlined_call_operand.vmem [shape: f32[2,32,128], index: 0, kind: input, shape index: {}]   ;;  %s3486_s1 = inlined_call_operand.vmem [shape: f32[1,128], index: 1, kind: input, shape index: {}]   ;;  %s3487_s2 = inlined_call_operand.vmem [shape: f32[1,128], index: 2, kind: input, shape index: {}]   ;;  %s3488_s3 = inlined_call_operand.hbm [shape: f32[128,384], index: 3, kind: input, shape index: {}]   ;;  %s3489_s4 = inlined_call_operand.vmem [shape: f32[128,128], index: 4, kind: input, shape index: {}]   ;;  %s3490_s5 = inlined_call_operand.vmem [shape: f32[1,128], index: 5, kind: input, shape index: {}]   ;;  %s3491_s6 = inlined_call_operand.vmem [shape: f32[1,128], index: 6, kind: input, shape index: {}]   ;;  %s3492_s7 = inlined_call_operand.vmem [shape: f32[1,128], index: 7, kind: input, shape index: {}]   ;;  %s3493_s8 = inlined_call_operand.vmem [shape: f32[128,512], index: 8, kind: input, shape index: {}]   ;;  %s3494_s9 = inlined_call_operand.vmem [shape: f32[1,512], index: 9, kind: input, shape index: {}]   ;;  %s3495_s10 = inlined_call_operand.hbm [shape: f32[512,128], index: 10, kind: input, shape index: {}]   ;;  %s3496_s11 = inlined_call_operand.vmem [shape: f32[1,128], index: 11, kind: input, shape index: {}]   ;;  %s3497_s12 = inlined_call_operand.vmem [shape: f32[2,32,128], index: 12, kind: output, shape index: {}]  }
   0x1   :  { %18 = vsyncpa [#allocation5], 0  ;;  %s2864_s21 = smov 0  }
   0x2 LB: > { %s2789_s22 = smov [#allocation2]   ;;  %s2870_s24 = sadd.s32 4294967295, %s2787_s21   ;;  %s2787_s21 = sphi %s2864_s21, %s24_s21  }
   0x3   : > { %s330_s23 = sshll.u32 %s2789_s22, 4  ;;  %p2317_p0 = scmp.ge.s32.totalorder %s2787_s21, 1  ;;  %s331_s23 = int_to_ptr.vmem [resolvable:$true] %s330_s23 }
   0x4   : > { %p312_p1 = scmp.lt.s32.totalorder %s2787_s21, 3  ;;  %p2615_p3 = scmp.eq.s32.totalorder %s2870_s24, 0 }
   0x5   : > { %s2790_s26 = smov [#allocation4]   ;;  %s2732_s29 = scalar_lea.vmem %s331_s23, 6144 }
   0x6   : > { %p2874_p2 = pnand %p2317_p0, %p312_p1  ;;  %s361_s27 = sshll.u32 %s2790_s26, 4  ;;  %s362_s27 = int_to_ptr.vmem [resolvable:$true] %s361_s27 }
   0x7   : > { %p2733_p7 = scmp.ne.s32.totalorder %s331_s23, %s2732_s29  ;;  %p2740_p10 = scmp.lt.s32.totalorder %s331_s23, %s331_s23 }
   0x8   : > { %p2608_p4 = pneg %p2874_p2  ;;  %p2741_p11 = scmp.lt.s32.totalorder %s2732_s29, %s2732_s29 }
   0xa   : > { %p2883_p5 = pnand %p2615_p3, %p2608_p4  ;;  %p2742_p12 = por %p2741_p11, %p2740_p10 }
   0xc   : > { %p2723_p6 = pneg %p2883_p5 }
   0xe   : > { %p2735_p8 = pnand %p2733_p7, %p2723_p6 }
  0x10   : > { %p2736_p9 = pneg %p2735_p8 }
  0x12   : > { %p2743_p13 = pnand %p2742_p12, %p2736_p9 }
  0x14   : > { %2746 = shalt.err (!%p2743_p13)
}
  0x15   : > { %s2791_s30 = smov 384   ;;  %s2792_s13 = smov 24  }
  0x16   : > { %2611 = dma.hbm_to_vmem [thread:$0]  (!%p2883_p5), %s3488_s3, 6144, %s331_s23, [#allocation3], %s2791_s30, %s2791_s30, %s2792_s13  }
  0x17   : > { %s2758_s16 = scalar_lea.vmem %s362_s27, 8192  ;;  %p2766_p7 = scmp.lt.s32.totalorder %s362_s27, %s362_s27 }
  0x18   : > { %p2759_p0 = scmp.ne.s32.totalorder %s362_s27, %s2758_s16  ;;  %p2767_p8 = scmp.lt.s32.totalorder %s2758_s16, %s2758_s16 }
  0x1a   : > { %p2761_p1 = pnand %p2759_p0, %p2723_p6  ;;  %p2768_p10 = por %p2767_p8, %p2766_p7 }
  0x1c   : > { %p2762_p4 = pneg %p2761_p1 }
  0x1e   : > { %p2769_p9 = pnand %p2768_p10, %p2762_p4 }
  0x20   : > { %2772 = shalt.err (!%p2769_p9)
}
  0x21   : > { %s2793_s17 = smov 128   ;;  %s2794_s18 = smov 8  }
  0x22   : > { %2614 = dma.hbm_to_vmem [thread:$0]  (!%p2883_p5), %s3495_s10, 8192, %s362_s27, [#allocation5], %s2793_s17, %s2793_s17, %s2794_s18  }
  0x23   : > { %388 = sbr.rel (%p2874_p2) target bundleno = 3747 (0xea3), region = 68 }
  0x28   : > { %2778 = dma.done.wait (%p2615_p3), [#allocation3], 6144  }
  0x29   : > { %2780 = vsyncadd (%p2615_p3), [#allocation3], 4294961152 }
  0x2a   : > { %2782 = dma.done.wait (%p2615_p3), [#allocation5], 8192  }
  0x2b   : > { %2784 = vsyncadd (%p2615_p3), [#allocation5], 4294959104  ;;  %p434_p6 = scmp.lt.s32.totalorder %s2870_s24, 1  ;;  %v561_v4 = vld [vmem:[#allocation2 + $0x158] sm:$0xff]  ;;  %v564_v5 = vld [vmem:[#allocation2 + $0x170] sm:$0xff]  ;;  %v2795_v60 = vmov 0  }
  0x2c   : > { %v560_v6 = vld [vmem:[#allocation2 + $0x150] sm:$0xff]  ;;  %v588_v7 = vpack.c.bf16 %v564_v5, %v561_v4  ;;  %v563_v8 = vld [vmem:[#allocation2 + $0x168] sm:$0xff]  ;;  %v558_v27 = vld [vmem:[#allocation2 + $0x140] sm:$0xff]  ;;  %622 = vmatprep.mubr.bf16.mxu0 %v2795_v60  ;;  %vm731_vm0 = vcmask 261120   ;;  %s2796_s13 = smov 96   ;;  %s2797_s25 = smov 64  }
  0x2d   : > { %s3501_s24 = smov (!%p434_p6, %s2870_s24), 1  ;;  %v587_v9 = vpack.c.bf16 %v563_v8, %v560_v6  ;;  %v555_v26 = vld [vmem:[#allocation2 + $0x128] sm:$0xff]  ;;  %v562_v28 = vld [vmem:[#allocation2 + $0x160] sm:$0xff]  ;;  %v565_v30 = vld [vmem:[#allocation2 + $0x178] sm:$0xff]  ;;  %s2798_s27 = smov 32  }
  0x2e   : > { %s2360_s22 = sshll.u32 %s3501_s24, 5  ;;  %590 = vmatprep.subr.bf16.mxu0 %v588_v7  ;;  %v585_v29 = vpack.c.bf16 %v558_v27, %v555_v26  ;;  %v554_v31 = vld [vmem:[#allocation2 + $0x120] sm:$0xff]  ;;  %v557_v32 = vld [vmem:[#allocation2 + $0x138] sm:$0xff]  ;;  %v589_v33 = vpack.c.bf16 %v565_v30, %v562_v28  ;;  %v552_v36 = vld [vmem:[#allocation2 + $0x110] sm:$0xff] }
  0x2f   : > { %s2925_s26 = scalar_lea.vmem %s3485_s0, %s2360_s22  ;;  %591 = vmatpush1.bf16.msra.mxu0 %v587_v9  ;;  %v584_v34 = vpack.c.bf16 %v557_v32, %v554_v31  ;;  %v549_v35 = vld [vmem:[#allocation2 + $0xf8] sm:$0xff]  ;;  %v556_v37 = vld [vmem:[#allocation2 + $0x130] sm:$0xff]  ;;  %v559_v39 = vld [vmem:[#allocation2 + $0x148] sm:$0xff]  ;;  %s443_s30 = scalar_lea.vmem %s3497_s12, %s2360_s22 }
  0x30   : > { %v445_v0 = vld [vmem:[%s2925_s26] sm:$0xff]  ;;  %v447_v1 = vld [vmem:[%s2925_s26 + $0x10] sm:$0xff]  ;;  %v446_v2 = vld [vmem:[%s2925_s26 + $0x8] sm:$0xff]  ;;  %592 = vmatprep.subr.bf16.mxu0 %v585_v29  ;;  %2476 = vmatprep.subr.bf16.mxu1 %v589_v33  ;;  %v582_v38 = vpack.c.bf16 %v552_v36, %v549_v35  ;;  %v586_v42 = vpack.c.bf16 %v559_v39, %v556_v37 }
  0x31   : > { %451 = vadd.xlane.f32.xlu0 %v445_v0  ;;  %455 = vadd.xlane.f32.xlu1 %v447_v1  ;;  %v448_v3 = vld [vmem:[%s2925_s26 + $0x18] sm:$0xff]  ;;  %v548_v40 = vld [vmem:[#allocation2 + $0xf0] sm:$0xff]  ;;  %v551_v41 = vld [vmem:[#allocation2 + $0x108] sm:$0xff] }
  0x32   : > { %2477 = vmatpush3.bf16.msra.mxu1 %v589_v33  ;;  %v581_v43 = vpack.c.bf16 %v551_v41, %v548_v40  ;;  %v543_v44 = vld [vmem:[#allocation2 + $0xc8] sm:$0xff]  ;;  %v546_v45 = vld [vmem:[#allocation2 + $0xe0] sm:$0xff]  ;;  %v553_v48 = vld [vmem:[#allocation2 + $0x118] sm:$0xff] }
  0x33   : > { %593 = vmatpush1.bf16.msra.mxu0 %v584_v34  ;;  %2478 = vmatprep.subr.bf16.mxu1 %v586_v42  ;;  %v550_v46 = vld [vmem:[#allocation2 + $0x100] sm:$0xff]  ;;  %v579_v47 = vpack.c.bf16 %v546_v45, %v543_v44  ;;  %v545_v50 = vld [vmem:[#allocation2 + $0xd8] sm:$0xff]  ;;  %v540_v54 = vld [vmem:[#allocation2 + $0xb0] sm:$0xff] }
  0x34   : > { %594 = vmatprep.subr.bf16.mxu0 %v582_v38  ;;  %v542_v49 = vld [vmem:[#allocation2 + $0xc0] sm:$0xff]  ;;  %v583_v51 = vpack.c.bf16 %v553_v48, %v550_v46  ;;  %v537_v53 = vld [vmem:[#allocation2 + $0x98] sm:$0xff]  ;;  %v544_v55 = vld [vmem:[#allocation2 + $0xd0] sm:$0xff] }
  0x35   : > { %453 = vadd.xlane.f32.xlu0 %v446_v2  ;;  %457 = vadd.xlane.f32.xlu1 %v448_v3  ;;  %v578_v52 = vpack.c.bf16 %v545_v50, %v542_v49  ;;  %v576_v56 = vpack.c.bf16 %v540_v54, %v537_v53  ;;  %v547_v57 = vld [vmem:[#allocation2 + $0xe8] sm:$0xff]  ;;  %v536_v58 = vld [vmem:[#allocation2 + $0x90] sm:$0xff]  ;;  %v530_v4 = vld [vmem:[#allocation2 + $0x60] sm:$0xff] }
  0x36   : > { %2479 = vmatpush3.bf16.msra.mxu1 %v586_v42  ;;  %v539_v59 = vld [vmem:[#allocation2 + $0xa8] sm:$0xff]  ;;  %v580_v61 = vpack.c.bf16 %v547_v57, %v544_v55  ;;  %v533_v5 = vld [vmem:[#allocation2 + $0x78] sm:$0xff]  ;;  %v528_v9 = vld [vmem:[#allocation2 + $0x50] sm:$0xff] }
  0x37   : > { %595 = vmatpush1.bf16.msra.mxu0 %v581_v43  ;;  %2480 = vmatprep.subr.bf16.mxu1 %v583_v51  ;;  %v575_v62 = vpack.c.bf16 %v539_v59, %v536_v58  ;;  %v531_v63 = vld [vmem:[#allocation2 + $0x68] sm:$0xff]  ;;  %v572_v7 = vpack.c.bf16 %v533_v5, %v530_v4  ;;  %v525_v8 = vld [vmem:[#allocation2 + $0x38] sm:$0xff]  ;;  %v518_v26 = vld [vmem:[#allocation2] sm:$0xff] }
  0x38   : > { %596 = vmatprep.subr.bf16.mxu0 %v579_v47  ;;  %v521_v27 = vld [vmem:[#allocation2 + $0x18] sm:$0xff]  ;;  %v520_v30 = vld [vmem:[#allocation2 + $0x10] sm:$0xff]  ;;  %v523_v31 = vld [vmem:[#allocation2 + $0x28] sm:$0xff] }
  0x39   : > { %v566_v29 = vpack.c.bf16 %v521_v27, %v518_v26  ;;  %v568_v32 = vpack.c.bf16 %v523_v31, %v520_v30  ;;  %v2328_v47 = vld [vmem:[%s3486_s1] ss:$0 sm:$0xff] }
  0x3a   : > { %2481 = vmatpush3.bf16.msra.mxu1 %v583_v51 }
  0x3b   : > { %597 = vmatpush1.bf16.msra.mxu0 %v578_v52  ;;  %2482 = vmatprep.subr.bf16.mxu1 %v580_v61  ;;  %v2329_v52 = vld [vmem:[%s3487_s2] ss:$0 sm:$0xff] }
  0x3c   : > { %598 = vmatprep.subr.bf16.mxu0 %v576_v56 }
  0x3e   : > { %2483 = vmatpush3.bf16.msra.mxu1 %v580_v61 }
  0x3f   : > { %599 = vmatpush1.bf16.msra.mxu0 %v575_v62 }
  0xba   : > { %v452_v10 = vpop.xlane.xlu0 %451  ;;  %v456_v11 = vpop.xlane.xlu1 %455 }
  0xbb   : > { %v460_v12 = vmul.f32 0.0078125, %v452_v10  ;;  %v462_v13 = vmul.f32 0.0078125, %v456_v11  ;;  %v532_v10 = vld [vmem:[#allocation2 + $0x70] sm:$0xff]  ;;  %v570_v11 = vpack.c.bf16 %v528_v9, %v525_v8 }
  0xbd   : > { %v2931_v14 = vsub.f32 %v445_v0, %v460_v12  ;;  %v2933_v15 = vsub.f32 %v447_v1, %v462_v13  ;;  %v534_v0 = vld [vmem:[#allocation2 + $0x80] sm:$0xff]  ;;  %v535_v12 = vld [vmem:[#allocation2 + $0x88] sm:$0xff]  ;;  %v524_v13 = vld [vmem:[#allocation2 + $0x30] sm:$0xff] }
  0xbe   : > { %v454_v16 = vpop.xlane.xlu0 %453  ;;  %v458_v17 = vpop.xlane.xlu1 %457  ;;  %v538_v1 = vld [vmem:[#allocation2 + $0xa0] sm:$0xff] }
  0xbf   : > { %v461_v18 = vmul.f32 0.0078125, %v454_v16  ;;  %v468_v19 = vmul.f32 %v2931_v14, %v2931_v14  ;;  %v463_v20 = vmul.f32 0.0078125, %v458_v17  ;;  %v470_v23 = vmul.f32 %v2933_v15, %v2933_v15  ;;  %v527_v16 = vld [vmem:[#allocation2 + $0x48] sm:$0xff] }
  0xc0   : > { %v574_v17 = vpack.c.bf16 %v535_v12, %v532_v10 }
  0xc1   : > { %v2937_v21 = vsub.f32 %v446_v2, %v461_v18  ;;  %472 = vadd.xlane.f32.xlu0 %v468_v19  ;;  %v2939_v22 = vsub.f32 %v448_v3, %v463_v20  ;;  %v573_v2 = vpack.c.bf16 %v534_v0, %v531_v63  ;;  %v541_v3 = vld [vmem:[#allocation2 + $0xb8] sm:$0xff]  ;;  %v519_v18 = vld [vmem:[#allocation2 + $0x8] sm:$0xff]  ;;  %v522_v19 = vld [vmem:[#allocation2 + $0x20] sm:$0xff] }
  0xc2   : > { %v577_v6 = vpack.c.bf16 %v541_v3, %v538_v1  ;;  %v526_v20 = vld [vmem:[#allocation2 + $0x40] sm:$0xff] }
  0xc3   : > { %v469_v24 = vmul.f32 %v2937_v21, %v2937_v21  ;;  %v471_v25 = vmul.f32 %v2939_v22, %v2939_v22  ;;  %600 = vmatprep.subr.bf16.mxu0 %v573_v2 }
  0xc4   : > { %2484 = vmatprep.subr.bf16.mxu1 %v577_v6  ;;  %601 = vmatpush1.bf16.msra.mxu0 %v572_v7 }
  0xc5   : > { %476 = vadd.xlane.f32.xlu0 %v470_v23  ;;  %474 = vadd.xlane.f32.xlu1 %v469_v24  ;;  %v529_v23 = vld [vmem:[#allocation2 + $0x58] sm:$0xff]  ;;  %v569_v24 = vpack.c.bf16 %v527_v16, %v524_v13 }
  0xc6   : > { %2485 = vmatpush3.bf16.msra.mxu1 %v577_v6  ;;  %602 = vmatprep.subr.bf16.mxu0 %v570_v11  ;;  %v571_v28 = vpack.c.bf16 %v529_v23, %v526_v20  ;;  %v692_v20 = vlaneseq }
  0xc7   : > { %2486 = vmatprep.subr.bf16.mxu1 %v574_v17 }
  0xc8   : > { %603 = vmatpush1.bf16.msra.mxu0 %v569_v24  ;;  %v2987_v23 = vshrl.u32 %v692_v20, 7 }
  0xc9   : > { %478 = vadd.xlane.f32.xlu1 %v471_v25  ;;  %v567_v25 = vpack.c.bf16 %v522_v19, %v519_v18 }
  0xca   : > { %2487 = vmatpush3.bf16.msra.mxu1 %v574_v17  ;;  %v2992_v26 = vadd.s32 16, %v2987_v23 }
  0xcb   : > { %604 = vmatprep.subr.bf16.mxu0 %v567_v25  ;;  %2488 = vmatprep.subr.bf16.mxu1 %v571_v28  ;;  %v2989_v25 = vand.u32 127, %v692_v20 }
  0xcc   : > { %605 = vmatpush1.bf16.msra.mxu0 %v566_v29 }
  0xcd   : > { %vm699_vm1 = vcmp.le.s32.totalorder %v2989_v25, %v2987_v23  ;;  %vm701_vm2 = vcmp.le.s32.totalorder %v2989_v25, %v2992_v26 }
  0xce   : > { %2489 = vmatpush3.bf16.msra.mxu1 %v571_v28  ;;  %v2997_v28 = vadd.s32 8, %v2987_v23 }
  0xcf   : > { %2490 = vmatprep.subr.bf16.mxu1 %v568_v32 }
  0xd0   : > { %vm700_vm3 = vcmp.le.s32.totalorder %v2989_v25, %v2997_v28 }
  0xd2   : > { %2491 = vmatpush3.bf16.msra.mxu1 %v568_v32  ;;  %v3002_v32 = vadd.s32 24, %v2987_v23 }
  0xd4   : > { %vm702_vm4 = vcmp.le.s32.totalorder %v2989_v25, %v3002_v32 }
 0x14a   : > { %v473_v33 = vpop.xlane.xlu0 %472 }
 0x14b   : > { %v480_v34 = vmul.f32 0.0078125, %v473_v33 }
 0x14d   : > { %v484_v35 = vadd.f32 1e-05, %v480_v34 }
 0x14e   : > { %v475_v36 = vpop.xlane.xlu1 %474  ;;  %v477_v37 = vpop.xlane.xlu0 %476 }
 0x14f   : > { %2637 = vrsqrt.f32 %v484_v35  ;;  %v481_v38 = vmul.f32 0.0078125, %v475_v36  ;;  %v482_v39 = vmul.f32 0.0078125, %v477_v37 }
 0x151   : > { %v485_v40 = vadd.f32 1e-05, %v481_v38  ;;  %v486_v41 = vadd.f32 1e-05, %v482_v39 }
 0x152   : > { %v479_v42 = vpop.xlane.xlu1 %478 }
 0x153   : > { %2639 = vrsqrt.f32 %v485_v40  ;;  %v483_v43 = vmul.f32 0.0078125, %v479_v42 }
 0x154   : > { %2641 = vrsqrt.f32 %v486_v41 }
 0x155   : > { %v487_v44 = vadd.f32 1e-05, %v483_v43 }
 0x157   : > { %2643 = vrsqrt.f32 %v487_v44 }
 0x15c   : > { %v2638_v45 = vpop.eup %2637 }
 0x15d   : > { %v492_v46 = vmul.f32 %v2638_v45, %v2931_v14 }
 0x15f   : > { %v502_v51 = vmul.f32 %v2328_v47, %v492_v46 }
 0x160   : > { %v2640_v48 = vpop.eup %2639 }
 0x161   : > { %v2642_v49 = vpop.eup %2641  ;;  %v493_v50 = vmul.f32 %v2640_v48, %v2937_v21  ;;  %v512_v56 = vadd.f32 %v2329_v52, %v502_v51 }
 0x162   : > { %v494_v53 = vmul.f32 %v2642_v49, %v2933_v15 }
 0x163   : > { %v503_v54 = vmul.f32 %v2328_v47, %v493_v50 }
 0x164   : > { %v2644_v55 = vpop.eup %2643  ;;  %v504_v58 = vmul.f32 %v2328_v47, %v494_v53 }
 0x165   : > { %v513_v57 = vadd.f32 %v2329_v52, %v503_v54  ;;  %v495_v14 = vmul.f32 %v2644_v55, %v2939_v22 }
 0x166   : > { %v514_v62 = vadd.f32 %v2329_v52, %v504_v58 }
 0x167   : > { %v516_v59 = vpack.c.bf16 %v513_v57, %v512_v56  ;;  %v505_v61 = vmul.f32 %v2328_v47, %v495_v14 }
 0x169   : > { %623 = vmatmul.mubr.bf16.vlgmr.msra.gmra.mxu0 %v516_v59  ;;  %2492 = vmatprep.mubr.bf16.mxu1 %v516_v59  ;;  %v515_v21 = vadd.f32 %v2329_v52, %v505_v61 }
 0x16a   : > { %632 = vmatprep.mubr.bf16.mxu0 %v2795_v60 }
 0x16b   : > { %v517_v63 = vpack.c.bf16 %v515_v21, %v514_v62 }
 0x16d   : > { %2493 = vmatmul.mubr.bf16.vlgmr.msra.gmra.mxu1 %v517_v63 }
 0x171   : > { %633 = vmatmul.mubr.bf16.gmra.mxu0 %v517_v63 }
 0x229   : > { %v624_v0 = vpop.f32.mrf.mxu0 }
 0x22b   : > { %v626_v15 = vpop.f32.mrf.mxu0 }
 0x22d   : > { %v628_v1 = vpop.f32.mrf.mxu0  ;;  %v2494_v2 = vpop.f32.mrf.mxu1 }
 0x22e   : > { %v2959_v3 = vpack.c.bf16 %v628_v1, %v624_v0 }
 0x22f   : > { %v630_v22 = vpop.f32.mrf.mxu0  ;;  %v677_v4 = vpop.f32.mrf.mxu1 }
 0x230   : > { %2500 = vmatprep.mubr.msk.bf16.mxu0 %vm731_vm0, %v2959_v3  ;;  %v2973_v16 = vpack.c.bf16 %v630_v22, %v626_v15 }
 0x231   : > { %v634_v5 = vpop.f32.mrf.mxu0  ;;  %v2495_v6 = vpop.f32.mrf.mxu1 }
 0x232   : > { %v2963_v7 = vpack.c.bf16 %v2495_v6, %v2494_v2  ;;  %v739_v18 = vsel %vm731_vm0, %v2973_v16, 0 }
 0x233   : > { %v636_v8 = vpop.f32.mrf.mxu0  ;;  %v680_v9 = vpop.f32.mrf.mxu1 }
 0x234   : > { %v2965_v10 = vpack.c.bf16 %v680_v9, %v677_v4  ;;  %2504 = vmatprep.subr.bf16.mxu1 %v2963_v7 }
 0x235   : > { %v638_v11 = vpop.f32.mrf.mxu0  ;;  %2505 = vmatpush3.bf16.msra.mxu1 %v2963_v7 }
 0x236   : > { %2506 = vmatprep.subr.bf16.mxu1 %v2965_v10  ;;  %v2983_v19 = vpack.c.bf16 %v638_v11, %v634_v5 }
 0x237   : > { %v640_v12 = vpop.f32.mrf.mxu0 }
 0x238   : > { %v2970_v13 = vpack.c.bf16 %v640_v12, %v636_v8 }
 0x239   : > { %2507 = vmatpush3.bf16.msra.mxu1 %v2965_v10 }
 0x23a   : > { %2592 = vmatprep.subr.msk.bf16.mxu0 %vm731_vm0, %v2970_v13  ;;  %v742_v17 = vsel %vm731_vm0, %v2970_v13, 0 }
 0x23b   : > { %2497 = vmatpush3.bf16.xpose.msra.mxu0 %v742_v17 }
 0x23c   : > { %2593 = vmatprep.subr.msk.bf16.mxu0 %vm731_vm0, %v2973_v16 }
 0x243   : > { %2499 = vmatpush3.bf16.xpose.msra.mxu0 %v739_v18 }
 0x24a   : > { %2501 = vmatmul.mubr.msk.bf16.vlgmr.msra.gmra.mxu0 %vm731_vm0, %v2983_v19 }
 0x30a   : > { %v2502_v24 = vpop.f32.mrf.mxu0 }
 0x30b   : > { %v795_v29 = vmul.f32 0.17677669, %v2502_v24 }
 0x30c   : > { %v778_v27 = vpop.f32.mrf.mxu0 }
 0x30d   : > { %v793_v30 = vmul.f32 0.17677669, %v778_v27  ;;  %v799_v38 = vsel %vm701_vm2, %v795_v29, -inf }
 0x30e   : > { %v2503_v31 = vpop.f32.mrf.mxu0  ;;  %v807_v40 = vsel %vm731_vm0, %v799_v38, -inf }
 0x30f   : > { %v797_v33 = vsel %vm699_vm1, %v793_v30, -inf  ;;  %v796_v36 = vmul.f32 0.17677669, %v2503_v31  ;;  %v705_v31 = vld [vmem:[%s3489_s4 + $0x10] sm:$0xff] }
 0x310   : > { %v781_v34 = vpop.f32.mrf.mxu0  ;;  %v801_v35 = vsel %vm731_vm0, %v797_v33, -inf }
 0x311   : > { %v794_v37 = vmul.f32 0.17677669, %v781_v34  ;;  %802 = vmax.xlane.f32.xlu0 %v801_v35  ;;  %v800_v42 = vsel %vm702_vm4, %v796_v36, -inf  ;;  %v703_v35 = vld [vmem:[%s3489_s4] sm:$0xff]  ;;  %v704_v36 = vld [vmem:[%s3489_s4 + $0x8] sm:$0xff] }
 0x312   : > { %v810_v43 = vsel %vm731_vm0, %v800_v42, -inf }
 0x313   : > { %v798_v39 = vsel %vm700_vm3, %v794_v37, -inf  ;;  %v719_v37 = vpack.c.bf16 %v704_v36, %v703_v35 }
 0x314   : > { %v804_v41 = vsel %vm731_vm0, %v798_v39, -inf }
 0x315   : > { %808 = vmax.xlane.f32.xlu0 %v807_v40  ;;  %805 = vmax.xlane.f32.xlu1 %v804_v41 }
 0x319   : > { %811 = vmax.xlane.f32.xlu1 %v810_v43 }
 0x39a   : > { %v803_v44 = vpop.xlane.xlu0 %802 }
 0x39b   : > { %v813_v45 = vsub.f32 %v797_v33, %v803_v44  ;;  %v706_v33 = vld [vmem:[%s3489_s4 + $0x18] sm:$0xff] }
 0x39c   : > { %v720_v34 = vpack.c.bf16 %v706_v33, %v705_v31  ;;  %v709_v31 = vld [vmem:[%s3489_s4 + $0x30] sm:$0xff] }
 0x39d   : > { %v817_v50 = vmul.f32 1.442695, %v813_v45 }
 0x39e   : > { %v809_v46 = vpop.xlane.xlu0 %808  ;;  %v806_v47 = vpop.xlane.xlu1 %805 }
 0x39f   : > { %v815_v48 = vsub.f32 %v799_v38, %v809_v46  ;;  %v814_v49 = vsub.f32 %v798_v39, %v806_v47 }
 0x3a1   : > { %v821_v51 = vmul.f32 1.442695, %v815_v48  ;;  %v819_v52 = vmul.f32 1.442695, %v814_v49 }
 0x3a2   : > { %v812_v53 = vpop.xlane.xlu1 %811 }
 0x3a3   : > { %2645 = vpow2.f32 %v821_v51  ;;  %v816_v54 = vsub.f32 %v800_v42, %v812_v53 }
 0x3a4   : > { %2647 = vpow2.f32 %v819_v52 }
 0x3a5   : > { %2649 = vpow2.f32 %v817_v50  ;;  %v823_v55 = vmul.f32 1.442695, %v816_v54 }
 0x3a7   : > { %2651 = vpow2.f32 %v823_v55 }
 0x3b0   : > { %v2646_v56 = vpop.eup %2645 }
 0x3b1   : > { %v2648_v57 = vpop.eup %2647  ;;  %v831_v14 = vsel %vm731_vm0, %v2646_v56, 0.0 }
 0x3b2   : > { %v2650_v58 = vpop.eup %2649  ;;  %832 = vadd.xlane.f32.xlu0 %v831_v14  ;;  %v828_v59 = vsel %vm731_vm0, %v2648_v57, 0.0 }
 0x3b3   : > { %829 = vadd.xlane.f32.xlu1 %v828_v59  ;;  %v825_v62 = vsel %vm731_vm0, %v2650_v58, 0.0 }
 0x3b4   : > { %v2652_v61 = vpop.eup %2651 }
 0x3b5   : > { %v834_v21 = vsel %vm731_vm0, %v2652_v61, 0.0 }
 0x3b6   : > { %826 = vadd.xlane.f32.xlu0 %v825_v62 }
 0x3b7   : > { %835 = vadd.xlane.f32.xlu1 %v834_v21 }
 0x3c8   : > { %914 = vrot.lane.b32.xlu1 %v2973_v16, %s2796_s13 }
 0x3cc   : > { %908 = vrot.lane.b32.xlu1 %v2959_v3, %s2796_s13  ;;  %916 = vrot.lane.b32.xlu0 %v2970_v13, %s2796_s13 }
 0x3d0   : > { %910 = vrot.lane.b32.xlu1 %v2983_v19, %s2796_s13 }
 0x43b   : > { %v833_v63 = vpop.xlane.xlu0 %832 }
 0x43c   : > { %v830_v0 = vpop.xlane.xlu1 %829 }
 0x43d   : > { %2653 = vrcp.f32 %v830_v0 }
 0x43e   : > { %2655 = vrcp.f32 %v833_v63 }
 0x43f   : > { %v827_v15 = vpop.xlane.xlu0 %826 }
 0x440   : > { %2657 = vrcp.f32 %v827_v15  ;;  %v836_v1 = vpop.xlane.xlu1 %835 }
 0x441   : > { %2659 = vrcp.f32 %v836_v1 }
 0x443   : > { %v917_v2 = vpop.permute.xlu0 %916 }
 0x444   : > { %2594 = vmatprep.subr.msk.bf16.mxu1 %vm731_vm0, %v917_v2  ;;  %v915_v6 = vpop.permute.xlu1 %914  ;;  %v928_v24 = vsel %vm731_vm0, %v917_v2, 0 }
 0x445   : > { %v925_v29 = vsel %vm731_vm0, %v915_v6, 0 }
 0x448   : > { %v909_v27 = vpop.permute.xlu1 %908 }
 0x44a   : > { %v2654_v22 = vpop.eup %2653 }
 0x44b   : > { %v2656_v4 = vpop.eup %2655  ;;  %v842_v11 = vmul.f32 %v2654_v22, %v2648_v57 }
 0x44c   : > { %v843_v12 = vmul.f32 %v2656_v4, %v2646_v56  ;;  %v911_v30 = vpop.permute.xlu1 %910 }
 0x44d   : > { %v2658_v5 = vpop.eup %2657 }
 0x44e   : > { %v2660_v8 = vpop.eup %2659  ;;  %v841_v9 = vmul.f32 %v2658_v5, %v2650_v58 }
 0x44f   : > { %v844_v17 = vmul.f32 %v2660_v8, %v2652_v61 }
 0x450   : > { %v845_v18 = vpack.c.bf16 %v842_v11, %v841_v9 }
 0x451   : > { %v846_v20 = vpack.c.bf16 %v844_v17, %v843_v12 }
 0x452   : > { %2508 = vmatprep.mubr.msk.bf16.mxu1 %vm731_vm0, %v845_v18 }
 0x453   : > { %2509 = vmatmul.mubr.msk.bf16.vlgmr.msra.gmra.mxu1 %vm731_vm0, %v846_v20 }
 0x454   : > { %2513 = vmatpush3.bf16.xpose.msra.mxu1 %v928_v24  ;;  %2516 = vmatprep.mubr.msk.bf16.mxu1 %vm731_vm0, %v909_v27 }
 0x455   : > { %2595 = vmatprep.subr.msk.bf16.mxu1 %vm731_vm0, %v915_v6 }
 0x45c   : > { %2515 = vmatpush3.bf16.xpose.msra.mxu1 %v925_v29 }
 0x45d   : > { %2536 = vmatprep.subr.bf16.mxu1 %v720_v34 }
 0x463   : > { %2517 = vmatmul.mubr.msk.bf16.vlgmr.msra.gmra.mxu1 %vm731_vm0, %v911_v30 }
 0x464   : > { %2537 = vmatpush3.bf16.msra.mxu1 %v720_v34 }
 0x465   : > { %2538 = vmatprep.subr.bf16.mxu1 %v719_v37 }
 0x468   : > { %2539 = vmatpush3.bf16.msra.mxu1 %v719_v37 }
 0x513   : > { %v2510_v38 = vpop.f32.mrf.mxu1 }
 0x515   : > { %v889_v39 = vpop.f32.mrf.mxu1 }
 0x517   : > { %v2511_v40 = vpop.f32.mrf.mxu1 }
 0x518   : > { %v905_v43 = vpack.c.bf16 %v2511_v40, %v2510_v38  ;;  %v707_v40 = vld [vmem:[%s3489_s4 + $0x20] sm:$0xff] }
 0x519   : > { %v892_v41 = vpop.f32.mrf.mxu1 }
 0x51a   : > { %v904_v42 = vpack.c.bf16 %v892_v41, %v889_v39  ;;  %v708_v41 = vld [vmem:[%s3489_s4 + $0x28] sm:$0xff] }
 0x51c   : > { %2540 = vmatprep.mubr.msk.bf16.mxu1 %vm731_vm0, %v904_v42 }
 0x51d   : > { %2541 = vmatmul.mubr.msk.bf16.vlgmr.msra.gmra.mxu1 %vm731_vm0, %v905_v43 }
 0x523   : > { %v2518_v44 = vpop.f32.mrf.mxu1 }
 0x524   : > { %v981_v46 = vmul.f32 0.17677669, %v2518_v44 }
 0x525   : > { %v964_v45 = vpop.f32.mrf.mxu1 }
 0x526   : > { %v979_v47 = vmul.f32 0.17677669, %v964_v45  ;;  %v985_v54 = vsel %vm701_vm2, %v981_v46, -inf  ;;  %v721_v45 = vpack.c.bf16 %v708_v41, %v707_v40 }
 0x527   : > { %v2519_v48 = vpop.f32.mrf.mxu1  ;;  %v993_v56 = vsel %vm731_vm0, %v985_v54, -inf }
 0x528   : > { %v983_v49 = vsel %vm699_vm1, %v979_v47, -inf  ;;  %v982_v52 = vmul.f32 0.17677669, %v2519_v48 }
 0x529   : > { %v967_v50 = vpop.f32.mrf.mxu1  ;;  %v987_v51 = vsel %vm731_vm0, %v983_v49, -inf }
 0x52a   : > { %v980_v53 = vmul.f32 0.17677669, %v967_v50  ;;  %988 = vmax.xlane.f32.xlu0 %v987_v51  ;;  %v986_v14 = vsel %vm702_vm4, %v982_v52, -inf }
 0x52b   : > { %v996_v58 = vsel %vm731_vm0, %v986_v14, -inf }
 0x52c   : > { %v984_v55 = vsel %vm700_vm3, %v980_v53, -inf }
 0x52d   : > { %v990_v57 = vsel %vm731_vm0, %v984_v55, -inf }
 0x52e   : > { %994 = vmax.xlane.f32.xlu0 %v993_v56  ;;  %991 = vmax.xlane.f32.xlu1 %v990_v57 }
 0x532   : > { %997 = vmax.xlane.f32.xlu0 %v996_v58 }
 0x5b3   : > { %v989_v59 = vpop.xlane.xlu0 %988 }
 0x5b4   : > { %v999_v61 = vsub.f32 %v983_v49, %v989_v59 }
 0x5b6   : > { %v1003_v0 = vmul.f32 1.442695, %v999_v61 }
 0x5b7   : > { %v995_v62 = vpop.xlane.xlu0 %994  ;;  %v992_v21 = vpop.xlane.xlu1 %991 }
 0x5b8   : > { %v1001_v63 = vsub.f32 %v985_v54, %v995_v62  ;;  %v1000_v1 = vsub.f32 %v984_v55, %v992_v21 }
 0x5ba   : > { %v1007_v15 = vmul.f32 1.442695, %v1001_v63  ;;  %v1005_v4 = vmul.f32 1.442695, %v1000_v1 }
 0x5bb   : > { %v998_v2 = vpop.xlane.xlu0 %997 }
 0x5bc   : > { %2661 = vpow2.f32 %v1007_v15  ;;  %v1002_v22 = vsub.f32 %v986_v14, %v998_v2 }
 0x5bd   : > { %2663 = vpow2.f32 %v1003_v0 }
 0x5be   : > { %v1009_v5 = vmul.f32 1.442695, %v1002_v22 }
 0x5c0   : > { %2665 = vpow2.f32 %v1009_v5 }
 0x5c1   : > { %2667 = vpow2.f32 %v1005_v4 }
 0x5c9   : > { %v2662_v6 = vpop.eup %2661 }
 0x5ca   : > { %v1017_v8 = vsel %vm731_vm0, %v2662_v6, 0.0  ;;  %v2664_v9 = vpop.eup %2663 }
 0x5cb   : > { %1018 = vadd.xlane.f32.xlu0 %v1017_v8  ;;  %v1011_v12 = vsel %vm731_vm0, %v2664_v9, 0.0 }
 0x5cd   : > { %v2666_v11 = vpop.eup %2665 }
 0x5ce   : > { %v1020_v17 = vsel %vm731_vm0, %v2666_v11, 0.0  ;;  %v2668_v18 = vpop.eup %2667 }
 0x5cf   : > { %1012 = vadd.xlane.f32.xlu0 %v1011_v12  ;;  %1021 = vadd.xlane.f32.xlu1 %v1020_v17  ;;  %v1014_v20 = vsel %vm731_vm0, %v2668_v18, 0.0 }
 0x5d3   : > { %1015 = vadd.xlane.f32.xlu1 %v1014_v20 }
 0x5e4   : > { %1035 = vrot.lane.b32.xlu1 %v2965_v10, %s2796_s13 }
 0x5e5   : > { %1037 = vrot.lane.b32.xlu0 %v2963_v7, %s2796_s13 }
 0x5e8   : > { %1214 = vrot.lane.b32.xlu1 %v2970_v13, %s2797_s25 }
 0x5e9   : > { %1208 = vrot.lane.b32.xlu0 %v2959_v3, %s2797_s25 }
 0x5ec   : > { %1212 = vrot.lane.b32.xlu1 %v2973_v16, %s2797_s25 }
 0x5ed   : > { %1459 = vrot.lane.b32.xlu0 %v2970_v13, %s2798_s27 }
 0x5f0   : > { %1210 = vrot.lane.b32.xlu1 %v2983_v19, %s2797_s25 }
 0x5f1   : > { %1453 = vrot.lane.b32.xlu0 %v2959_v3, %s2798_s27  ;;  %v710_v3 = vld [vmem:[%s3489_s4 + $0x38] sm:$0xff] }
 0x5f4   : > { %1457 = vrot.lane.b32.xlu1 %v2973_v16, %s2798_s27  ;;  %v722_v16 = vpack.c.bf16 %v710_v3, %v709_v31 }
 0x5f8   : > { %1455 = vrot.lane.b32.xlu1 %v2983_v19, %s2798_s27 }
 0x654   : > { %v1019_v24 = vpop.xlane.xlu0 %1018 }
 0x658   : > { %v1013_v27 = vpop.xlane.xlu0 %1012  ;;  %v1022_v29 = vpop.xlane.xlu1 %1021 }
 0x659   : > { %2669 = vrcp.f32 %v1022_v29 }
 0x65a   : > { %2671 = vrcp.f32 %v1013_v27 }
 0x65b   : > { %2673 = vrcp.f32 %v1019_v24 }
 0x65c   : > { %v1038_v30 = vpop.permute.xlu0 %1037  ;;  %v1016_v13 = vpop.xlane.xlu1 %1015 }
 0x65d   : > { %2675 = vrcp.f32 %v1016_v13  ;;  %2520 = vmatprep.subr.bf16.mxu0 %v1038_v30 }
 0x65e   : > { %2521 = vmatpush3.bf16.msra.mxu0 %v1038_v30 }
 0x660   : > { %v1036_v19 = vpop.permute.xlu1 %1035  ;;  %v1209_v53 = vpop.permute.xlu0 %1208 }
 0x661   : > { %2522 = vmatprep.subr.bf16.mxu0 %v1036_v19 }
 0x662   : > { %2523 = vmatpush3.bf16.msra.mxu0 %v1036_v19 }
 0x663   : > { %2528 = vmatprep.subr.bf16.mxu0 %v722_v16 }
 0x664   : > { %v1215_v46 = vpop.permute.xlu1 %1214  ;;  %v1460_v57 = vpop.permute.xlu0 %1459 }
 0x665   : > { %v1226_v54 = vsel %vm731_vm0, %v1215_v46, 0  ;;  %v1471_v58 = vsel %vm731_vm0, %v1460_v57, 0 }
 0x666   : > { %v2670_v33 = vpop.eup %2669 }
 0x667   : > { %v2672_v34 = vpop.eup %2671  ;;  %v1030_v37 = vmul.f32 %v2670_v33, %v2666_v11 }
 0x668   : > { %v2674_v35 = vpop.eup %2673  ;;  %v1027_v38 = vmul.f32 %v2672_v34, %v2664_v9  ;;  %v1213_v55 = vpop.permute.xlu1 %1212 }
 0x669   : > { %v1029_v42 = vmul.f32 %v2674_v35, %v2662_v6  ;;  %v1223_v56 = vsel %vm731_vm0, %v1213_v55, 0  ;;  %v1454_v59 = vpop.permute.xlu0 %1453 }
 0x66a   : > { %v2676_v36 = vpop.eup %2675 }
 0x66b   : > { %v1028_v39 = vmul.f32 %v2676_v36, %v2668_v18  ;;  %v1032_v44 = vpack.c.bf16 %v1030_v37, %v1029_v42 }
 0x66c   : > { %v1211_v14 = vpop.permute.xlu1 %1210 }
 0x66d   : > { %v1031_v43 = vpack.c.bf16 %v1028_v39, %v1027_v38 }
 0x66f   : > { %2524 = vmatprep.mubr.msk.bf16.mxu0 %vm731_vm0, %v1031_v43 }
 0x670   : > { %2525 = vmatmul.mubr.msk.bf16.vlgmr.msra.gmra.mxu0 %vm731_vm0, %v1032_v44  ;;  %v1458_v61 = vpop.permute.xlu1 %1457 }
 0x671   : > { %2529 = vmatpush3.bf16.msra.mxu0 %v722_v16  ;;  %v1468_v62 = vsel %vm731_vm0, %v1458_v61, 0 }
 0x672   : > { %2530 = vmatprep.subr.bf16.mxu0 %v721_v45 }
 0x674   : > { %v1456_v21 = vpop.permute.xlu1 %1455 }
 0x675   : > { %2531 = vmatpush3.bf16.msra.mxu0 %v721_v45 }
 0x676   : > { %2596 = vmatprep.subr.msk.bf16.mxu0 %vm731_vm0, %v1215_v46 }
 0x730   : > { %v2526_v47 = vpop.f32.mrf.mxu0 }
 0x732   : > { %v1081_v48 = vpop.f32.mrf.mxu0 }
 0x734   : > { %v2527_v49 = vpop.f32.mrf.mxu0 }
 0x735   : > { %v1097_v52 = vpack.c.bf16 %v2527_v49, %v2526_v47 }
 0x736   : > { %v1084_v50 = vpop.f32.mrf.mxu0 }
 0x737   : > { %v1096_v51 = vpack.c.bf16 %v1084_v50, %v1081_v48 }
 0x739   : > { %2532 = vmatprep.mubr.msk.bf16.mxu0 %vm731_vm0, %v1096_v51 }
 0x73a   : > { %2533 = vmatmul.mubr.msk.bf16.vlgmr.msra.gmra.mxu0 %vm731_vm0, %v1097_v52 }
 0x73b   : > { %2545 = vmatpush3.bf16.xpose.msra.mxu0 %v1226_v54  ;;  %2548 = vmatprep.mubr.msk.bf16.mxu0 %vm731_vm0, %v1209_v53 }
 0x73c   : > { %2597 = vmatprep.subr.msk.bf16.mxu0 %vm731_vm0, %v1213_v55 }
 0x743   : > { %2547 = vmatpush3.bf16.xpose.msra.mxu0 %v1223_v56 }
 0x744   : > { %2598 = vmatprep.subr.msk.bf16.mxu0 %vm731_vm0, %v1460_v57 }
 0x74a   : > { %2549 = vmatmul.mubr.msk.bf16.vlgmr.msra.gmra.mxu0 %vm731_vm0, %v1211_v14 }
 0x74b   : > { %2569 = vmatpush3.bf16.xpose.msra.mxu0 %v1471_v58  ;;  %2572 = vmatprep.mubr.msk.bf16.mxu0 %vm731_vm0, %v1454_v59 }
 0x74c   : > { %2599 = vmatprep.subr.msk.bf16.mxu0 %vm731_vm0, %v1458_v61 }
 0x753   : > { %2571 = vmatpush3.bf16.xpose.msra.mxu0 %v1468_v62 }
 0x75a   : > { %2573 = vmatmul.mubr.msk.bf16.vlgmr.msra.gmra.mxu0 %vm731_vm0, %v1456_v21 }
 0x75b   : > { %1931 = vmatprep.mubr.bf16.mxu0 %v2795_v60 }
 0x7fa   : > { %v3127_v63 = vpop.f32.mrf.mxu0 }
 0x7fc   : > { %v3129_v0 = vpop.f32.mrf.mxu0 }
 0x7fe   : > { %v3131_v15 = vpop.f32.mrf.mxu0 }
 0x800   : > { %v3133_v1 = vpop.f32.mrf.mxu0 }
 0x80a   : > { %v2550_v2 = vpop.f32.mrf.mxu0 }
 0x80b   : > { %v1279_v4 = vmul.f32 0.17677669, %v2550_v2 }
 0x80c   : > { %v1262_v22 = vpop.f32.mrf.mxu0 }
 0x80d   : > { %v1277_v5 = vmul.f32 0.17677669, %v1262_v22  ;;  %v1283_v18 = vsel %vm701_vm2, %v1279_v4, -inf }
 0x80e   : > { %v2551_v6 = vpop.f32.mrf.mxu0  ;;  %v1291_v24 = vsel %vm731_vm0, %v1283_v18, -inf }
 0x80f   : > { %v1281_v8 = vsel %vm699_vm1, %v1277_v5, -inf  ;;  %v1280_v12 = vmul.f32 0.17677669, %v2551_v6 }
 0x810   : > { %v1265_v9 = vpop.f32.mrf.mxu0  ;;  %v1285_v11 = vsel %vm731_vm0, %v1281_v8, -inf }
 0x811   : > { %v1278_v17 = vmul.f32 0.17677669, %v1265_v9  ;;  %1286 = vmax.xlane.f32.xlu0 %v1285_v11  ;;  %v1284_v29 = vsel %vm702_vm4, %v1280_v12, -inf }
 0x812   : > { %v1294_v30 = vsel %vm731_vm0, %v1284_v29, -inf }
 0x813   : > { %v1282_v20 = vsel %vm700_vm3, %v1278_v17, -inf }
 0x814   : > { %v1288_v27 = vsel %vm731_vm0, %v1282_v20, -inf }
 0x815   : > { %1292 = vmax.xlane.f32.xlu0 %v1291_v24  ;;  %1289 = vmax.xlane.f32.xlu1 %v1288_v27 }
 0x819   : > { %1295 = vmax.xlane.f32.xlu0 %v1294_v30 }
 0x81a   : > { %v2574_v48 = vpop.f32.mrf.mxu0 }
 0x81b   : > { %v1524_v53 = vmul.f32 0.17677669, %v2574_v48  ;;  %v712_v48 = vld [vmem:[%s3489_s4 + $0x48] sm:$0xff] }
 0x81c   : > { %v1507_v49 = vpop.f32.mrf.mxu0 }
 0x81d   : > { %v1522_v54 = vmul.f32 0.17677669, %v1507_v49  ;;  %v1528_v14 = vsel %vm701_vm2, %v1524_v53, -inf }
 0x81e   : > { %v2575_v50 = vpop.f32.mrf.mxu0  ;;  %v1536_v59 = vsel %vm731_vm0, %v1528_v14, -inf }
 0x81f   : > { %v1525_v57 = vmul.f32 0.17677669, %v2575_v50  ;;  %v1526_v58 = vsel %vm699_vm1, %v1522_v54, -inf  ;;  %v2542_v50 = vpop.f32.mrf.mxu1 }
 0x820   : > { %v1510_v51 = vpop.f32.mrf.mxu0  ;;  %v1530_v61 = vsel %vm731_vm0, %v1526_v58, -inf }
 0x821   : > { %v1523_v52 = vmul.f32 0.17677669, %v1510_v51  ;;  %v1529_v28 = vsel %vm702_vm4, %v1525_v57, -inf  ;;  %v1193_v51 = vpop.f32.mrf.mxu1 }
 0x822   : > { %v1539_v62 = vsel %vm731_vm0, %v1529_v28, -inf }
 0x823   : > { %v1527_v55 = vsel %vm700_vm3, %v1523_v52, -inf  ;;  %v2543_v52 = vpop.f32.mrf.mxu1 }
 0x824   : > { %v1533_v56 = vsel %vm731_vm0, %v1527_v55, -inf }
 0x825   : > { %v1196_v53 = vpop.f32.mrf.mxu1 }
 0x89a   : > { %v1287_v13 = vpop.xlane.xlu0 %1286 }
 0x89b   : > { %v1297_v31 = vsub.f32 %v1281_v8, %v1287_v13 }
 0x89d   : > { %v1301_v33 = vmul.f32 1.442695, %v1297_v31 }
 0x89e   : > { %v1293_v3 = vpop.xlane.xlu0 %1292  ;;  %v1290_v16 = vpop.xlane.xlu1 %1289 }
 0x89f   : > { %v1299_v19 = vsub.f32 %v1283_v18, %v1293_v3  ;;  %v1298_v35 = vsub.f32 %v1282_v20, %v1290_v16 }
 0x8a1   : > { %v1305_v34 = vmul.f32 1.442695, %v1299_v19  ;;  %v1303_v38 = vmul.f32 1.442695, %v1298_v35 }
 0x8a2   : > { %v1296_v36 = vpop.xlane.xlu0 %1295 }
 0x8a3   : > { %2677 = vpow2.f32 %v1305_v34  ;;  %v1300_v37 = vsub.f32 %v1284_v29, %v1296_v36 }
 0x8a4   : > { %2679 = vpow2.f32 %v1301_v33 }
 0x8a5   : > { %v1307_v39 = vmul.f32 1.442695, %v1300_v37 }
 0x8a7   : > { %2681 = vpow2.f32 %v1307_v39 }
 0x8a8   : > { %2683 = vpow2.f32 %v1303_v38 }
 0x8b0   : > { %v2678_v40 = vpop.eup %2677 }
 0x8b1   : > { %v1315_v41 = vsel %vm731_vm0, %v2678_v40, 0.0  ;;  %v2680_v42 = vpop.eup %2679 }
 0x8b2   : > { %1316 = vadd.xlane.f32.xlu0 %v1315_v41  ;;  %v1309_v44 = vsel %vm731_vm0, %v2680_v42, 0.0 }
 0x8b4   : > { %v2682_v43 = vpop.eup %2681 }
 0x8b5   : > { %v1318_v45 = vsel %vm731_vm0, %v2682_v43, 0.0  ;;  %v2684_v46 = vpop.eup %2683 }
 0x8b6   : > { %1310 = vadd.xlane.f32.xlu0 %v1309_v44  ;;  %1319 = vadd.xlane.f32.xlu1 %v1318_v45  ;;  %v1312_v47 = vsel %vm731_vm0, %v2684_v46, 0.0  ;;  %v713_v44 = vld [vmem:[%s3489_s4 + $0x50] sm:$0xff]  ;;  %v714_v45 = vld [vmem:[%s3489_s4 + $0x58] sm:$0xff] }
 0x8ba   : > { %1313 = vadd.xlane.f32.xlu1 %v1312_v47  ;;  %v711_v47 = vld [vmem:[%s3489_s4 + $0x40] sm:$0xff] }
 0x8bb   : > { %v723_v49 = vpack.c.bf16 %v712_v48, %v711_v47  ;;  %v2718_v48 = vld [vmem:[%s2925_s26 + $0x18] sm:$0xff] }
 0x8cb   : > { %1331 = vrot.lane.b32.xlu1 %v2965_v10, %s2797_s25 }
 0x8cc   : > { %1333 = vrot.lane.b32.xlu0 %v2963_v7, %s2797_s25 }
 0x8eb   : > { %1534 = vmax.xlane.f32.xlu0 %v1533_v56 }
 0x8ef   : > { %1537 = vmax.xlane.f32.xlu0 %v1536_v59  ;;  %1531 = vmax.xlane.f32.xlu1 %v1530_v61 }
 0x8f3   : > { %1540 = vmax.xlane.f32.xlu1 %v1539_v62 }
 0x93b   : > { %v1317_v21 = vpop.xlane.xlu0 %1316 }
 0x93f   : > { %v1311_v26 = vpop.xlane.xlu0 %1310  ;;  %v1320_v2 = vpop.xlane.xlu1 %1319 }
 0x940   : > { %2685 = vrcp.f32 %v1320_v2 }
 0x941   : > { %2687 = vrcp.f32 %v1311_v26 }
 0x942   : > { %2689 = vrcp.f32 %v1317_v21 }
 0x943   : > { %v1334_v22 = vpop.permute.xlu0 %1333  ;;  %v1314_v4 = vpop.xlane.xlu1 %1313 }
 0x944   : > { %2691 = vrcp.f32 %v1314_v4  ;;  %2552 = vmatprep.subr.bf16.mxu1 %v1334_v22 }
 0x945   : > { %2553 = vmatpush3.bf16.msra.mxu1 %v1334_v22 }
 0x947   : > { %v1332_v5 = vpop.permute.xlu1 %1331 }
 0x948   : > { %2554 = vmatprep.subr.bf16.mxu1 %v1332_v5 }
 0x949   : > { %2555 = vmatpush3.bf16.msra.mxu1 %v1332_v5 }
 0x94d   : > { %v2686_v6 = vpop.eup %2685 }
 0x94e   : > { %v2688_v25 = vpop.eup %2687  ;;  %v1328_v9 = vmul.f32 %v2686_v6, %v2682_v43 }
 0x94f   : > { %v2690_v32 = vpop.eup %2689  ;;  %v1325_v11 = vmul.f32 %v2688_v25, %v2680_v42 }
 0x950   : > { %v1327_v17 = vmul.f32 %v2690_v32, %v2678_v40 }
 0x951   : > { %v2692_v8 = vpop.eup %2691 }
 0x952   : > { %v1326_v12 = vmul.f32 %v2692_v8, %v2684_v46  ;;  %v1330_v20 = vpack.c.bf16 %v1328_v9, %v1327_v17  ;;  %v724_v46 = vpack.c.bf16 %v714_v45, %v713_v44  ;;  %v717_v9 = vld [vmem:[%s3489_s4 + $0x70] sm:$0xff]  ;;  %v715_v17 = vld [vmem:[%s3489_s4 + $0x60] sm:$0xff] }
 0x954   : > { %v1329_v18 = vpack.c.bf16 %v1326_v12, %v1325_v11  ;;  %2560 = vmatprep.subr.bf16.mxu1 %v724_v46  ;;  %v718_v11 = vld [vmem:[%s3489_s4 + $0x78] sm:$0xff] }
 0x955   : > { %v726_v12 = vpack.c.bf16 %v718_v11, %v717_v9 }
 0x956   : > { %2556 = vmatprep.mubr.msk.bf16.mxu1 %vm731_vm0, %v1329_v18  ;;  %v716_v18 = vld [vmem:[%s3489_s4 + $0x68] sm:$0xff] }
 0x957   : > { %2557 = vmatmul.mubr.msk.bf16.vlgmr.msra.gmra.mxu1 %vm731_vm0, %v1330_v20  ;;  %v725_v20 = vpack.c.bf16 %v716_v18, %v715_v17 }
 0x958   : > { %2561 = vmatpush3.bf16.msra.mxu1 %v724_v46  ;;  %v2354_v46 = vld [vmem:[%s3490_s5] ss:$0 sm:$0xff] }
 0x959   : > { %2562 = vmatprep.subr.bf16.mxu1 %v723_v49 }
 0x95c   : > { %2563 = vmatpush3.bf16.msra.mxu1 %v723_v49 }
 0x974   : > { %v1535_v24 = vpop.xlane.xlu0 %1534 }
 0x975   : > { %v1543_v31 = vsub.f32 %v1527_v55, %v1535_v24  ;;  %v1202_v24 = vadd.f32 %v2542_v50, %v3127_v63 }
 0x977   : > { %v1548_v34 = vmul.f32 1.442695, %v1543_v31  ;;  %v1205_v31 = vadd.f32 %v2543_v52, %v3131_v15  ;;  %v2719_v52 = vld [vmem:[%s2925_s26 + $0x8] sm:$0xff] }
 0x978   : > { %v1538_v27 = vpop.xlane.xlu0 %1537  ;;  %v1532_v29 = vpop.xlane.xlu1 %1531 }
 0x979   : > { %v1544_v30 = vsub.f32 %v1528_v14, %v1538_v27  ;;  %v1542_v13 = vsub.f32 %v1526_v58, %v1532_v29  ;;  %v1194_v29 = vadd.f32 %v1193_v51, %v3129_v0 }
 0x97b   : > { %v1550_v3 = vmul.f32 1.442695, %v1544_v30  ;;  %v1546_v16 = vmul.f32 1.442695, %v1542_v13 }
 0x97c   : > { %v1541_v19 = vpop.xlane.xlu1 %1540 }
 0x97d   : > { %2693 = vpow2.f32 %v1550_v3  ;;  %v1545_v33 = vsub.f32 %v1529_v28, %v1541_v19  ;;  %v1197_v19 = vadd.f32 %v1196_v53, %v3133_v1 }
 0x97e   : > { %2695 = vpow2.f32 %v1546_v16 }
 0x97f   : > { %v1552_v35 = vmul.f32 1.442695, %v1545_v33 }
 0x981   : > { %2697 = vpow2.f32 %v1552_v35 }
 0x982   : > { %2699 = vpow2.f32 %v1548_v34 }
 0x98a   : > { %v2694_v36 = vpop.eup %2693 }
 0x98b   : > { %v1560_v37 = vsel %vm731_vm0, %v2694_v36, 0.0  ;;  %v2696_v38 = vpop.eup %2695 }
 0x98c   : > { %1561 = vadd.xlane.f32.xlu0 %v1560_v37  ;;  %v1554_v40 = vsel %vm731_vm0, %v2696_v38, 0.0 }
 0x98e   : > { %v2698_v39 = vpop.eup %2697 }
 0x98f   : > { %v1563_v41 = vsel %vm731_vm0, %v2698_v39, 0.0  ;;  %v2700_v42 = vpop.eup %2699 }
 0x990   : > { %1555 = vadd.xlane.f32.xlu0 %v1554_v40  ;;  %1564 = vadd.xlane.f32.xlu1 %v1563_v41  ;;  %v1557_v43 = vsel %vm731_vm0, %v2700_v42, 0.0 }
 0x994   : > { %1558 = vadd.xlane.f32.xlu1 %v1557_v43 }
 0x9a5   : > { %1576 = vrot.lane.b32.xlu1 %v2965_v10, %s2798_s27 }
 0x9a6   : > { %1578 = vrot.lane.b32.xlu0 %v2963_v7, %s2798_s27 }
 0xa15   : > { %v1562_v54 = vpop.xlane.xlu0 %1561 }
 0xa17   : > { %v2558_v55 = vpop.f32.mrf.mxu1 }
 0xa19   : > { %v1377_v56 = vpop.f32.mrf.mxu1  ;;  %v1556_v57 = vpop.xlane.xlu0 %1555 }
 0xa1a   : > { %v1565_v14 = vpop.xlane.xlu1 %1564 }
 0xa1b   : > { %v2559_v58 = vpop.f32.mrf.mxu1  ;;  %2701 = vrcp.f32 %v1565_v14 }
 0xa1c   : > { %2703 = vrcp.f32 %v1556_v57  ;;  %v1393_v62 = vpack.c.bf16 %v2559_v58, %v2558_v55  ;;  %v1838_v58 = vld [vmem:[%s3493_s8 + $0x1c8] sm:$0xff] }
 0xa1d   : > { %v1380_v59 = vpop.f32.mrf.mxu1  ;;  %v1579_v61 = vpop.permute.xlu0 %1578  ;;  %2705 = vrcp.f32 %v1562_v54  ;;  %v2720_v54 = vld [vmem:[%s2925_s26 + $0x10] sm:$0xff] }
 0xa1e   : > { %v1392_v28 = vpack.c.bf16 %v1380_v59, %v1377_v56  ;;  %v1559_v10 = vpop.xlane.xlu1 %1558  ;;  %2576 = vmatprep.subr.bf16.mxu1 %v1579_v61  ;;  %v1842_v59 = vld [vmem:[%s3493_s8 + $0x1e8] sm:$0xff] }
 0xa1f   : > { %2707 = vrcp.f32 %v1559_v10  ;;  %v1844_v10 = vld [vmem:[%s3493_s8 + $0x1f8] sm:$0xff] }
 0xa20   : > { %2564 = vmatprep.mubr.msk.bf16.mxu1 %vm731_vm0, %v1392_v28  ;;  %v1874_v28 = vpack.c.bf16 %v1842_v59, %v1838_v58  ;;  %v1817_v58 = vld [vmem:[%s3493_s8 + $0x120] sm:$0xff] }
 0xa21   : > { %2565 = vmatmul.mubr.msk.bf16.vlgmr.msra.gmra.mxu1 %vm731_vm0, %v1393_v62  ;;  %v1837_v62 = vld [vmem:[%s3493_s8 + $0x1c0] sm:$0xff] }
 0xa22   : > { %2577 = vmatpush3.bf16.msra.mxu1 %v1579_v61  ;;  %v1577_v7 = vpop.permute.xlu1 %1576  ;;  %v1840_v61 = vld [vmem:[%s3493_s8 + $0x1d8] sm:$0xff]  ;;  %1899 = vmatprep.subr.bf16.mxu0 %v1874_v28  ;;  %v1815_v28 = vld [vmem:[%s3493_s8 + $0x110] sm:$0xff] }
 0xa23   : > { %2578 = vmatprep.subr.bf16.mxu1 %v1577_v7 }
 0xa26   : > { %2579 = vmatpush3.bf16.msra.mxu1 %v1577_v7  ;;  %v1841_v7 = vld [vmem:[%s3493_s8 + $0x1e0] sm:$0xff] }
 0xa27   : > { %2584 = vmatprep.subr.bf16.mxu1 %v726_v12 }
 0xa28   : > { %v2702_v21 = vpop.eup %2701 }
 0xa29   : > { %v2704_v26 = vpop.eup %2703  ;;  %v1573_v4 = vmul.f32 %v2702_v21, %v2698_v39  ;;  %v1876_v21 = vpack.c.bf16 %v1844_v10, %v1840_v61  ;;  %v1819_v10 = vld [vmem:[%s3493_s8 + $0x130] sm:$0xff] }
 0xa2a   : > { %v2706_v2 = vpop.eup %2705  ;;  %v1570_v5 = vmul.f32 %v2704_v26, %v2696_v38  ;;  %v1873_v26 = vpack.c.bf16 %v1841_v7, %v1837_v62  ;;  %v1863_v62 = vpack.c.bf16 %v1819_v10, %v1815_v28  ;;  %v1806_v7 = vld [vmem:[%s3493_s8 + $0xc8] sm:$0xff]  ;;  %v2092_v10 = vld [vmem:[#allocation4 + $0x1f8] sm:$0xff] }
 0xa2b   : > { %v1572_v25 = vmul.f32 %v2706_v2, %v2694_v36  ;;  %v1839_v2 = vld [vmem:[%s3493_s8 + $0x1d0] sm:$0xff] }
 0xa2c   : > { %v2708_v22 = vpop.eup %2707  ;;  %1900 = vmatpush1.bf16.msra.mxu0 %v1873_v26  ;;  %v1808_v26 = vld [vmem:[%s3493_s8 + $0xd8] sm:$0xff] }
 0xa2d   : > { %v1571_v6 = vmul.f32 %v2708_v22, %v2700_v42  ;;  %v1575_v8 = vpack.c.bf16 %v1573_v4, %v1572_v25  ;;  %v2717_v42 = vld [vmem:[%s2925_s26] sm:$0xff]  ;;  %v1843_v22 = vld [vmem:[%s3493_s8 + $0x1f0] sm:$0xff] }
 0xa2e   : > { %v1875_v4 = vpack.c.bf16 %v1843_v22, %v1839_v2  ;;  %v1812_v22 = vld [vmem:[%s3493_s8 + $0xf8] sm:$0xff] }
 0xa2f   : > { %v1574_v32 = vpack.c.bf16 %v1571_v6, %v1570_v5 }
 0xa31   : > { %2580 = vmatprep.mubr.msk.bf16.mxu1 %vm731_vm0, %v1574_v32 }
 0xa32   : > { %2581 = vmatmul.mubr.msk.bf16.vlgmr.msra.gmra.mxu1 %vm731_vm0, %v1575_v8 }
 0xa33   : > { %2585 = vmatpush3.bf16.msra.mxu1 %v726_v12 }
 0xa34   : > { %2586 = vmatprep.subr.bf16.mxu1 %v725_v20 }
 0xa37   : > { %2587 = vmatpush3.bf16.msra.mxu1 %v725_v20 }
 0xa38   : > { %1952 = vmatprep.subr.bf16.mxu1 %v1876_v21  ;;  %v1810_v21 = vld [vmem:[%s3493_s8 + $0xe8] sm:$0xff] }
 0xa39   : > { %v1858_v2 = vpack.c.bf16 %v1810_v21, %v1806_v7 }
 0xae1   : > { %v2566_v27 = vpop.f32.mrf.mxu1 }
 0xae2   : > { %v1451_v30 = vadd.f32 %v2566_v27, %v1202_v24 }
 0xae3   : > { %v1434_v13 = vpop.f32.mrf.mxu1 }
 0xae4   : > { %v1449_v3 = vadd.f32 %v1434_v13, %v1194_v29 }
 0xae5   : > { %v2567_v16 = vpop.f32.mrf.mxu1 }
 0xae6   : > { %v1452_v33 = vadd.f32 %v2567_v16, %v1205_v31  ;;  %v1830_v31 = vld [vmem:[%s3493_s8 + $0x188] sm:$0xff]  ;;  %v1832_v16 = vld [vmem:[%s3493_s8 + $0x198] sm:$0xff] }
 0xae7   : > { %v1437_v34 = vpop.f32.mrf.mxu1 }
 0xae8   : > { %v1450_v35 = vadd.f32 %v1437_v34, %v1197_v19  ;;  %v1829_v34 = vld [vmem:[%s3493_s8 + $0x180] sm:$0xff] }
 0xaf2   : > { %v2582_v36 = vpop.f32.mrf.mxu1 }
 0xaf4   : > { %v1622_v37 = vpop.f32.mrf.mxu1 }
 0xaf6   : > { %v2583_v38 = vpop.f32.mrf.mxu1 }
 0xaf7   : > { %v1638_v40 = vpack.c.bf16 %v2583_v38, %v2582_v36  ;;  %v1831_v38 = vld [vmem:[%s3493_s8 + $0x190] sm:$0xff] }
 0xaf8   : > { %v1625_v39 = vpop.f32.mrf.mxu1 }
 0xaf9   : > { %v1637_v63 = vpack.c.bf16 %v1625_v39, %v1622_v37  ;;  %v1835_v39 = vld [vmem:[%s3493_s8 + $0x1b0] sm:$0xff] }
 0xafb   : > { %2588 = vmatprep.mubr.msk.bf16.mxu1 %vm731_vm0, %v1637_v63  ;;  %v1871_v63 = vpack.c.bf16 %v1835_v39, %v1831_v38  ;;  %v1792_v38 = vld [vmem:[%s3493_s8 + $0x58] sm:$0xff] }
 0xafc   : > { %2589 = vmatmul.mubr.msk.bf16.vlgmr.msra.gmra.mxu1 %vm731_vm0, %v1638_v40  ;;  %v1822_v40 = vld [vmem:[%s3493_s8 + $0x148] sm:$0xff]  ;;  %v1796_v39 = vld [vmem:[%s3493_s8 + $0x78] sm:$0xff] }
 0xafd   : > { %1984 = vmatprep.mubr.bf16.mxu1 %v2795_v60  ;;  %1953 = vmatpush1.bf16.msra.mxu1 %v1875_v4  ;;  %v1805_v4 = vld [vmem:[%s3493_s8 + $0xc0] sm:$0xff] }
 0xbbc   : > { %v2590_v0 = vpop.f32.mrf.mxu1 }
 0xbbd   : > { %v1696_v47 = vadd.f32 %v2590_v0, %v1451_v30  ;;  %v1826_v0 = vld [vmem:[%s3493_s8 + $0x168] sm:$0xff] }
 0xbbe   : > { %v1679_v15 = vpop.f32.mrf.mxu1 }
 0xbbf   : > { %v1694_v1 = vadd.f32 %v1679_v15, %v1449_v3  ;;  %v1700_v55 = vadd.f32 %v2720_v54, %v1696_v47  ;;  %v1834_v3 = vld [vmem:[%s3493_s8 + $0x1a8] sm:$0xff]  ;;  %v1824_v15 = vld [vmem:[%s3493_s8 + $0x158] sm:$0xff]  ;;  %v1827_v47 = vld [vmem:[%s3493_s8 + $0x170] sm:$0xff] }
 0xbc0   : > { %v2591_v41 = vpop.f32.mrf.mxu1  ;;  %v1870_v19 = vpack.c.bf16 %v1834_v3, %v1830_v31  ;;  %v1820_v54 = vld [vmem:[%s3493_s8 + $0x138] sm:$0xff]  ;;  %v1797_v31 = vld [vmem:[%s3493_s8 + $0x80] sm:$0xff] }
 0xbc1   : > { %v1698_v43 = vadd.f32 %v2717_v42, %v1694_v1  ;;  %v1697_v44 = vadd.f32 %v2591_v41, %v1452_v33  ;;  %v3236_v14 = vadd.f32 %v2354_v46, %v1700_v55  ;;  %v1836_v33 = vld [vmem:[%s3493_s8 + $0x1b8] sm:$0xff]  ;;  %v1866_v1 = vpack.c.bf16 %v1826_v0, %v1822_v40  ;;  %v1821_v42 = vld [vmem:[%s3493_s8 + $0x140] sm:$0xff] }
 0xbc2   : > { %v1682_v45 = vpop.f32.mrf.mxu1  ;;  %v1872_v36 = vpack.c.bf16 %v1836_v33, %v1832_v16  ;;  %1901 = vmatprep.subr.bf16.mxu0 %v1870_v19  ;;  %v1828_v41 = vld [vmem:[%s3493_s8 + $0x178] sm:$0xff]  ;;  %v1813_v55 = vld [vmem:[%s3493_s8 + $0x100] sm:$0xff]  ;;  %v1799_v16 = vld [vmem:[%s3493_s8 + $0x90] sm:$0xff]  ;;  %v1852_v40 = vpack.c.bf16 %v1796_v39, %v1792_v38 }
 0xbc3   : > { %v1701_v49 = vadd.f32 %v2718_v48, %v1697_v44  ;;  %v1695_v50 = vadd.f32 %v1682_v45, %v1450_v35  ;;  %v3225_v51 = vadd.f32 %v2354_v46, %v1698_v43  ;;  %v1833_v35 = vld [vmem:[%s3493_s8 + $0x1a0] sm:$0xff]  ;;  %v1868_v44 = vpack.c.bf16 %v1828_v41, %v1824_v15  ;;  %v1803_v33 = vld [vmem:[%s3493_s8 + $0xb0] sm:$0xff] }
 0xbc4   : > { %v1869_v37 = vpack.c.bf16 %v1833_v35, %v1829_v34  ;;  %1954 = vmatprep.subr.bf16.mxu1 %v1872_v36  ;;  %v1825_v43 = vld [vmem:[%s3493_s8 + $0x160] sm:$0xff]  ;;  %v1861_v61 = vpack.c.bf16 %v1817_v58, %v1813_v55  ;;  %v1790_v34 = vld [vmem:[%s3493_s8 + $0x48] sm:$0xff]  ;;  %v1855_v36 = vpack.c.bf16 %v1803_v33, %v1799_v16  ;;  %v1791_v15 = vld [vmem:[%s3493_s8 + $0x50] sm:$0xff] }
 0xbc5   : > { %v1699_v53 = vadd.f32 %v2719_v52, %v1695_v50  ;;  %1715 = vadd.xlane.f32.xlu1 %v3225_v51  ;;  %v3230_v56 = vadd.f32 %v2354_v46, %v1701_v49  ;;  %1955 = vmatpush1.bf16.msra.mxu1 %v1871_v63  ;;  %v1865_v45 = vpack.c.bf16 %v1825_v43, %v1821_v42  ;;  %v1814_v49 = vld [vmem:[%s3493_s8 + $0x108] sm:$0xff]  ;;  %v1816_v52 = vld [vmem:[%s3493_s8 + $0x118] sm:$0xff]  ;;  %v1801_v3 = vld [vmem:[%s3493_s8 + $0xa0] sm:$0xff] }
 0xbc6   : > { %1902 = vmatpush1.bf16.msra.mxu0 %v1869_v37  ;;  %1956 = vmatprep.subr.bf16.mxu1 %v1868_v44  ;;  %v1818_v50 = vld [vmem:[%s3493_s8 + $0x128] sm:$0xff]  ;;  %v1864_v59 = vpack.c.bf16 %v1820_v54, %v1816_v52  ;;  %v1853_v19 = vpack.c.bf16 %v1801_v3, %v1797_v31  ;;  %v1789_v63 = vld [vmem:[%s3493_s8 + $0x40] sm:$0xff]  ;;  %v1784_v44 = vld [vmem:[%s3493_s8 + $0x18] sm:$0xff] }
 0xbc7   : > { %v3232_v57 = vadd.f32 %v2354_v46, %v1699_v53  ;;  %v1823_v46 = vld [vmem:[%s3493_s8 + $0x150] sm:$0xff]  ;;  %1903 = vmatprep.subr.bf16.mxu0 %v1866_v1  ;;  %v1862_v53 = vpack.c.bf16 %v1818_v50, %v1814_v49  ;;  %v1794_v35 = vld [vmem:[%s3493_s8 + $0x68] sm:$0xff]  ;;  %v1793_v0 = vld [vmem:[%s3493_s8 + $0x60] sm:$0xff] }
 0xbc8   : > { %v1867_v48 = vpack.c.bf16 %v1827_v47, %v1823_v46  ;;  %v1850_v37 = vpack.c.bf16 %v1794_v35, %v1790_v34  ;;  %v1795_v1 = vld [vmem:[%s3493_s8 + $0x70] sm:$0xff]  ;;  %v1849_v41 = vpack.c.bf16 %v1793_v0, %v1789_v63  ;;  %v1782_v42 = vld [vmem:[%s3493_s8 + $0x8] sm:$0xff]  ;;  %v1788_v47 = vld [vmem:[%s3493_s8 + $0x38] sm:$0xff] }
 0xbc9   : > { %1721 = vadd.xlane.f32.xlu1 %v3230_v56  ;;  %1717 = vadd.xlane.f32.xlu0 %v3232_v57  ;;  %v1786_v43 = vld [vmem:[%s3493_s8 + $0x28] sm:$0xff]  ;;  %v1785_v49 = vld [vmem:[%s3493_s8 + $0x20] sm:$0xff]  ;;  %v1848_v50 = vpack.c.bf16 %v1788_v47, %v1784_v44  ;;  %v1783_v52 = vld [vmem:[%s3493_s8 + $0x10] sm:$0xff] }
 0xbca   : > { %1904 = vmatpush1.bf16.msra.mxu0 %v1865_v45  ;;  %1957 = vmatpush1.bf16.msra.mxu1 %v1867_v48  ;;  %v1851_v45 = vpack.c.bf16 %v1795_v1, %v1791_v15  ;;  %v1846_v46 = vpack.c.bf16 %v1786_v43, %v1782_v42  ;;  %v1781_v48 = vld [vmem:[%s3493_s8] sm:$0xff]  ;;  %v2059_v58 = vld [vmem:[#allocation4 + $0xf0] sm:$0xff]  ;;  %v2076_v35 = vld [vmem:[#allocation4 + $0x178] sm:$0xff] }
 0xbcb   : > { %1905 = vmatprep.subr.bf16.mxu0 %v1862_v53  ;;  %1958 = vmatprep.subr.bf16.mxu1 %v1864_v59  ;;  %v1787_v53 = vld [vmem:[%s3493_s8 + $0x30] sm:$0xff]  ;;  %v1845_v54 = vpack.c.bf16 %v1785_v49, %v1781_v48  ;;  %v2060_v59 = vld [vmem:[#allocation4 + $0xf8] sm:$0xff]  ;;  %v2356_v31 = vld [vmem:[%s3492_s7] ss:$0 sm:$0xff] }
 0xbcc   : > { %v1847_v55 = vpack.c.bf16 %v1787_v53, %v1783_v52  ;;  %v2108_v28 = vpack.c.bf16 %v2060_v59, %v2059_v58  ;;  %v2043_v16 = vld [vmem:[#allocation4 + $0x70] sm:$0xff]  ;;  %v2058_v63 = vld [vmem:[#allocation4 + $0xe8] sm:$0xff]  ;;  %v2041_v43 = vld [vmem:[#allocation4 + $0x60] sm:$0xff] }
 0xbcd   : > { %1719 = vadd.xlane.f32.xlu0 %v3236_v14  ;;  %v2075_v34 = vld [vmem:[#allocation4 + $0x170] sm:$0xff]  ;;  %v2042_v44 = vld [vmem:[#allocation4 + $0x68] sm:$0xff]  ;;  %v2073_v48 = vld [vmem:[#allocation4 + $0x160] sm:$0xff] }
 0xbce   : > { %1906 = vmatpush1.bf16.msra.mxu0 %v1861_v61  ;;  %1959 = vmatpush1.bf16.msra.mxu1 %v1863_v62  ;;  %v2091_v61 = vld [vmem:[#allocation4 + $0x1f0] sm:$0xff]  ;;  %v2116_v42 = vpack.c.bf16 %v2076_v35, %v2075_v34  ;;  %v2074_v49 = vld [vmem:[#allocation4 + $0x168] sm:$0xff]  ;;  %v2088_v53 = vld [vmem:[#allocation4 + $0x1d8] sm:$0xff] }
 0xbcf   : > { %1907 = vmatprep.subr.bf16.mxu0 %v1858_v2  ;;  %v2124_v62 = vpack.c.bf16 %v2092_v10, %v2091_v61  ;;  %v2087_v52 = vld [vmem:[#allocation4 + $0x1d0] sm:$0xff]  ;;  %v2115_v58 = vpack.c.bf16 %v2074_v49, %v2073_v48  ;;  %v2040_v61 = vld [vmem:[#allocation4 + $0x58] sm:$0xff] }
 0xbd0   : > { %v2039_v59 = vld [vmem:[#allocation4 + $0x50] sm:$0xff]  ;;  %v2122_v10 = vpack.c.bf16 %v2088_v53, %v2087_v52  ;;  %v2068_v35 = vld [vmem:[#allocation4 + $0x138] sm:$0xff] }
 0xbd1   : > { %v2067_v34 = vld [vmem:[#allocation4 + $0x130] sm:$0xff]  ;;  %v2080_v48 = vld [vmem:[#allocation4 + $0x198] sm:$0xff] }
 0xbd2   : > { %v2031_v49 = vld [vmem:[#allocation4 + $0x10] sm:$0xff] }
 0xbd3   : > { %v2063_v53 = vld [vmem:[#allocation4 + $0x110] sm:$0xff] }
 0xc4e   : > { %v1716_v5 = vpop.xlane.xlu1 %1715 }
 0xc4f   : > { %v1723_v6 = vmul.f32 0.0078125, %v1716_v5  ;;  %v1809_v5 = vld [vmem:[%s3493_s8 + $0xe0] sm:$0xff] }
 0xc51   : > { %v3264_v25 = vsub.f32 %v3225_v51, %v1723_v6  ;;  %v1860_v6 = vpack.c.bf16 %v1812_v22, %v1808_v26 }
 0xc52   : > { %v1722_v32 = vpop.xlane.xlu1 %1721  ;;  %v1718_v8 = vpop.xlane.xlu0 %1717 }
 0xc53   : > { %v1726_v9 = vmul.f32 0.0078125, %v1722_v32  ;;  %v1724_v11 = vmul.f32 0.0078125, %v1718_v8  ;;  %v1731_v12 = vmul.f32 %v3264_v25, %v3264_v25  ;;  %v1857_v32 = vpack.c.bf16 %v1809_v5, %v1805_v4  ;;  %v1807_v8 = vld [vmem:[%s3493_s8 + $0xd0] sm:$0xff]  ;;  %1960 = vmatprep.subr.bf16.mxu1 %v1860_v6 }
 0xc55   : > { %v3269_v17 = vsub.f32 %v3232_v57, %v1724_v11  ;;  %1735 = vadd.xlane.f32.xlu0 %v1731_v12  ;;  %v3272_v20 = vsub.f32 %v3230_v56, %v1726_v9  ;;  %v1811_v9 = vld [vmem:[%s3493_s8 + $0xf0] sm:$0xff]  ;;  %v1798_v11 = vld [vmem:[%s3493_s8 + $0x88] sm:$0xff]  ;;  %1908 = vmatpush1.bf16.msra.mxu0 %v1857_v32 }
 0xc56   : > { %v1720_v18 = vpop.xlane.xlu0 %1719  ;;  %v1859_v12 = vpack.c.bf16 %v1811_v9, %v1807_v8 }
 0xc57   : > { %v1725_v24 = vmul.f32 0.0078125, %v1720_v18  ;;  %v1732_v27 = vmul.f32 %v3269_v17, %v3269_v17  ;;  %v1734_v30 = vmul.f32 %v3272_v20, %v3272_v20  ;;  %v1802_v18 = vld [vmem:[%s3493_s8 + $0xa8] sm:$0xff] }
 0xc58   : > { %1961 = vmatpush1.bf16.msra.mxu1 %v1859_v12 }
 0xc59   : > { %v3277_v29 = vsub.f32 %v3236_v14, %v1725_v24  ;;  %1737 = vadd.xlane.f32.xlu1 %v1732_v27  ;;  %v1800_v24 = vld [vmem:[%s3493_s8 + $0x98] sm:$0xff] }
 0xc5a   : > { %v1804_v27 = vld [vmem:[%s3493_s8 + $0xb8] sm:$0xff] }
 0xc5b   : > { %v1733_v13 = vmul.f32 %v3277_v29, %v3277_v29 }
 0xc5d   : > { %1741 = vadd.xlane.f32.xlu1 %v1734_v30  ;;  %1739 = vadd.xlane.f32.xlu0 %v1733_v13  ;;  %v1854_v30 = vpack.c.bf16 %v1802_v18, %v1798_v11  ;;  %v1856_v13 = vpack.c.bf16 %v1804_v27, %v1800_v24  ;;  %v2355_v24 = vld [vmem:[%s3491_s6] ss:$0 sm:$0xff] }
 0xc5f   : > { %1909 = vmatprep.subr.bf16.mxu0 %v1854_v30  ;;  %1962 = vmatprep.subr.bf16.mxu1 %v1856_v13 }
 0xc60   : > { %1910 = vmatpush1.bf16.msra.mxu0 %v1853_v19  ;;  %1963 = vmatpush1.bf16.msra.mxu1 %v1855_v36  ;;  %v2044_v19 = vld [vmem:[#allocation4 + $0x78] sm:$0xff]  ;;  %v2057_v36 = vld [vmem:[#allocation4 + $0xe0] sm:$0xff] }
 0xc61   : > { %1911 = vmatprep.subr.bf16.mxu0 %v1850_v37  ;;  %1964 = vmatprep.subr.bf16.mxu1 %v1852_v40  ;;  %v2089_v40 = vld [vmem:[#allocation4 + $0x1e0] sm:$0xff] }
 0xc64   : > { %1912 = vmatpush1.bf16.msra.mxu0 %v1849_v41  ;;  %1965 = vmatpush1.bf16.msra.mxu1 %v1851_v45  ;;  %v2100_v41 = vpack.c.bf16 %v2044_v19, %v2043_v16 }
 0xc65   : > { %1913 = vmatprep.subr.bf16.mxu0 %v1846_v46  ;;  %1966 = vmatprep.subr.bf16.mxu1 %v1848_v50  ;;  %v2107_v46 = vpack.c.bf16 %v2058_v63, %v2057_v36  ;;  %v2055_v50 = vld [vmem:[#allocation4 + $0xd0] sm:$0xff] }
 0xc68   : > { %1914 = vmatpush1.bf16.msra.mxu0 %v1845_v54  ;;  %1967 = vmatpush1.bf16.msra.mxu1 %v1847_v55 }
 0xc69   : > { %2420 = vmatprep.subr.bf16.mxu0 %v2108_v28  ;;  %2448 = vmatprep.subr.bf16.mxu1 %v2124_v62  ;;  %v2071_v62 = vld [vmem:[#allocation4 + $0x150] sm:$0xff] }
 0xcde   : > { %v1736_v7 = vpop.xlane.xlu0 %1735 }
 0xcdf   : > { %v1743_v21 = vmul.f32 0.0078125, %v1736_v7  ;;  %v2072_v7 = vld [vmem:[#allocation4 + $0x158] sm:$0xff] }
 0xce1   : > { %v1747_v26 = vadd.f32 1e-05, %v1743_v21  ;;  %v2053_v21 = vld [vmem:[#allocation4 + $0xc0] sm:$0xff] }
 0xce2   : > { %v1738_v2 = vpop.xlane.xlu1 %1737 }
 0xce3   : > { %2709 = vrsqrt.f32 %v1747_v26  ;;  %v1744_v22 = vmul.f32 0.0078125, %v1738_v2  ;;  %v2054_v26 = vld [vmem:[#allocation4 + $0xc8] sm:$0xff]  ;;  %v2085_v2 = vld [vmem:[#allocation4 + $0x1c0] sm:$0xff] }
 0xce5   : > { %v1748_v4 = vadd.f32 1e-05, %v1744_v22  ;;  %v2086_v22 = vld [vmem:[#allocation4 + $0x1c8] sm:$0xff] }
 0xce6   : > { %v1742_v5 = vpop.xlane.xlu1 %1741  ;;  %v1740_v6 = vpop.xlane.xlu0 %1739 }
 0xce7   : > { %2711 = vrsqrt.f32 %v1748_v4  ;;  %v1746_v32 = vmul.f32 0.0078125, %v1742_v5  ;;  %v1745_v8 = vmul.f32 0.0078125, %v1740_v6  ;;  %v2114_v5 = vpack.c.bf16 %v2072_v7, %v2071_v62  ;;  %v2037_v6 = vld [vmem:[#allocation4 + $0x40] sm:$0xff]  ;;  %v2030_v62 = vld [vmem:[#allocation4 + $0x8] sm:$0xff] }
 0xce9   : > { %v1750_v9 = vadd.f32 1e-05, %v1746_v32  ;;  %v1749_v11 = vadd.f32 1e-05, %v1745_v8  ;;  %v2038_v32 = vld [vmem:[#allocation4 + $0x48] sm:$0xff]  ;;  %v2105_v8 = vpack.c.bf16 %v2054_v26, %v2053_v21  ;;  %v2061_v26 = vld [vmem:[#allocation4 + $0x100] sm:$0xff] }
 0xceb   : > { %2713 = vrsqrt.f32 %v1750_v9  ;;  %v2121_v9 = vpack.c.bf16 %v2086_v22, %v2085_v2  ;;  %v2062_v2 = vld [vmem:[#allocation4 + $0x108] sm:$0xff] }
 0xcec   : > { %2715 = vrsqrt.f32 %v1749_v11  ;;  %v2069_v11 = vld [vmem:[#allocation4 + $0x140] sm:$0xff]  ;;  %v2109_v22 = vpack.c.bf16 %v2062_v2, %v2061_v26 }
 0xcf0   : > { %v2710_v12 = vpop.eup %2709 }
 0xcf1   : > { %v1755_v18 = vmul.f32 %v2710_v12, %v3264_v25  ;;  %v2070_v12 = vld [vmem:[#allocation4 + $0x148] sm:$0xff] }
 0xcf3   : > { %v1765_v13 = vmul.f32 %v2355_v24, %v1755_v18  ;;  %v2051_v18 = vld [vmem:[#allocation4 + $0xb0] sm:$0xff] }
 0xcf4   : > { %v2712_v27 = vpop.eup %2711 }
 0xcf5   : > { %v1756_v30 = vmul.f32 %v2712_v27, %v3269_v17  ;;  %v1775_v37 = vadd.f32 %v2356_v31, %v1765_v13  ;;  %v2090_v17 = vld [vmem:[#allocation4 + $0x1e8] sm:$0xff]  ;;  %v2083_v27 = vld [vmem:[#allocation4 + $0x1b0] sm:$0xff]  ;;  %v2097_v13 = vpack.c.bf16 %v2038_v32, %v2037_v6  ;;  %v1889_v6 = vsub.s32 2, %v2987_v23  ;;  %v1877_v32 = vld [vmem:[%s3494_s9] sm:$0xf] }
 0xcf6   : > { %v2123_v47 = vpack.c.bf16 %v2090_v17, %v2089_v40  ;;  %v2082_v40 = vld [vmem:[#allocation4 + $0x1a8] sm:$0xff]  ;;  %v2033_v17 = vld [vmem:[#allocation4 + $0x20] sm:$0xff] }
 0xcf7   : > { %v1766_v3 = vmul.f32 %v2355_v24, %v1756_v30  ;;  %v2084_v30 = vld [vmem:[#allocation4 + $0x1b8] sm:$0xff] }
 0xcf8   : > { %v2714_v33 = vpop.eup %2713  ;;  %v2120_v19 = vpack.c.bf16 %v2084_v30, %v2083_v27 }
 0xcf9   : > { %v2716_v25 = vpop.eup %2715  ;;  %v1776_v38 = vadd.f32 %v2356_v31, %v1766_v3  ;;  %v1758_v39 = vmul.f32 %v2714_v33, %v3272_v20  ;;  %v2056_v20 = vld [vmem:[#allocation4 + $0xd8] sm:$0xff]  ;;  %v2035_v3 = vld [vmem:[#allocation4 + $0x30] sm:$0xff] }
 0xcfa   : > { %v1757_v0 = vmul.f32 %v2716_v25, %v3277_v29  ;;  %v2099_v29 = vpack.c.bf16 %v2042_v44, %v2041_v43  ;;  %v2106_v28 = vpack.c.bf16 %v2056_v20, %v2055_v50  ;;  %v2036_v33 = vld [vmem:[#allocation4 + $0x38] sm:$0xff]  ;;  %v2112_v25 = vpack.c.bf16 %v2068_v35, %v2067_v34  ;;  %v2047_v44 = vld [vmem:[#allocation4 + $0x90] sm:$0xff] }
 0xcfb   : > { %v1779_v15 = vpack.c.bf16 %v1776_v38, %v1775_v37  ;;  %v1768_v1 = vmul.f32 %v2355_v24, %v1758_v39  ;;  %v2096_v36 = vpack.c.bf16 %v2036_v33, %v2035_v3  ;;  %v2049_v37 = vld [vmem:[#allocation4 + $0xa0] sm:$0xff]  ;;  %v2050_v38 = vld [vmem:[#allocation4 + $0xa8] sm:$0xff]  ;;  %v2032_v50 = vld [vmem:[#allocation4 + $0x18] sm:$0xff] }
 0xcfc   : > { %v1767_v45 = vmul.f32 %v2355_v24, %v1757_v0  ;;  %v2052_v24 = vld [vmem:[#allocation4 + $0xb8] sm:$0xff]  ;;  %v2081_v39 = vld [vmem:[#allocation4 + $0x1a0] sm:$0xff]  ;;  %v2103_v63 = vpack.c.bf16 %v2050_v38, %v2049_v37  ;;  %v2034_v0 = vld [vmem:[#allocation4 + $0x28] sm:$0xff]  ;;  %v2094_v52 = vpack.c.bf16 %v2032_v50, %v2031_v49 }
 0xcfd   : > { %1932 = vmatmul.mubr.bf16.vlgmr.msra.gmra.mxu0 %v1779_v15  ;;  %1985 = vmatmul.mubr.bf16.vlgmr.msra.gmra.mxu1 %v1779_v15  ;;  %v1778_v55 = vadd.f32 %v2356_v31, %v1768_v1  ;;  %v2104_v16 = vpack.c.bf16 %v2052_v24, %v2051_v18  ;;  %v2119_v15 = vpack.c.bf16 %v2082_v40, %v2081_v39 }
 0xcfe   : > { %1941 = vmatprep.mubr.bf16.mxu0 %v2795_v60  ;;  %1994 = vmatprep.mubr.bf16.mxu1 %v2795_v60  ;;  %v1777_v54 = vadd.f32 %v2356_v31, %v1767_v45  ;;  %v2098_v60 = vpack.c.bf16 %v2040_v61, %v2039_v59  ;;  %v2113_v31 = vpack.c.bf16 %v2070_v12, %v2069_v11  ;;  %v2048_v45 = vld [vmem:[#allocation4 + $0x98] sm:$0xff]  ;;  %v2077_v59 = vld [vmem:[#allocation4 + $0x180] sm:$0xff] }
 0xcff   : > { %2421 = vmatpush3.bf16.msra.mxu0 %v2100_v41  ;;  %2449 = vmatpush3.bf16.msra.mxu1 %v2116_v42  ;;  %v2095_v1 = vpack.c.bf16 %v2034_v0, %v2033_v17  ;;  %v2065_v41 = vld [vmem:[#allocation4 + $0x120] sm:$0xff]  ;;  %v2066_v42 = vld [vmem:[#allocation4 + $0x128] sm:$0xff]  ;;  %v1890_v24 = vrot.slane %v1877_v32, %v1889_v6 }
 0xd00   : > { %2422 = vmatprep.subr.bf16.mxu0 %v2107_v46  ;;  %2450 = vmatprep.subr.bf16.mxu1 %v2123_v47  ;;  %v1780_v4 = vpack.c.bf16 %v1778_v55, %v1777_v54  ;;  %v2111_v43 = vpack.c.bf16 %v2066_v42, %v2065_v41  ;;  %v2079_v46 = vld [vmem:[#allocation4 + $0x190] sm:$0xff]  ;;  %v2102_v47 = vpack.c.bf16 %v2048_v45, %v2047_v44  ;;  %v2045_v55 = vld [vmem:[#allocation4 + $0x80] sm:$0xff] }
 0xd01   : > { %v2118_v20 = vpack.c.bf16 %v2080_v48, %v2079_v46 }
 0xd03   : > { %2423 = vmatpush3.bf16.msra.mxu0 %v2099_v29  ;;  %2451 = vmatpush3.bf16.msra.mxu1 %v2115_v58  ;;  %v2064_v29 = vld [vmem:[#allocation4 + $0x118] sm:$0xff]  ;;  %v2046_v58 = vld [vmem:[#allocation4 + $0x88] sm:$0xff] }
 0xd04   : > { %2424 = vmatprep.subr.bf16.mxu0 %v2106_v28  ;;  %2452 = vmatprep.subr.bf16.mxu1 %v2122_v10  ;;  %v2110_v54 = vpack.c.bf16 %v2064_v29, %v2063_v53  ;;  %v2101_v61 = vpack.c.bf16 %v2046_v58, %v2045_v55  ;;  %v2078_v28 = vld [vmem:[#allocation4 + $0x188] sm:$0xff]  ;;  %v2029_v10 = vld [vmem:[#allocation4] sm:$0xff] }
 0xd05   : > { %1942 = vmatmul.mubr.bf16.gmra.mxu0 %v1780_v4  ;;  %1995 = vmatmul.mubr.bf16.gmra.mxu1 %v1780_v4  ;;  %v2117_v7 = vpack.c.bf16 %v2078_v28, %v2077_v59  ;;  %v2093_v21 = vpack.c.bf16 %v2030_v62, %v2029_v10  ;;  %v1885_v4 = vsub.s32 1, %v2987_v23 }
 0xd07   : > { %2425 = vmatpush3.bf16.msra.mxu0 %v2098_v60  ;;  %2453 = vmatpush3.bf16.msra.mxu1 %v2114_v5  ;;  %v1893_v60 = vsub.s32 3, %v2987_v23  ;;  %v1881_v5 = vsub.s32 0, %v2987_v23  ;;  %v1886_v11 = vrot.slane %v1877_v32, %v1885_v4 }
 0xd08   : > { %2426 = vmatprep.subr.bf16.mxu0 %v2105_v8  ;;  %2454 = vmatprep.subr.bf16.mxu1 %v2121_v9 }
 0xd09   : > { %v1894_v12 = vrot.slane %v1877_v32, %v1893_v60  ;;  %v1882_v18 = vrot.slane %v1877_v32, %v1881_v5 }
 0xd0b   : > { %2427 = vmatpush3.bf16.msra.mxu0 %v2097_v13  ;;  %2455 = vmatpush3.bf16.msra.mxu1 %v2113_v31 }
 0xd0c   : > { %2428 = vmatprep.subr.bf16.mxu0 %v2104_v16  ;;  %2456 = vmatprep.subr.bf16.mxu1 %v2120_v19 }
 0xd0f   : > { %2429 = vmatpush3.bf16.msra.mxu0 %v2096_v36  ;;  %2457 = vmatpush3.bf16.msra.mxu1 %v2112_v25 }
 0xd10   : > { %2430 = vmatprep.subr.bf16.mxu0 %v2103_v63  ;;  %2458 = vmatprep.subr.bf16.mxu1 %v2119_v15 }
 0xd13   : > { %2431 = vmatpush3.bf16.msra.mxu0 %v2095_v1  ;;  %2459 = vmatpush3.bf16.msra.mxu1 %v2111_v43 }
 0xd14   : > { %2432 = vmatprep.subr.bf16.mxu0 %v2102_v47  ;;  %2460 = vmatprep.subr.bf16.mxu1 %v2118_v20 }
 0xd17   : > { %2433 = vmatpush3.bf16.msra.mxu0 %v2094_v52  ;;  %2461 = vmatpush3.bf16.msra.mxu1 %v2110_v54 }
 0xd18   : > { %2434 = vmatprep.subr.bf16.mxu0 %v2101_v61  ;;  %2462 = vmatprep.subr.bf16.mxu1 %v2117_v7 }
 0xd1b   : > { %2435 = vmatpush3.bf16.msra.mxu0 %v2093_v21  ;;  %2463 = vmatpush3.bf16.msra.mxu1 %v2109_v22 }
 0xdbd   : > { %v1933_v8 = vpop.f32.mrf.mxu0  ;;  %v1986_v9 = vpop.f32.mrf.mxu1 }
 0xdbe   : > { %v1934_v34 = vadd.f32 %v1933_v8, %v1882_v18  ;;  %v1987_v23 = vadd.f32 %v1986_v9, %v1890_v24 }
 0xdbf   : > { %v1935_v27 = vpop.f32.mrf.mxu0  ;;  %v1988_v30 = vpop.f32.mrf.mxu1 }
 0xdc0   : > { %v1936_v3 = vadd.f32 %v1935_v27, %v1886_v11  ;;  %v1989_v16 = vadd.f32 %v1988_v30, %v1894_v12  ;;  %v2005_v41 = vmax.f32 %v1934_v34, 0.0  ;;  %v2007_v42 = vmax.f32 %v1987_v23, 0.0 }
 0xdc1   : > { %v1937_v13 = vpop.f32.mrf.mxu0  ;;  %v1990_v31 = vpop.f32.mrf.mxu1 }
 0xdc2   : > { %v1938_v19 = vadd.f32 %v1937_v13, %v1882_v18  ;;  %v1991_v33 = vadd.f32 %v1990_v31, %v1890_v24  ;;  %v2006_v17 = vmax.f32 %v1936_v3, 0.0  ;;  %v2008_v0 = vmax.f32 %v1989_v16, 0.0 }
 0xdc3   : > { %v1939_v35 = vpop.f32.mrf.mxu0  ;;  %v1992_v36 = vpop.f32.mrf.mxu1 }
 0xdc4   : > { %v1940_v25 = vadd.f32 %v1939_v35, %v1886_v11  ;;  %v1993_v37 = vadd.f32 %v1992_v36, %v1894_v12  ;;  %v2009_v38 = vmax.f32 %v1938_v19, 0.0  ;;  %v2011_v39 = vmax.f32 %v1991_v33, 0.0 }
 0xdc5   : > { %v1943_v63 = vpop.f32.mrf.mxu0  ;;  %v1996_v40 = vpop.f32.mrf.mxu1 }
 0xdc6   : > { %v2010_v15 = vmax.f32 %v1940_v25, 0.0  ;;  %v2012_v1 = vmax.f32 %v1993_v37, 0.0  ;;  %v2021_v47 = vpack.c.bf16 %v2009_v38, %v2005_v41  ;;  %v2023_v48 = vpack.c.bf16 %v2011_v39, %v2007_v42 }
 0xdc7   : > { %v1945_v43 = vpop.f32.mrf.mxu0  ;;  %v1998_v44 = vpop.f32.mrf.mxu1  ;;  %v1944_v54 = vadd.f32 %v1943_v63, %v1882_v18  ;;  %v1997_v55 = vadd.f32 %v1996_v40, %v1890_v24 }
 0xdc8   : > { %v2022_v45 = vpack.c.bf16 %v2010_v15, %v2006_v17  ;;  %v2024_v46 = vpack.c.bf16 %v2012_v1, %v2008_v0  ;;  %v1946_v49 = vadd.f32 %v1945_v43, %v1886_v11  ;;  %v1999_v52 = vadd.f32 %v1998_v44, %v1894_v12 }
 0xdc9   : > { %v1947_v50 = vpop.f32.mrf.mxu0  ;;  %v2000_v20 = vpop.f32.mrf.mxu1  ;;  %v2013_v22 = vmax.f32 %v1944_v54, 0.0  ;;  %v2015_v4 = vmax.f32 %v1997_v55, 0.0 }
 0xdca   : > { %v1948_v53 = vadd.f32 %v1947_v50, %v1882_v18  ;;  %v2001_v29 = vadd.f32 %v2000_v20, %v1890_v24  ;;  %2164 = vmatprep.mubr.bf16.mxu0 %v2022_v45  ;;  %2213 = vmatprep.mubr.bf16.mxu1 %v2024_v46  ;;  %v2014_v7 = vmax.f32 %v1946_v49, 0.0  ;;  %v2016_v21 = vmax.f32 %v1999_v52, 0.0 }
 0xdcb   : > { %v1949_v58 = vpop.f32.mrf.mxu0  ;;  %v2002_v59 = vpop.f32.mrf.mxu1  ;;  %2165 = vmatmul.mubr.bf16.vlgmr.msra.gmra.mxu0 %v2021_v47  ;;  %2214 = vmatmul.mubr.bf16.vlgmr.msra.gmra.mxu1 %v2023_v48 }
 0xdcc   : > { %v1950_v61 = vadd.f32 %v1949_v58, %v1886_v11  ;;  %v2003_v28 = vadd.f32 %v2002_v59, %v1894_v12  ;;  %v2017_v10 = vmax.f32 %v1948_v53, 0.0  ;;  %v2019_v62 = vmax.f32 %v2001_v29, 0.0  ;;  %v2357_v11 = vld [vmem:[%s3496_s11] ss:$0 sm:$0xff] }
 0xdce   : > { %v2018_v26 = vmax.f32 %v1950_v61, 0.0  ;;  %v2020_v2 = vmax.f32 %v2003_v28, 0.0  ;;  %v2025_v6 = vpack.c.bf16 %v2017_v10, %v2013_v22  ;;  %v2027_v32 = vpack.c.bf16 %v2019_v62, %v2015_v4 }
 0xdd0   : > { %v2026_v60 = vpack.c.bf16 %v2018_v26, %v2014_v7  ;;  %v2028_v5 = vpack.c.bf16 %v2020_v2, %v2016_v21 }
 0xdd2   : > { %2172 = vmatprep.mubr.bf16.mxu0 %v2026_v60  ;;  %2221 = vmatprep.mubr.bf16.mxu1 %v2028_v5 }
 0xdd3   : > { %2173 = vmatmul.mubr.bf16.gmra.mxu0 %v2025_v6  ;;  %2222 = vmatmul.mubr.bf16.gmra.mxu1 %v2027_v32 }
 0xe8b   : > { %v2436_v8 = vpop.f32.mrf.mxu0  ;;  %v2464_v9 = vpop.f32.mrf.mxu1 }
 0xe8d   : > { %v2437_v12 = vpop.f32.mrf.mxu0  ;;  %v2465_v18 = vpop.f32.mrf.mxu1 }
 0xe8e   : > { %v2438_v24 = vadd.f32 %v2437_v12, %v2436_v8  ;;  %v2466_v31 = vadd.f32 %v2465_v18, %v2464_v9 }
 0xe8f   : > { %v2439_v27 = vpop.f32.mrf.mxu0  ;;  %v2467_v30 = vpop.f32.mrf.mxu1 }
 0xe90   : > { %v2167_v13 = vadd.f32 %v2438_v24, %v2357_v11 }
 0xe91   : > { %v2440_v3 = vpop.f32.mrf.mxu0  ;;  %v2468_v16 = vpop.f32.mrf.mxu1 }
 0xe92   : > { %v2216_v19 = vadd.f32 %v2466_v31, %v2167_v13  ;;  %v2441_v33 = vadd.f32 %v2440_v3, %v2439_v27  ;;  %v2469_v25 = vadd.f32 %v2468_v16, %v2467_v30 }
 0xe93   : > { %v2442_v34 = vpop.f32.mrf.mxu0  ;;  %v2470_v23 = vpop.f32.mrf.mxu1 }
 0xe94   : > { %v2230_v35 = vadd.f32 %v2216_v19, %v3225_v51  ;;  %v2170_v36 = vadd.f32 %v2441_v33, %v2357_v11 }
 0xe95   : > { %v2443_v37 = vpop.f32.mrf.mxu0  ;;  %v2471_v38 = vpop.f32.mrf.mxu1 }
 0xe96   : > { %2234 = vst [vmem:[%s443_s30] sm:$0xff] %v2230_v35  ;;  %v2219_v39 = vadd.f32 %v2469_v25, %v2170_v36  ;;  %v2444_v63 = vadd.f32 %v2443_v37, %v2442_v34  ;;  %v2472_v1 = vadd.f32 %v2471_v38, %v2470_v23 }
 0xe97   : > { %v2445_v40 = vpop.f32.mrf.mxu0  ;;  %v2473_v17 = vpop.f32.mrf.mxu1 }
 0xe98   : > { %v2231_v0 = vadd.f32 %v2219_v39, %v3232_v57  ;;  %v2175_v15 = vadd.f32 %v2444_v63, %v2357_v11 }
 0xe99   : > { %v2446_v41 = vpop.f32.mrf.mxu0  ;;  %v2474_v42 = vpop.f32.mrf.mxu1 }
 0xe9a   : > { %2235 = vst [vmem:[%s443_s30 + $0x8] sm:$0xff] %v2231_v0  ;;  %v2224_v43 = vadd.f32 %v2472_v1, %v2175_v15  ;;  %v2447_v44 = vadd.f32 %v2446_v41, %v2445_v40  ;;  %v2475_v46 = vadd.f32 %v2474_v42, %v2473_v17 }
 0xe9c   : > { %v2232_v51 = vadd.f32 %v2224_v43, %v3236_v14  ;;  %v2178_v45 = vadd.f32 %v2447_v44, %v2357_v11 }
 0xe9e   : > { %2236 = vst [vmem:[%s443_s30 + $0x10] sm:$0xff] %v2232_v51  ;;  %v2227_v47 = vadd.f32 %v2475_v46, %v2178_v45 }
 0xea0   : > { %v2233_v48 = vadd.f32 %v2227_v47, %v3230_v56 }
 0xea2   : > { %2237 = vst [vmem:[%s443_s30 + $0x18] sm:$0xff] %v2233_v48 }
 0xea3 PF: > { %s24_s21 = sadd.s32 1, %s2787_s21  }
 0xea4   : > { %p21_p2 = scmp.ge.s32.totalorder %s24_s21, 4  }
 0xea6   :  { %23 = sbr.rel (!%p21_p2) target bundleno = 2 (0x2), region = 107 }
 0xeab   :  { %2259 = vsyncpa [#allocation3], 1 }
 0xeac   :  { %2261 = vsyncpa [#allocation3 + $0x1], 1 }
 0xead   :  { %2262 = vsyncpa [#allocation5], 1 }

// kernel: gpt_forward.4
= control target key start
LH: loop header
LB: loop body
LE: loop exit
PB: predicated region body
PF: predicated region fallthrough
CT: control target
= control target key end

     0   :  { %s2717_s21 = smov 0   ;;  %s3629_s0 = inlined_call_operand.vmem [shape: f32[2,32,128], index: 0, kind: input, shape index: {}]   ;;  %s3630_s1 = inlined_call_operand.vmem [shape: f32[1,128], index: 1, kind: input, shape index: {}]   ;;  %s3631_s2 = inlined_call_operand.vmem [shape: f32[1,128], index: 2, kind: input, shape index: {}]   ;;  %s3632_s3 = inlined_call_operand.vmem [shape: f32[128,384], index: 3, kind: input, shape index: {}]   ;;  %s3633_s4 = inlined_call_operand.vmem [shape: f32[128,128], index: 4, kind: input, shape index: {}]   ;;  %s3634_s5 = inlined_call_operand.vmem [shape: f32[1,128], index: 5, kind: input, shape index: {}]   ;;  %s3635_s6 = inlined_call_operand.vmem [shape: f32[1,128], index: 6, kind: input, shape index: {}]   ;;  %s3636_s7 = inlined_call_operand.vmem [shape: f32[1,128], index: 7, kind: input, shape index: {}]   ;;  %s3637_s8 = inlined_call_operand.vmem [shape: f32[128,512], index: 8, kind: input, shape index: {}]   ;;  %s3638_s9 = inlined_call_operand.vmem [shape: f32[1,512], index: 9, kind: input, shape index: {}]   ;;  %s3639_s10 = inlined_call_operand.vmem [shape: f32[512,128], index: 10, kind: input, shape index: {}]   ;;  %s3640_s11 = inlined_call_operand.vmem [shape: f32[1,128], index: 11, kind: input, shape index: {}]   ;;  %s3641_s12 = inlined_call_operand.vmem [shape: f32[2,32,128], index: 12, kind: output, shape index: {}]  }
   0x1 LB: > { %s2263_s22 = sadd.s32 4294967295, %s2646_s21   ;;  %p2267_p0 = scmp.ge.s32.totalorder %s2646_s21, 1  ;;  %s2646_s21 = sphi %s2717_s21, %s22_s21  }
   0x2   : > { %p362_p1 = scmp.lt.s32.totalorder %s2646_s21, 3 }
   0x4   : > { %p363_p2 = pnand %p2267_p0, %p362_p1 }
   0x5   : > { %p404_p3 = scmp.lt.s32.totalorder (!%p363_p2), %s2263_s22, 1  ;;  %s2649_s29 = smov (!%p363_p2), 96  }
   0x6   : > { %366 = sbr.rel (%p363_p2) target bundleno = 3713 (0xe81), region = 68  ;;  %s2650_s20 = smov (!%p363_p2), 64  }
   0x7   : > { %s2651_s24 = smov (!%p363_p2), 32  }
   0xb   : > { %s3643_s22 = smov (!%p404_p3, %s2263_s22), 1  ;;  %v531_v4 = vld [vmem:[%s3632_s3 + $0x158] sm:$0xff]  ;;  %v534_v5 = vld [vmem:[%s3632_s3 + $0x170] sm:$0xff]  ;;  %v533_v8 = vld [vmem:[%s3632_s3 + $0x168] sm:$0xff]  ;;  %v2648_v60 = vmov 0   ;;  %vm701_vm0 = vcmask 261120  }
   0xc   : > { %s2304_s23 = sshll.u32 %s3643_s22, 5  ;;  %v530_v6 = vld [vmem:[%s3632_s3 + $0x150] sm:$0xff]  ;;  %v558_v7 = vpack.c.bf16 %v534_v5, %v531_v4  ;;  %v525_v26 = vld [vmem:[%s3632_s3 + $0x128] sm:$0xff]  ;;  %v528_v27 = vld [vmem:[%s3632_s3 + $0x140] sm:$0xff]  ;;  %592 = vmatprep.mubr.bf16.mxu0 %v2648_v60 }
   0xd   : > { %s2733_s26 = scalar_lea.vmem %s3629_s0, %s2304_s23  ;;  %v557_v9 = vpack.c.bf16 %v533_v8, %v530_v6  ;;  %v532_v28 = vld [vmem:[%s3632_s3 + $0x160] sm:$0xff]  ;;  %v555_v29 = vpack.c.bf16 %v528_v27, %v525_v26  ;;  %v535_v30 = vld [vmem:[%s3632_s3 + $0x178] sm:$0xff]  ;;  %v522_v36 = vld [vmem:[%s3632_s3 + $0x110] sm:$0xff]  ;;  %s413_s16 = scalar_lea.vmem %s3641_s12, %s2304_s23 }
   0xe   : > { %v415_v0 = vld [vmem:[%s2733_s26] sm:$0xff]  ;;  %v417_v1 = vld [vmem:[%s2733_s26 + $0x10] sm:$0xff]  ;;  %v416_v2 = vld [vmem:[%s2733_s26 + $0x8] sm:$0xff]  ;;  %560 = vmatprep.subr.bf16.mxu0 %v558_v7  ;;  %v559_v33 = vpack.c.bf16 %v535_v30, %v532_v28 }
   0xf   : > { %421 = vadd.xlane.f32.xlu0 %v415_v0  ;;  %425 = vadd.xlane.f32.xlu1 %v417_v1  ;;  %v418_v3 = vld [vmem:[%s2733_s26 + $0x18] sm:$0xff]  ;;  %v524_v31 = vld [vmem:[%s3632_s3 + $0x120] sm:$0xff]  ;;  %v526_v37 = vld [vmem:[%s3632_s3 + $0x130] sm:$0xff] }
  0x10   : > { %561 = vmatpush1.bf16.msra.mxu0 %v557_v9  ;;  %v527_v32 = vld [vmem:[%s3632_s3 + $0x138] sm:$0xff]  ;;  %2420 = vmatprep.subr.bf16.mxu1 %v559_v33  ;;  %v529_v39 = vld [vmem:[%s3632_s3 + $0x148] sm:$0xff]  ;;  %v518_v40 = vld [vmem:[%s3632_s3 + $0xf0] sm:$0xff] }
  0x11   : > { %v554_v34 = vpack.c.bf16 %v527_v32, %v524_v31  ;;  %562 = vmatprep.subr.bf16.mxu0 %v555_v29  ;;  %2421 = vmatpush3.bf16.msra.mxu1 %v559_v33  ;;  %v519_v35 = vld [vmem:[%s3632_s3 + $0xf8] sm:$0xff]  ;;  %v521_v41 = vld [vmem:[%s3632_s3 + $0x108] sm:$0xff]  ;;  %v556_v42 = vpack.c.bf16 %v529_v39, %v526_v37  ;;  %v516_v45 = vld [vmem:[%s3632_s3 + $0xe0] sm:$0xff] }
  0x12   : > { %v552_v38 = vpack.c.bf16 %v522_v36, %v519_v35  ;;  %v551_v43 = vpack.c.bf16 %v521_v41, %v518_v40  ;;  %v513_v44 = vld [vmem:[%s3632_s3 + $0xc8] sm:$0xff]  ;;  %v520_v46 = vld [vmem:[%s3632_s3 + $0x100] sm:$0xff]  ;;  %v523_v48 = vld [vmem:[%s3632_s3 + $0x118] sm:$0xff] }
  0x13   : > { %423 = vadd.xlane.f32.xlu0 %v416_v2  ;;  %427 = vadd.xlane.f32.xlu1 %v418_v3  ;;  %v549_v47 = vpack.c.bf16 %v516_v45, %v513_v44  ;;  %v512_v49 = vld [vmem:[%s3632_s3 + $0xc0] sm:$0xff]  ;;  %v515_v50 = vld [vmem:[%s3632_s3 + $0xd8] sm:$0xff]  ;;  %v553_v51 = vpack.c.bf16 %v523_v48, %v520_v46  ;;  %v510_v54 = vld [vmem:[%s3632_s3 + $0xb0] sm:$0xff] }
  0x14   : > { %563 = vmatpush1.bf16.msra.mxu0 %v554_v34  ;;  %2422 = vmatprep.subr.bf16.mxu1 %v556_v42  ;;  %v548_v52 = vpack.c.bf16 %v515_v50, %v512_v49  ;;  %v507_v53 = vld [vmem:[%s3632_s3 + $0x98] sm:$0xff]  ;;  %v514_v55 = vld [vmem:[%s3632_s3 + $0xd0] sm:$0xff]  ;;  %v517_v57 = vld [vmem:[%s3632_s3 + $0xe8] sm:$0xff] }
  0x15   : > { %564 = vmatprep.subr.bf16.mxu0 %v552_v38  ;;  %2423 = vmatpush3.bf16.msra.mxu1 %v556_v42  ;;  %v546_v56 = vpack.c.bf16 %v510_v54, %v507_v53  ;;  %v506_v58 = vld [vmem:[%s3632_s3 + $0x90] sm:$0xff]  ;;  %v509_v59 = vld [vmem:[%s3632_s3 + $0xa8] sm:$0xff]  ;;  %v550_v61 = vpack.c.bf16 %v517_v57, %v514_v55  ;;  %v500_v4 = vld [vmem:[%s3632_s3 + $0x60] sm:$0xff] }
  0x16   : > { %2424 = vmatprep.subr.bf16.mxu1 %v553_v51  ;;  %v545_v62 = vpack.c.bf16 %v509_v59, %v506_v58  ;;  %v501_v63 = vld [vmem:[%s3632_s3 + $0x68] sm:$0xff]  ;;  %v503_v5 = vld [vmem:[%s3632_s3 + $0x78] sm:$0xff]  ;;  %v498_v9 = vld [vmem:[%s3632_s3 + $0x50] sm:$0xff] }
  0x17   : > { %v542_v7 = vpack.c.bf16 %v503_v5, %v500_v4  ;;  %v495_v8 = vld [vmem:[%s3632_s3 + $0x38] sm:$0xff]  ;;  %v488_v26 = vld [vmem:[%s3632_s3] sm:$0xff]  ;;  %v490_v30 = vld [vmem:[%s3632_s3 + $0x10] sm:$0xff] }
  0x18   : > { %565 = vmatpush1.bf16.msra.mxu0 %v551_v43  ;;  %v491_v27 = vld [vmem:[%s3632_s3 + $0x18] sm:$0xff]  ;;  %v493_v31 = vld [vmem:[%s3632_s3 + $0x28] sm:$0xff] }
  0x19   : > { %566 = vmatprep.subr.bf16.mxu0 %v549_v47  ;;  %2425 = vmatpush3.bf16.msra.mxu1 %v553_v51  ;;  %v536_v29 = vpack.c.bf16 %v491_v27, %v488_v26  ;;  %v538_v32 = vpack.c.bf16 %v493_v31, %v490_v30  ;;  %v2272_v47 = vld [vmem:[%s3630_s1] ss:$0 sm:$0xff] }
  0x1a   : > { %2426 = vmatprep.subr.bf16.mxu1 %v550_v61 }
  0x1c   : > { %567 = vmatpush1.bf16.msra.mxu0 %v548_v52  ;;  %v2273_v52 = vld [vmem:[%s3631_s2] ss:$0 sm:$0xff] }
  0x1d   : > { %568 = vmatprep.subr.bf16.mxu0 %v546_v56  ;;  %2427 = vmatpush3.bf16.msra.mxu1 %v550_v61 }
  0x20   : > { %569 = vmatpush1.bf16.msra.mxu0 %v545_v62 }
  0x98   : > { %v422_v10 = vpop.xlane.xlu0 %421  ;;  %v426_v11 = vpop.xlane.xlu1 %425 }
  0x99   : > { %v430_v12 = vmul.f32 0.0078125, %v422_v10  ;;  %v432_v13 = vmul.f32 0.0078125, %v426_v11  ;;  %v502_v10 = vld [vmem:[%s3632_s3 + $0x70] sm:$0xff]  ;;  %v540_v11 = vpack.c.bf16 %v498_v9, %v495_v8 }
  0x9b   : > { %v2751_v14 = vsub.f32 %v415_v0, %v430_v12  ;;  %v2753_v15 = vsub.f32 %v417_v1, %v432_v13  ;;  %v504_v0 = vld [vmem:[%s3632_s3 + $0x80] sm:$0xff]  ;;  %v505_v12 = vld [vmem:[%s3632_s3 + $0x88] sm:$0xff]  ;;  %v494_v13 = vld [vmem:[%s3632_s3 + $0x30] sm:$0xff] }
  0x9c   : > { %v424_v16 = vpop.xlane.xlu0 %423  ;;  %v428_v17 = vpop.xlane.xlu1 %427  ;;  %v508_v1 = vld [vmem:[%s3632_s3 + $0xa0] sm:$0xff] }
  0x9d   : > { %v431_v18 = vmul.f32 0.0078125, %v424_v16  ;;  %v438_v19 = vmul.f32 %v2751_v14, %v2751_v14  ;;  %v433_v20 = vmul.f32 0.0078125, %v428_v17  ;;  %v440_v23 = vmul.f32 %v2753_v15, %v2753_v15  ;;  %v497_v16 = vld [vmem:[%s3632_s3 + $0x48] sm:$0xff] }
  0x9e   : > { %v544_v17 = vpack.c.bf16 %v505_v12, %v502_v10 }
  0x9f   : > { %v2757_v21 = vsub.f32 %v416_v2, %v431_v18  ;;  %442 = vadd.xlane.f32.xlu0 %v438_v19  ;;  %v2759_v22 = vsub.f32 %v418_v3, %v433_v20  ;;  %v543_v2 = vpack.c.bf16 %v504_v0, %v501_v63  ;;  %v511_v3 = vld [vmem:[%s3632_s3 + $0xb8] sm:$0xff]  ;;  %v489_v18 = vld [vmem:[%s3632_s3 + $0x8] sm:$0xff]  ;;  %v492_v19 = vld [vmem:[%s3632_s3 + $0x20] sm:$0xff] }
  0xa0   : > { %v547_v6 = vpack.c.bf16 %v511_v3, %v508_v1  ;;  %v496_v20 = vld [vmem:[%s3632_s3 + $0x40] sm:$0xff] }
  0xa1   : > { %v439_v24 = vmul.f32 %v2757_v21, %v2757_v21  ;;  %v441_v25 = vmul.f32 %v2759_v22, %v2759_v22  ;;  %570 = vmatprep.subr.bf16.mxu0 %v543_v2 }
  0xa2   : > { %2428 = vmatprep.subr.bf16.mxu1 %v547_v6  ;;  %571 = vmatpush1.bf16.msra.mxu0 %v542_v7 }
  0xa3   : > { %446 = vadd.xlane.f32.xlu0 %v440_v23  ;;  %444 = vadd.xlane.f32.xlu1 %v439_v24  ;;  %v499_v23 = vld [vmem:[%s3632_s3 + $0x58] sm:$0xff]  ;;  %v539_v24 = vpack.c.bf16 %v497_v16, %v494_v13 }
  0xa4   : > { %2429 = vmatpush3.bf16.msra.mxu1 %v547_v6  ;;  %572 = vmatprep.subr.bf16.mxu0 %v540_v11  ;;  %v541_v28 = vpack.c.bf16 %v499_v23, %v496_v20  ;;  %v662_v20 = vlaneseq }
  0xa5   : > { %2430 = vmatprep.subr.bf16.mxu1 %v544_v17 }
  0xa6   : > { %573 = vmatpush1.bf16.msra.mxu0 %v539_v24  ;;  %v2939_v23 = vshrl.u32 %v662_v20, 7 }
  0xa7   : > { %448 = vadd.xlane.f32.xlu1 %v441_v25  ;;  %v537_v25 = vpack.c.bf16 %v492_v19, %v489_v18 }
  0xa8   : > { %2431 = vmatpush3.bf16.msra.mxu1 %v544_v17  ;;  %v2944_v26 = vadd.s32 16, %v2939_v23 }
  0xa9   : > { %574 = vmatprep.subr.bf16.mxu0 %v537_v25  ;;  %2432 = vmatprep.subr.bf16.mxu1 %v541_v28  ;;  %v2941_v25 = vand.u32 127, %v662_v20 }
  0xaa   : > { %575 = vmatpush1.bf16.msra.mxu0 %v536_v29 }
  0xab   : > { %vm669_vm1 = vcmp.le.s32.totalorder %v2941_v25, %v2939_v23  ;;  %vm671_vm2 = vcmp.le.s32.totalorder %v2941_v25, %v2944_v26 }
  0xac   : > { %2433 = vmatpush3.bf16.msra.mxu1 %v541_v28  ;;  %v2949_v28 = vadd.s32 8, %v2939_v23 }
  0xad   : > { %2434 = vmatprep.subr.bf16.mxu1 %v538_v32 }
  0xae   : > { %vm670_vm3 = vcmp.le.s32.totalorder %v2941_v25, %v2949_v28 }
  0xb0   : > { %2435 = vmatpush3.bf16.msra.mxu1 %v538_v32  ;;  %v2954_v32 = vadd.s32 24, %v2939_v23 }
  0xb2   : > { %vm672_vm4 = vcmp.le.s32.totalorder %v2941_v25, %v2954_v32 }
 0x128   : > { %v443_v33 = vpop.xlane.xlu0 %442 }
 0x129   : > { %v450_v34 = vmul.f32 0.0078125, %v443_v33 }
 0x12b   : > { %v454_v35 = vadd.f32 1e-05, %v450_v34 }
 0x12c   : > { %v445_v36 = vpop.xlane.xlu1 %444  ;;  %v447_v37 = vpop.xlane.xlu0 %446 }
 0x12d   : > { %2556 = vrsqrt.f32 %v454_v35  ;;  %v451_v38 = vmul.f32 0.0078125, %v445_v36  ;;  %v452_v39 = vmul.f32 0.0078125, %v447_v37 }
 0x12f   : > { %v455_v40 = vadd.f32 1e-05, %v451_v38  ;;  %v456_v41 = vadd.f32 1e-05, %v452_v39 }
 0x130   : > { %v449_v42 = vpop.xlane.xlu1 %448 }
 0x131   : > { %2558 = vrsqrt.f32 %v455_v40  ;;  %v453_v43 = vmul.f32 0.0078125, %v449_v42 }
 0x132   : > { %2560 = vrsqrt.f32 %v456_v41 }
 0x133   : > { %v457_v44 = vadd.f32 1e-05, %v453_v43 }
 0x135   : > { %2562 = vrsqrt.f32 %v457_v44 }
 0x13a   : > { %v2557_v45 = vpop.eup %2556 }
 0x13b   : > { %v462_v46 = vmul.f32 %v2557_v45, %v2751_v14 }
 0x13d   : > { %v472_v51 = vmul.f32 %v2272_v47, %v462_v46 }
 0x13e   : > { %v2559_v48 = vpop.eup %2558 }
 0x13f   : > { %v2561_v49 = vpop.eup %2560  ;;  %v463_v50 = vmul.f32 %v2559_v48, %v2757_v21  ;;  %v482_v56 = vadd.f32 %v2273_v52, %v472_v51 }
 0x140   : > { %v464_v53 = vmul.f32 %v2561_v49, %v2753_v15 }
 0x141   : > { %v473_v54 = vmul.f32 %v2272_v47, %v463_v50 }
 0x142   : > { %v2563_v55 = vpop.eup %2562  ;;  %v474_v58 = vmul.f32 %v2272_v47, %v464_v53 }
 0x143   : > { %v483_v57 = vadd.f32 %v2273_v52, %v473_v54  ;;  %v465_v14 = vmul.f32 %v2563_v55, %v2759_v22 }
 0x144   : > { %v484_v62 = vadd.f32 %v2273_v52, %v474_v58 }
 0x145   : > { %v486_v59 = vpack.c.bf16 %v483_v57, %v482_v56  ;;  %v475_v61 = vmul.f32 %v2272_v47, %v465_v14 }
 0x147   : > { %593 = vmatmul.mubr.bf16.vlgmr.msra.gmra.mxu0 %v486_v59  ;;  %2436 = vmatprep.mubr.bf16.mxu1 %v486_v59  ;;  %v485_v21 = vadd.f32 %v2273_v52, %v475_v61 }
 0x148   : > { %602 = vmatprep.mubr.bf16.mxu0 %v2648_v60 }
 0x149   : > { %v487_v63 = vpack.c.bf16 %v485_v21, %v484_v62 }
 0x14b   : > { %2437 = vmatmul.mubr.bf16.vlgmr.msra.gmra.mxu1 %v487_v63 }
 0x14f   : > { %603 = vmatmul.mubr.bf16.gmra.mxu0 %v487_v63 }
 0x207   : > { %v594_v0 = vpop.f32.mrf.mxu0 }
 0x209   : > { %v596_v15 = vpop.f32.mrf.mxu0 }
 0x20b   : > { %v598_v1 = vpop.f32.mrf.mxu0  ;;  %v2438_v2 = vpop.f32.mrf.mxu1 }
 0x20c   : > { %v2911_v3 = vpack.c.bf16 %v598_v1, %v594_v0 }
 0x20d   : > { %v600_v22 = vpop.f32.mrf.mxu0  ;;  %v647_v4 = vpop.f32.mrf.mxu1 }
 0x20e   : > { %2444 = vmatprep.mubr.msk.bf16.mxu0 %vm701_vm0, %v2911_v3  ;;  %v2925_v16 = vpack.c.bf16 %v600_v22, %v596_v15 }
 0x20f   : > { %v604_v5 = vpop.f32.mrf.mxu0  ;;  %v2439_v6 = vpop.f32.mrf.mxu1 }
 0x210   : > { %v2915_v7 = vpack.c.bf16 %v2439_v6, %v2438_v2  ;;  %v709_v18 = vsel %vm701_vm0, %v2925_v16, 0 }
 0x211   : > { %v606_v8 = vpop.f32.mrf.mxu0  ;;  %v650_v9 = vpop.f32.mrf.mxu1 }
 0x212   : > { %v2917_v10 = vpack.c.bf16 %v650_v9, %v647_v4  ;;  %2448 = vmatprep.subr.bf16.mxu1 %v2915_v7 }
 0x213   : > { %v608_v11 = vpop.f32.mrf.mxu0  ;;  %2449 = vmatpush3.bf16.msra.mxu1 %v2915_v7 }
 0x214   : > { %2450 = vmatprep.subr.bf16.mxu1 %v2917_v10  ;;  %v2935_v19 = vpack.c.bf16 %v608_v11, %v604_v5 }
 0x215   : > { %v610_v12 = vpop.f32.mrf.mxu0 }
 0x216   : > { %v2922_v13 = vpack.c.bf16 %v610_v12, %v606_v8 }
 0x217   : > { %2451 = vmatpush3.bf16.msra.mxu1 %v2917_v10 }
 0x218   : > { %2536 = vmatprep.subr.msk.bf16.mxu0 %vm701_vm0, %v2922_v13  ;;  %v712_v17 = vsel %vm701_vm0, %v2922_v13, 0 }
 0x219   : > { %2441 = vmatpush3.bf16.xpose.msra.mxu0 %v712_v17 }
 0x21a   : > { %2537 = vmatprep.subr.msk.bf16.mxu0 %vm701_vm0, %v2925_v16 }
 0x221   : > { %2443 = vmatpush3.bf16.xpose.msra.mxu0 %v709_v18 }
 0x228   : > { %2445 = vmatmul.mubr.msk.bf16.vlgmr.msra.gmra.mxu0 %vm701_vm0, %v2935_v19 }
 0x2e8   : > { %v2446_v24 = vpop.f32.mrf.mxu0 }
 0x2e9   : > { %v765_v29 = vmul.f32 0.17677669, %v2446_v24 }
 0x2ea   : > { %v748_v27 = vpop.f32.mrf.mxu0 }
 0x2eb   : > { %v763_v30 = vmul.f32 0.17677669, %v748_v27  ;;  %v769_v38 = vsel %vm671_vm2, %v765_v29, -inf }
 0x2ec   : > { %v2447_v31 = vpop.f32.mrf.mxu0  ;;  %v777_v40 = vsel %vm701_vm0, %v769_v38, -inf }
 0x2ed   : > { %v767_v33 = vsel %vm669_vm1, %v763_v30, -inf  ;;  %v766_v36 = vmul.f32 0.17677669, %v2447_v31  ;;  %v675_v31 = vld [vmem:[%s3633_s4 + $0x10] sm:$0xff] }
 0x2ee   : > { %v751_v34 = vpop.f32.mrf.mxu0  ;;  %v771_v35 = vsel %vm701_vm0, %v767_v33, -inf }
 0x2ef   : > { %v764_v37 = vmul.f32 0.17677669, %v751_v34  ;;  %772 = vmax.xlane.f32.xlu0 %v771_v35  ;;  %v770_v42 = vsel %vm672_vm4, %v766_v36, -inf  ;;  %v673_v35 = vld [vmem:[%s3633_s4] sm:$0xff]  ;;  %v674_v36 = vld [vmem:[%s3633_s4 + $0x8] sm:$0xff] }
 0x2f0   : > { %v780_v43 = vsel %vm701_vm0, %v770_v42, -inf }
 0x2f1   : > { %v768_v39 = vsel %vm670_vm3, %v764_v37, -inf  ;;  %v689_v37 = vpack.c.bf16 %v674_v36, %v673_v35 }
 0x2f2   : > { %v774_v41 = vsel %vm701_vm0, %v768_v39, -inf }
 0x2f3   : > { %778 = vmax.xlane.f32.xlu0 %v777_v40  ;;  %775 = vmax.xlane.f32.xlu1 %v774_v41 }
 0x2f7   : > { %781 = vmax.xlane.f32.xlu1 %v780_v43 }
 0x378   : > { %v773_v44 = vpop.xlane.xlu0 %772 }
 0x379   : > { %v783_v45 = vsub.f32 %v767_v33, %v773_v44  ;;  %v676_v33 = vld [vmem:[%s3633_s4 + $0x18] sm:$0xff] }
 0x37a   : > { %v690_v34 = vpack.c.bf16 %v676_v33, %v675_v31  ;;  %v679_v31 = vld [vmem:[%s3633_s4 + $0x30] sm:$0xff] }
 0x37b   : > { %v787_v50 = vmul.f32 1.442695, %v783_v45 }
 0x37c   : > { %v779_v46 = vpop.xlane.xlu0 %778  ;;  %v776_v47 = vpop.xlane.xlu1 %775 }
 0x37d   : > { %v785_v48 = vsub.f32 %v769_v38, %v779_v46  ;;  %v784_v49 = vsub.f32 %v768_v39, %v776_v47 }
 0x37f   : > { %v791_v51 = vmul.f32 1.442695, %v785_v48  ;;  %v789_v52 = vmul.f32 1.442695, %v784_v49 }
 0x380   : > { %v782_v53 = vpop.xlane.xlu1 %781 }
 0x381   : > { %2564 = vpow2.f32 %v791_v51  ;;  %v786_v54 = vsub.f32 %v770_v42, %v782_v53 }
 0x382   : > { %2566 = vpow2.f32 %v789_v52 }
 0x383   : > { %2568 = vpow2.f32 %v787_v50  ;;  %v793_v55 = vmul.f32 1.442695, %v786_v54 }
 0x385   : > { %2570 = vpow2.f32 %v793_v55 }
 0x38e   : > { %v2565_v56 = vpop.eup %2564 }
 0x38f   : > { %v2567_v57 = vpop.eup %2566  ;;  %v801_v14 = vsel %vm701_vm0, %v2565_v56, 0.0 }
 0x390   : > { %v2569_v58 = vpop.eup %2568  ;;  %802 = vadd.xlane.f32.xlu0 %v801_v14  ;;  %v798_v59 = vsel %vm701_vm0, %v2567_v57, 0.0 }
 0x391   : > { %799 = vadd.xlane.f32.xlu1 %v798_v59  ;;  %v795_v62 = vsel %vm701_vm0, %v2569_v58, 0.0 }
 0x392   : > { %v2571_v61 = vpop.eup %2570 }
 0x393   : > { %v804_v21 = vsel %vm701_vm0, %v2571_v61, 0.0 }
 0x394   : > { %796 = vadd.xlane.f32.xlu0 %v795_v62 }
 0x395   : > { %805 = vadd.xlane.f32.xlu1 %v804_v21 }
 0x3a6   : > { %884 = vrot.lane.b32.xlu1 %v2925_v16, %s2649_s29 }
 0x3aa   : > { %878 = vrot.lane.b32.xlu1 %v2911_v3, %s2649_s29  ;;  %886 = vrot.lane.b32.xlu0 %v2922_v13, %s2649_s29 }
 0x3ae   : > { %880 = vrot.lane.b32.xlu1 %v2935_v19, %s2649_s29 }
 0x419   : > { %v803_v63 = vpop.xlane.xlu0 %802 }
 0x41a   : > { %v800_v0 = vpop.xlane.xlu1 %799 }
 0x41b   : > { %2572 = vrcp.f32 %v800_v0 }
 0x41c   : > { %2574 = vrcp.f32 %v803_v63 }
 0x41d   : > { %v797_v15 = vpop.xlane.xlu0 %796 }
 0x41e   : > { %2576 = vrcp.f32 %v797_v15  ;;  %v806_v1 = vpop.xlane.xlu1 %805 }
 0x41f   : > { %2578 = vrcp.f32 %v806_v1 }
 0x421   : > { %v887_v2 = vpop.permute.xlu0 %886 }
 0x422   : > { %2538 = vmatprep.subr.msk.bf16.mxu1 %vm701_vm0, %v887_v2  ;;  %v885_v6 = vpop.permute.xlu1 %884  ;;  %v898_v24 = vsel %vm701_vm0, %v887_v2, 0 }
 0x423   : > { %v895_v29 = vsel %vm701_vm0, %v885_v6, 0 }
 0x426   : > { %v879_v27 = vpop.permute.xlu1 %878 }
 0x428   : > { %v2573_v22 = vpop.eup %2572 }
 0x429   : > { %v2575_v4 = vpop.eup %2574  ;;  %v812_v11 = vmul.f32 %v2573_v22, %v2567_v57 }
 0x42a   : > { %v813_v12 = vmul.f32 %v2575_v4, %v2565_v56  ;;  %v881_v30 = vpop.permute.xlu1 %880 }
 0x42b   : > { %v2577_v5 = vpop.eup %2576 }
 0x42c   : > { %v2579_v8 = vpop.eup %2578  ;;  %v811_v9 = vmul.f32 %v2577_v5, %v2569_v58 }
 0x42d   : > { %v814_v17 = vmul.f32 %v2579_v8, %v2571_v61 }
 0x42e   : > { %v815_v18 = vpack.c.bf16 %v812_v11, %v811_v9 }
 0x42f   : > { %v816_v20 = vpack.c.bf16 %v814_v17, %v813_v12 }
 0x430   : > { %2452 = vmatprep.mubr.msk.bf16.mxu1 %vm701_vm0, %v815_v18 }
 0x431   : > { %2453 = vmatmul.mubr.msk.bf16.vlgmr.msra.gmra.mxu1 %vm701_vm0, %v816_v20 }
 0x432   : > { %2457 = vmatpush3.bf16.xpose.msra.mxu1 %v898_v24  ;;  %2460 = vmatprep.mubr.msk.bf16.mxu1 %vm701_vm0, %v879_v27 }
 0x433   : > { %2539 = vmatprep.subr.msk.bf16.mxu1 %vm701_vm0, %v885_v6 }
 0x43a   : > { %2459 = vmatpush3.bf16.xpose.msra.mxu1 %v895_v29 }
 0x43b   : > { %2480 = vmatprep.subr.bf16.mxu1 %v690_v34 }
 0x441   : > { %2461 = vmatmul.mubr.msk.bf16.vlgmr.msra.gmra.mxu1 %vm701_vm0, %v881_v30 }
 0x442   : > { %2481 = vmatpush3.bf16.msra.mxu1 %v690_v34 }
 0x443   : > { %2482 = vmatprep.subr.bf16.mxu1 %v689_v37 }
 0x446   : > { %2483 = vmatpush3.bf16.msra.mxu1 %v689_v37 }
 0x4f1   : > { %v2454_v38 = vpop.f32.mrf.mxu1 }
 0x4f3   : > { %v859_v39 = vpop.f32.mrf.mxu1 }
 0x4f5   : > { %v2455_v40 = vpop.f32.mrf.mxu1 }
 0x4f6   : > { %v875_v43 = vpack.c.bf16 %v2455_v40, %v2454_v38  ;;  %v677_v40 = vld [vmem:[%s3633_s4 + $0x20] sm:$0xff] }
 0x4f7   : > { %v862_v41 = vpop.f32.mrf.mxu1 }
 0x4f8   : > { %v874_v42 = vpack.c.bf16 %v862_v41, %v859_v39  ;;  %v678_v41 = vld [vmem:[%s3633_s4 + $0x28] sm:$0xff] }
 0x4fa   : > { %2484 = vmatprep.mubr.msk.bf16.mxu1 %vm701_vm0, %v874_v42 }
 0x4fb   : > { %2485 = vmatmul.mubr.msk.bf16.vlgmr.msra.gmra.mxu1 %vm701_vm0, %v875_v43 }
 0x501   : > { %v2462_v44 = vpop.f32.mrf.mxu1 }
 0x502   : > { %v951_v46 = vmul.f32 0.17677669, %v2462_v44 }
 0x503   : > { %v934_v45 = vpop.f32.mrf.mxu1 }
 0x504   : > { %v949_v47 = vmul.f32 0.17677669, %v934_v45  ;;  %v955_v54 = vsel %vm671_vm2, %v951_v46, -inf  ;;  %v691_v45 = vpack.c.bf16 %v678_v41, %v677_v40 }
 0x505   : > { %v2463_v48 = vpop.f32.mrf.mxu1  ;;  %v963_v56 = vsel %vm701_vm0, %v955_v54, -inf }
 0x506   : > { %v953_v49 = vsel %vm669_vm1, %v949_v47, -inf  ;;  %v952_v52 = vmul.f32 0.17677669, %v2463_v48 }
 0x507   : > { %v937_v50 = vpop.f32.mrf.mxu1  ;;  %v957_v51 = vsel %vm701_vm0, %v953_v49, -inf }
 0x508   : > { %v950_v53 = vmul.f32 0.17677669, %v937_v50  ;;  %958 = vmax.xlane.f32.xlu0 %v957_v51  ;;  %v956_v14 = vsel %vm672_vm4, %v952_v52, -inf }
 0x509   : > { %v966_v58 = vsel %vm701_vm0, %v956_v14, -inf }
 0x50a   : > { %v954_v55 = vsel %vm670_vm3, %v950_v53, -inf }
 0x50b   : > { %v960_v57 = vsel %vm701_vm0, %v954_v55, -inf }
 0x50c   : > { %964 = vmax.xlane.f32.xlu0 %v963_v56  ;;  %961 = vmax.xlane.f32.xlu1 %v960_v57 }
 0x510   : > { %967 = vmax.xlane.f32.xlu0 %v966_v58 }
 0x591   : > { %v959_v59 = vpop.xlane.xlu0 %958 }
 0x592   : > { %v969_v61 = vsub.f32 %v953_v49, %v959_v59 }
 0x594   : > { %v973_v0 = vmul.f32 1.442695, %v969_v61 }
 0x595   : > { %v965_v62 = vpop.xlane.xlu0 %964  ;;  %v962_v21 = vpop.xlane.xlu1 %961 }
 0x596   : > { %v971_v63 = vsub.f32 %v955_v54, %v965_v62  ;;  %v970_v1 = vsub.f32 %v954_v55, %v962_v21 }
 0x598   : > { %v977_v15 = vmul.f32 1.442695, %v971_v63  ;;  %v975_v4 = vmul.f32 1.442695, %v970_v1 }
 0x599   : > { %v968_v2 = vpop.xlane.xlu0 %967 }
 0x59a   : > { %2580 = vpow2.f32 %v977_v15  ;;  %v972_v22 = vsub.f32 %v956_v14, %v968_v2 }
 0x59b   : > { %2582 = vpow2.f32 %v973_v0 }
 0x59c   : > { %v979_v5 = vmul.f32 1.442695, %v972_v22 }
 0x59e   : > { %2584 = vpow2.f32 %v979_v5 }
 0x59f   : > { %2586 = vpow2.f32 %v975_v4 }
 0x5a7   : > { %v2581_v6 = vpop.eup %2580 }
 0x5a8   : > { %v987_v8 = vsel %vm701_vm0, %v2581_v6, 0.0  ;;  %v2583_v9 = vpop.eup %2582 }
 0x5a9   : > { %988 = vadd.xlane.f32.xlu0 %v987_v8  ;;  %v981_v12 = vsel %vm701_vm0, %v2583_v9, 0.0 }
 0x5ab   : > { %v2585_v11 = vpop.eup %2584 }
 0x5ac   : > { %v990_v17 = vsel %vm701_vm0, %v2585_v11, 0.0  ;;  %v2587_v18 = vpop.eup %2586 }
 0x5ad   : > { %982 = vadd.xlane.f32.xlu0 %v981_v12  ;;  %991 = vadd.xlane.f32.xlu1 %v990_v17  ;;  %v984_v20 = vsel %vm701_vm0, %v2587_v18, 0.0 }
 0x5b1   : > { %985 = vadd.xlane.f32.xlu1 %v984_v20 }
 0x5c2   : > { %1005 = vrot.lane.b32.xlu1 %v2917_v10, %s2649_s29 }
 0x5c3   : > { %1007 = vrot.lane.b32.xlu0 %v2915_v7, %s2649_s29 }
 0x5c6   : > { %1184 = vrot.lane.b32.xlu1 %v2922_v13, %s2650_s20 }
 0x5c7   : > { %1178 = vrot.lane.b32.xlu0 %v2911_v3, %s2650_s20 }
 0x5ca   : > { %1182 = vrot.lane.b32.xlu1 %v2925_v16, %s2650_s20 }
 0x5cb   : > { %1429 = vrot.lane.b32.xlu0 %v2922_v13, %s2651_s24 }
 0x5ce   : > { %1180 = vrot.lane.b32.xlu1 %v2935_v19, %s2650_s20 }
 0x5cf   : > { %1423 = vrot.lane.b32.xlu0 %v2911_v3, %s2651_s24  ;;  %v680_v3 = vld [vmem:[%s3633_s4 + $0x38] sm:$0xff] }
 0x5d2   : > { %1427 = vrot.lane.b32.xlu1 %v2925_v16, %s2651_s24  ;;  %v692_v16 = vpack.c.bf16 %v680_v3, %v679_v31 }
 0x5d6   : > { %1425 = vrot.lane.b32.xlu1 %v2935_v19, %s2651_s24 }
 0x632   : > { %v989_v24 = vpop.xlane.xlu0 %988 }
 0x636   : > { %v983_v27 = vpop.xlane.xlu0 %982  ;;  %v992_v29 = vpop.xlane.xlu1 %991 }
 0x637   : > { %2588 = vrcp.f32 %v992_v29 }
 0x638   : > { %2590 = vrcp.f32 %v983_v27 }
 0x639   : > { %2592 = vrcp.f32 %v989_v24 }
 0x63a   : > { %v1008_v30 = vpop.permute.xlu0 %1007  ;;  %v986_v13 = vpop.xlane.xlu1 %985 }
 0x63b   : > { %2594 = vrcp.f32 %v986_v13  ;;  %2464 = vmatprep.subr.bf16.mxu0 %v1008_v30 }
 0x63c   : > { %2465 = vmatpush3.bf16.msra.mxu0 %v1008_v30 }
 0x63e   : > { %v1006_v19 = vpop.permute.xlu1 %1005  ;;  %v1179_v53 = vpop.permute.xlu0 %1178 }
 0x63f   : > { %2466 = vmatprep.subr.bf16.mxu0 %v1006_v19 }
 0x640   : > { %2467 = vmatpush3.bf16.msra.mxu0 %v1006_v19 }
 0x641   : > { %2472 = vmatprep.subr.bf16.mxu0 %v692_v16 }
 0x642   : > { %v1185_v46 = vpop.permute.xlu1 %1184  ;;  %v1430_v57 = vpop.permute.xlu0 %1429 }
 0x643   : > { %v1196_v54 = vsel %vm701_vm0, %v1185_v46, 0  ;;  %v1441_v58 = vsel %vm701_vm0, %v1430_v57, 0 }
 0x644   : > { %v2589_v33 = vpop.eup %2588 }
 0x645   : > { %v2591_v34 = vpop.eup %2590  ;;  %v1000_v37 = vmul.f32 %v2589_v33, %v2585_v11 }
 0x646   : > { %v2593_v35 = vpop.eup %2592  ;;  %v997_v38 = vmul.f32 %v2591_v34, %v2583_v9  ;;  %v1183_v55 = vpop.permute.xlu1 %1182 }
 0x647   : > { %v999_v42 = vmul.f32 %v2593_v35, %v2581_v6  ;;  %v1193_v56 = vsel %vm701_vm0, %v1183_v55, 0  ;;  %v1424_v59 = vpop.permute.xlu0 %1423 }
 0x648   : > { %v2595_v36 = vpop.eup %2594 }
 0x649   : > { %v998_v39 = vmul.f32 %v2595_v36, %v2587_v18  ;;  %v1002_v44 = vpack.c.bf16 %v1000_v37, %v999_v42 }
 0x64a   : > { %v1181_v14 = vpop.permute.xlu1 %1180 }
 0x64b   : > { %v1001_v43 = vpack.c.bf16 %v998_v39, %v997_v38 }
 0x64d   : > { %2468 = vmatprep.mubr.msk.bf16.mxu0 %vm701_vm0, %v1001_v43 }
 0x64e   : > { %2469 = vmatmul.mubr.msk.bf16.vlgmr.msra.gmra.mxu0 %vm701_vm0, %v1002_v44  ;;  %v1428_v61 = vpop.permute.xlu1 %1427 }
 0x64f   : > { %2473 = vmatpush3.bf16.msra.mxu0 %v692_v16  ;;  %v1438_v62 = vsel %vm701_vm0, %v1428_v61, 0 }
 0x650   : > { %2474 = vmatprep.subr.bf16.mxu0 %v691_v45 }
 0x652   : > { %v1426_v21 = vpop.permute.xlu1 %1425 }
 0x653   : > { %2475 = vmatpush3.bf16.msra.mxu0 %v691_v45 }
 0x654   : > { %2540 = vmatprep.subr.msk.bf16.mxu0 %vm701_vm0, %v1185_v46 }
 0x70e   : > { %v2470_v47 = vpop.f32.mrf.mxu0 }
 0x710   : > { %v1051_v48 = vpop.f32.mrf.mxu0 }
 0x712   : > { %v2471_v49 = vpop.f32.mrf.mxu0 }
 0x713   : > { %v1067_v52 = vpack.c.bf16 %v2471_v49, %v2470_v47 }
 0x714   : > { %v1054_v50 = vpop.f32.mrf.mxu0 }
 0x715   : > { %v1066_v51 = vpack.c.bf16 %v1054_v50, %v1051_v48 }
 0x717   : > { %2476 = vmatprep.mubr.msk.bf16.mxu0 %vm701_vm0, %v1066_v51 }
 0x718   : > { %2477 = vmatmul.mubr.msk.bf16.vlgmr.msra.gmra.mxu0 %vm701_vm0, %v1067_v52 }
 0x719   : > { %2489 = vmatpush3.bf16.xpose.msra.mxu0 %v1196_v54  ;;  %2492 = vmatprep.mubr.msk.bf16.mxu0 %vm701_vm0, %v1179_v53 }
 0x71a   : > { %2541 = vmatprep.subr.msk.bf16.mxu0 %vm701_vm0, %v1183_v55 }
 0x721   : > { %2491 = vmatpush3.bf16.xpose.msra.mxu0 %v1193_v56 }
 0x722   : > { %2542 = vmatprep.subr.msk.bf16.mxu0 %vm701_vm0, %v1430_v57 }
 0x728   : > { %2493 = vmatmul.mubr.msk.bf16.vlgmr.msra.gmra.mxu0 %vm701_vm0, %v1181_v14 }
 0x729   : > { %2513 = vmatpush3.bf16.xpose.msra.mxu0 %v1441_v58  ;;  %2516 = vmatprep.mubr.msk.bf16.mxu0 %vm701_vm0, %v1424_v59 }
 0x72a   : > { %2543 = vmatprep.subr.msk.bf16.mxu0 %vm701_vm0, %v1428_v61 }
 0x731   : > { %2515 = vmatpush3.bf16.xpose.msra.mxu0 %v1438_v62 }
 0x738   : > { %2517 = vmatmul.mubr.msk.bf16.vlgmr.msra.gmra.mxu0 %vm701_vm0, %v1426_v21 }
 0x739   : > { %1901 = vmatprep.mubr.bf16.mxu0 %v2648_v60 }
 0x7d8   : > { %v3079_v63 = vpop.f32.mrf.mxu0 }
 0x7da   : > { %v3081_v0 = vpop.f32.mrf.mxu0 }
 0x7dc   : > { %v3083_v15 = vpop.f32.mrf.mxu0 }
 0x7de   : > { %v3085_v1 = vpop.f32.mrf.mxu0 }
 0x7e8   : > { %v2494_v2 = vpop.f32.mrf.mxu0 }
 0x7e9   : > { %v1249_v4 = vmul.f32 0.17677669, %v2494_v2 }
 0x7ea   : > { %v1232_v22 = vpop.f32.mrf.mxu0 }
 0x7eb   : > { %v1247_v5 = vmul.f32 0.17677669, %v1232_v22  ;;  %v1253_v18 = vsel %vm671_vm2, %v1249_v4, -inf }
 0x7ec   : > { %v2495_v6 = vpop.f32.mrf.mxu0  ;;  %v1261_v24 = vsel %vm701_vm0, %v1253_v18, -inf }
 0x7ed   : > { %v1251_v8 = vsel %vm669_vm1, %v1247_v5, -inf  ;;  %v1250_v12 = vmul.f32 0.17677669, %v2495_v6 }
 0x7ee   : > { %v1235_v9 = vpop.f32.mrf.mxu0  ;;  %v1255_v11 = vsel %vm701_vm0, %v1251_v8, -inf }
 0x7ef   : > { %v1248_v17 = vmul.f32 0.17677669, %v1235_v9  ;;  %1256 = vmax.xlane.f32.xlu0 %v1255_v11  ;;  %v1254_v29 = vsel %vm672_vm4, %v1250_v12, -inf }
 0x7f0   : > { %v1264_v30 = vsel %vm701_vm0, %v1254_v29, -inf }
 0x7f1   : > { %v1252_v20 = vsel %vm670_vm3, %v1248_v17, -inf }
 0x7f2   : > { %v1258_v27 = vsel %vm701_vm0, %v1252_v20, -inf }
 0x7f3   : > { %1262 = vmax.xlane.f32.xlu0 %v1261_v24  ;;  %1259 = vmax.xlane.f32.xlu1 %v1258_v27 }
 0x7f7   : > { %1265 = vmax.xlane.f32.xlu0 %v1264_v30 }
 0x7f8   : > { %v2518_v48 = vpop.f32.mrf.mxu0 }
 0x7f9   : > { %v1494_v53 = vmul.f32 0.17677669, %v2518_v48  ;;  %v682_v48 = vld [vmem:[%s3633_s4 + $0x48] sm:$0xff] }
 0x7fa   : > { %v1477_v49 = vpop.f32.mrf.mxu0 }
 0x7fb   : > { %v1492_v54 = vmul.f32 0.17677669, %v1477_v49  ;;  %v1498_v14 = vsel %vm671_vm2, %v1494_v53, -inf }
 0x7fc   : > { %v2519_v50 = vpop.f32.mrf.mxu0  ;;  %v1506_v59 = vsel %vm701_vm0, %v1498_v14, -inf }
 0x7fd   : > { %v1495_v57 = vmul.f32 0.17677669, %v2519_v50  ;;  %v1496_v58 = vsel %vm669_vm1, %v1492_v54, -inf  ;;  %v2486_v50 = vpop.f32.mrf.mxu1 }
 0x7fe   : > { %v1480_v51 = vpop.f32.mrf.mxu0  ;;  %v1500_v61 = vsel %vm701_vm0, %v1496_v58, -inf }
 0x7ff   : > { %v1493_v52 = vmul.f32 0.17677669, %v1480_v51  ;;  %v1499_v28 = vsel %vm672_vm4, %v1495_v57, -inf  ;;  %v1163_v51 = vpop.f32.mrf.mxu1 }
 0x800   : > { %v1509_v62 = vsel %vm701_vm0, %v1499_v28, -inf }
 0x801   : > { %v1497_v55 = vsel %vm670_vm3, %v1493_v52, -inf  ;;  %v2487_v52 = vpop.f32.mrf.mxu1 }
 0x802   : > { %v1503_v56 = vsel %vm701_vm0, %v1497_v55, -inf }
 0x803   : > { %v1166_v53 = vpop.f32.mrf.mxu1 }
 0x878   : > { %v1257_v13 = vpop.xlane.xlu0 %1256 }
 0x879   : > { %v1267_v31 = vsub.f32 %v1251_v8, %v1257_v13 }
 0x87b   : > { %v1271_v33 = vmul.f32 1.442695, %v1267_v31 }
 0x87c   : > { %v1263_v3 = vpop.xlane.xlu0 %1262  ;;  %v1260_v16 = vpop.xlane.xlu1 %1259 }
 0x87d   : > { %v1269_v19 = vsub.f32 %v1253_v18, %v1263_v3  ;;  %v1268_v35 = vsub.f32 %v1252_v20, %v1260_v16 }
 0x87f   : > { %v1275_v34 = vmul.f32 1.442695, %v1269_v19  ;;  %v1273_v38 = vmul.f32 1.442695, %v1268_v35 }
 0x880   : > { %v1266_v36 = vpop.xlane.xlu0 %1265 }
 0x881   : > { %2596 = vpow2.f32 %v1275_v34  ;;  %v1270_v37 = vsub.f32 %v1254_v29, %v1266_v36 }
 0x882   : > { %2598 = vpow2.f32 %v1271_v33 }
 0x883   : > { %v1277_v39 = vmul.f32 1.442695, %v1270_v37 }
 0x885   : > { %2600 = vpow2.f32 %v1277_v39 }
 0x886   : > { %2602 = vpow2.f32 %v1273_v38 }
 0x88e   : > { %v2597_v40 = vpop.eup %2596 }
 0x88f   : > { %v1285_v41 = vsel %vm701_vm0, %v2597_v40, 0.0  ;;  %v2599_v42 = vpop.eup %2598 }
 0x890   : > { %1286 = vadd.xlane.f32.xlu0 %v1285_v41  ;;  %v1279_v44 = vsel %vm701_vm0, %v2599_v42, 0.0 }
 0x892   : > { %v2601_v43 = vpop.eup %2600 }
 0x893   : > { %v1288_v45 = vsel %vm701_vm0, %v2601_v43, 0.0  ;;  %v2603_v46 = vpop.eup %2602 }
 0x894   : > { %1280 = vadd.xlane.f32.xlu0 %v1279_v44  ;;  %1289 = vadd.xlane.f32.xlu1 %v1288_v45  ;;  %v1282_v47 = vsel %vm701_vm0, %v2603_v46, 0.0  ;;  %v683_v44 = vld [vmem:[%s3633_s4 + $0x50] sm:$0xff]  ;;  %v684_v45 = vld [vmem:[%s3633_s4 + $0x58] sm:$0xff] }
 0x898   : > { %1283 = vadd.xlane.f32.xlu1 %v1282_v47  ;;  %v681_v47 = vld [vmem:[%s3633_s4 + $0x40] sm:$0xff] }
 0x899   : > { %v693_v49 = vpack.c.bf16 %v682_v48, %v681_v47  ;;  %v2637_v48 = vld [vmem:[%s2733_s26 + $0x18] sm:$0xff] }
 0x8a9   : > { %1301 = vrot.lane.b32.xlu1 %v2917_v10, %s2650_s20 }
 0x8aa   : > { %1303 = vrot.lane.b32.xlu0 %v2915_v7, %s2650_s20 }
 0x8c9   : > { %1504 = vmax.xlane.f32.xlu0 %v1503_v56 }
 0x8cd   : > { %1507 = vmax.xlane.f32.xlu0 %v1506_v59  ;;  %1501 = vmax.xlane.f32.xlu1 %v1500_v61 }
 0x8d1   : > { %1510 = vmax.xlane.f32.xlu1 %v1509_v62 }
 0x919   : > { %v1287_v21 = vpop.xlane.xlu0 %1286 }
 0x91d   : > { %v1281_v26 = vpop.xlane.xlu0 %1280  ;;  %v1290_v2 = vpop.xlane.xlu1 %1289 }
 0x91e   : > { %2604 = vrcp.f32 %v1290_v2 }
 0x91f   : > { %2606 = vrcp.f32 %v1281_v26 }
 0x920   : > { %2608 = vrcp.f32 %v1287_v21 }
 0x921   : > { %v1304_v22 = vpop.permute.xlu0 %1303  ;;  %v1284_v4 = vpop.xlane.xlu1 %1283 }
 0x922   : > { %2610 = vrcp.f32 %v1284_v4  ;;  %2496 = vmatprep.subr.bf16.mxu1 %v1304_v22 }
 0x923   : > { %2497 = vmatpush3.bf16.msra.mxu1 %v1304_v22 }
 0x925   : > { %v1302_v5 = vpop.permute.xlu1 %1301 }
 0x926   : > { %2498 = vmatprep.subr.bf16.mxu1 %v1302_v5 }
 0x927   : > { %2499 = vmatpush3.bf16.msra.mxu1 %v1302_v5 }
 0x92b   : > { %v2605_v6 = vpop.eup %2604 }
 0x92c   : > { %v2607_v25 = vpop.eup %2606  ;;  %v1298_v9 = vmul.f32 %v2605_v6, %v2601_v43 }
 0x92d   : > { %v2609_v32 = vpop.eup %2608  ;;  %v1295_v11 = vmul.f32 %v2607_v25, %v2599_v42 }
 0x92e   : > { %v1297_v17 = vmul.f32 %v2609_v32, %v2597_v40 }
 0x92f   : > { %v2611_v8 = vpop.eup %2610 }
 0x930   : > { %v1296_v12 = vmul.f32 %v2611_v8, %v2603_v46  ;;  %v1300_v20 = vpack.c.bf16 %v1298_v9, %v1297_v17  ;;  %v694_v46 = vpack.c.bf16 %v684_v45, %v683_v44  ;;  %v687_v9 = vld [vmem:[%s3633_s4 + $0x70] sm:$0xff]  ;;  %v685_v17 = vld [vmem:[%s3633_s4 + $0x60] sm:$0xff] }
 0x932   : > { %v1299_v18 = vpack.c.bf16 %v1296_v12, %v1295_v11  ;;  %2504 = vmatprep.subr.bf16.mxu1 %v694_v46  ;;  %v688_v11 = vld [vmem:[%s3633_s4 + $0x78] sm:$0xff] }
 0x933   : > { %v696_v12 = vpack.c.bf16 %v688_v11, %v687_v9 }
 0x934   : > { %2500 = vmatprep.mubr.msk.bf16.mxu1 %vm701_vm0, %v1299_v18  ;;  %v686_v18 = vld [vmem:[%s3633_s4 + $0x68] sm:$0xff] }
 0x935   : > { %2501 = vmatmul.mubr.msk.bf16.vlgmr.msra.gmra.mxu1 %vm701_vm0, %v1300_v20  ;;  %v695_v20 = vpack.c.bf16 %v686_v18, %v685_v17 }
 0x936   : > { %2505 = vmatpush3.bf16.msra.mxu1 %v694_v46  ;;  %v2298_v46 = vld [vmem:[%s3634_s5] ss:$0 sm:$0xff] }
 0x937   : > { %2506 = vmatprep.subr.bf16.mxu1 %v693_v49 }
 0x93a   : > { %2507 = vmatpush3.bf16.msra.mxu1 %v693_v49 }
 0x952   : > { %v1505_v24 = vpop.xlane.xlu0 %1504 }
 0x953   : > { %v1513_v31 = vsub.f32 %v1497_v55, %v1505_v24  ;;  %v1172_v24 = vadd.f32 %v2486_v50, %v3079_v63 }
 0x955   : > { %v1518_v34 = vmul.f32 1.442695, %v1513_v31  ;;  %v1175_v31 = vadd.f32 %v2487_v52, %v3083_v15  ;;  %v2638_v52 = vld [vmem:[%s2733_s26 + $0x8] sm:$0xff] }
 0x956   : > { %v1508_v27 = vpop.xlane.xlu0 %1507  ;;  %v1502_v29 = vpop.xlane.xlu1 %1501 }
 0x957   : > { %v1514_v30 = vsub.f32 %v1498_v14, %v1508_v27  ;;  %v1512_v13 = vsub.f32 %v1496_v58, %v1502_v29  ;;  %v1164_v29 = vadd.f32 %v1163_v51, %v3081_v0 }
 0x959   : > { %v1520_v3 = vmul.f32 1.442695, %v1514_v30  ;;  %v1516_v16 = vmul.f32 1.442695, %v1512_v13 }
 0x95a   : > { %v1511_v19 = vpop.xlane.xlu1 %1510 }
 0x95b   : > { %2612 = vpow2.f32 %v1520_v3  ;;  %v1515_v33 = vsub.f32 %v1499_v28, %v1511_v19  ;;  %v1167_v19 = vadd.f32 %v1166_v53, %v3085_v1 }
 0x95c   : > { %2614 = vpow2.f32 %v1516_v16 }
 0x95d   : > { %v1522_v35 = vmul.f32 1.442695, %v1515_v33 }
 0x95f   : > { %2616 = vpow2.f32 %v1522_v35 }
 0x960   : > { %2618 = vpow2.f32 %v1518_v34 }
 0x968   : > { %v2613_v36 = vpop.eup %2612 }
 0x969   : > { %v1530_v37 = vsel %vm701_vm0, %v2613_v36, 0.0  ;;  %v2615_v38 = vpop.eup %2614 }
 0x96a   : > { %1531 = vadd.xlane.f32.xlu0 %v1530_v37  ;;  %v1524_v40 = vsel %vm701_vm0, %v2615_v38, 0.0 }
 0x96c   : > { %v2617_v39 = vpop.eup %2616 }
 0x96d   : > { %v1533_v41 = vsel %vm701_vm0, %v2617_v39, 0.0  ;;  %v2619_v42 = vpop.eup %2618 }
 0x96e   : > { %1525 = vadd.xlane.f32.xlu0 %v1524_v40  ;;  %1534 = vadd.xlane.f32.xlu1 %v1533_v41  ;;  %v1527_v43 = vsel %vm701_vm0, %v2619_v42, 0.0 }
 0x972   : > { %1528 = vadd.xlane.f32.xlu1 %v1527_v43 }
 0x983   : > { %1546 = vrot.lane.b32.xlu1 %v2917_v10, %s2651_s24 }
 0x984   : > { %1548 = vrot.lane.b32.xlu0 %v2915_v7, %s2651_s24 }
 0x9f3   : > { %v1532_v54 = vpop.xlane.xlu0 %1531 }
 0x9f5   : > { %v2502_v55 = vpop.f32.mrf.mxu1 }
 0x9f7   : > { %v1347_v56 = vpop.f32.mrf.mxu1  ;;  %v1526_v57 = vpop.xlane.xlu0 %1525 }
 0x9f8   : > { %v1535_v14 = vpop.xlane.xlu1 %1534 }
 0x9f9   : > { %v2503_v58 = vpop.f32.mrf.mxu1  ;;  %2620 = vrcp.f32 %v1535_v14 }
 0x9fa   : > { %2622 = vrcp.f32 %v1526_v57  ;;  %v1363_v62 = vpack.c.bf16 %v2503_v58, %v2502_v55  ;;  %v1808_v58 = vld [vmem:[%s3637_s8 + $0x1c8] sm:$0xff] }
 0x9fb   : > { %v1350_v59 = vpop.f32.mrf.mxu1  ;;  %v1549_v61 = vpop.permute.xlu0 %1548  ;;  %2624 = vrcp.f32 %v1532_v54  ;;  %v2639_v54 = vld [vmem:[%s2733_s26 + $0x10] sm:$0xff] }
 0x9fc   : > { %v1362_v28 = vpack.c.bf16 %v1350_v59, %v1347_v56  ;;  %v1529_v10 = vpop.xlane.xlu1 %1528  ;;  %2520 = vmatprep.subr.bf16.mxu1 %v1549_v61  ;;  %v1812_v59 = vld [vmem:[%s3637_s8 + $0x1e8] sm:$0xff] }
 0x9fd   : > { %2626 = vrcp.f32 %v1529_v10  ;;  %v1814_v10 = vld [vmem:[%s3637_s8 + $0x1f8] sm:$0xff] }
 0x9fe   : > { %2508 = vmatprep.mubr.msk.bf16.mxu1 %vm701_vm0, %v1362_v28  ;;  %v1844_v28 = vpack.c.bf16 %v1812_v59, %v1808_v58  ;;  %v1787_v58 = vld [vmem:[%s3637_s8 + $0x120] sm:$0xff] }
 0x9ff   : > { %2509 = vmatmul.mubr.msk.bf16.vlgmr.msra.gmra.mxu1 %vm701_vm0, %v1363_v62  ;;  %v1807_v62 = vld [vmem:[%s3637_s8 + $0x1c0] sm:$0xff] }
 0xa00   : > { %2521 = vmatpush3.bf16.msra.mxu1 %v1549_v61  ;;  %v1547_v7 = vpop.permute.xlu1 %1546  ;;  %v1810_v61 = vld [vmem:[%s3637_s8 + $0x1d8] sm:$0xff]  ;;  %1869 = vmatprep.subr.bf16.mxu0 %v1844_v28  ;;  %v1785_v28 = vld [vmem:[%s3637_s8 + $0x110] sm:$0xff] }
 0xa01   : > { %2522 = vmatprep.subr.bf16.mxu1 %v1547_v7 }
 0xa04   : > { %2523 = vmatpush3.bf16.msra.mxu1 %v1547_v7  ;;  %v1811_v7 = vld [vmem:[%s3637_s8 + $0x1e0] sm:$0xff] }
 0xa05   : > { %2528 = vmatprep.subr.bf16.mxu1 %v696_v12 }
 0xa06   : > { %v2621_v21 = vpop.eup %2620 }
 0xa07   : > { %v2623_v26 = vpop.eup %2622  ;;  %v1543_v4 = vmul.f32 %v2621_v21, %v2617_v39  ;;  %v1846_v21 = vpack.c.bf16 %v1814_v10, %v1810_v61  ;;  %v1789_v10 = vld [vmem:[%s3637_s8 + $0x130] sm:$0xff] }
 0xa08   : > { %v2625_v2 = vpop.eup %2624  ;;  %v1540_v5 = vmul.f32 %v2623_v26, %v2615_v38  ;;  %v1843_v26 = vpack.c.bf16 %v1811_v7, %v1807_v62  ;;  %v1833_v62 = vpack.c.bf16 %v1789_v10, %v1785_v28  ;;  %v1776_v7 = vld [vmem:[%s3637_s8 + $0xc8] sm:$0xff]  ;;  %v2062_v10 = vld [vmem:[%s3639_s10 + $0x1f8] sm:$0xff] }
 0xa09   : > { %v1542_v25 = vmul.f32 %v2625_v2, %v2613_v36  ;;  %v1809_v2 = vld [vmem:[%s3637_s8 + $0x1d0] sm:$0xff] }
 0xa0a   : > { %v2627_v22 = vpop.eup %2626  ;;  %1870 = vmatpush1.bf16.msra.mxu0 %v1843_v26  ;;  %v1778_v26 = vld [vmem:[%s3637_s8 + $0xd8] sm:$0xff] }
 0xa0b   : > { %v1541_v6 = vmul.f32 %v2627_v22, %v2619_v42  ;;  %v1545_v8 = vpack.c.bf16 %v1543_v4, %v1542_v25  ;;  %v2636_v42 = vld [vmem:[%s2733_s26] sm:$0xff]  ;;  %v1813_v22 = vld [vmem:[%s3637_s8 + $0x1f0] sm:$0xff] }
 0xa0c   : > { %v1845_v4 = vpack.c.bf16 %v1813_v22, %v1809_v2  ;;  %v1782_v22 = vld [vmem:[%s3637_s8 + $0xf8] sm:$0xff] }
 0xa0d   : > { %v1544_v32 = vpack.c.bf16 %v1541_v6, %v1540_v5 }
 0xa0f   : > { %2524 = vmatprep.mubr.msk.bf16.mxu1 %vm701_vm0, %v1544_v32 }
 0xa10   : > { %2525 = vmatmul.mubr.msk.bf16.vlgmr.msra.gmra.mxu1 %vm701_vm0, %v1545_v8 }
 0xa11   : > { %2529 = vmatpush3.bf16.msra.mxu1 %v696_v12 }
 0xa12   : > { %2530 = vmatprep.subr.bf16.mxu1 %v695_v20 }
 0xa15   : > { %2531 = vmatpush3.bf16.msra.mxu1 %v695_v20 }
 0xa16   : > { %1922 = vmatprep.subr.bf16.mxu1 %v1846_v21  ;;  %v1780_v21 = vld [vmem:[%s3637_s8 + $0xe8] sm:$0xff] }
 0xa17   : > { %v1828_v2 = vpack.c.bf16 %v1780_v21, %v1776_v7 }
 0xabf   : > { %v2510_v27 = vpop.f32.mrf.mxu1 }
 0xac0   : > { %v1421_v30 = vadd.f32 %v2510_v27, %v1172_v24 }
 0xac1   : > { %v1404_v13 = vpop.f32.mrf.mxu1 }
 0xac2   : > { %v1419_v3 = vadd.f32 %v1404_v13, %v1164_v29 }
 0xac3   : > { %v2511_v16 = vpop.f32.mrf.mxu1 }
 0xac4   : > { %v1422_v33 = vadd.f32 %v2511_v16, %v1175_v31  ;;  %v1800_v31 = vld [vmem:[%s3637_s8 + $0x188] sm:$0xff]  ;;  %v1802_v16 = vld [vmem:[%s3637_s8 + $0x198] sm:$0xff] }
 0xac5   : > { %v1407_v34 = vpop.f32.mrf.mxu1 }
 0xac6   : > { %v1420_v35 = vadd.f32 %v1407_v34, %v1167_v19  ;;  %v1799_v34 = vld [vmem:[%s3637_s8 + $0x180] sm:$0xff] }
 0xad0   : > { %v2526_v36 = vpop.f32.mrf.mxu1 }
 0xad2   : > { %v1592_v37 = vpop.f32.mrf.mxu1 }
 0xad4   : > { %v2527_v38 = vpop.f32.mrf.mxu1 }
 0xad5   : > { %v1608_v40 = vpack.c.bf16 %v2527_v38, %v2526_v36  ;;  %v1801_v38 = vld [vmem:[%s3637_s8 + $0x190] sm:$0xff] }
 0xad6   : > { %v1595_v39 = vpop.f32.mrf.mxu1 }
 0xad7   : > { %v1607_v63 = vpack.c.bf16 %v1595_v39, %v1592_v37  ;;  %v1805_v39 = vld [vmem:[%s3637_s8 + $0x1b0] sm:$0xff] }
 0xad9   : > { %2532 = vmatprep.mubr.msk.bf16.mxu1 %vm701_vm0, %v1607_v63  ;;  %v1841_v63 = vpack.c.bf16 %v1805_v39, %v1801_v38  ;;  %v1762_v38 = vld [vmem:[%s3637_s8 + $0x58] sm:$0xff] }
 0xada   : > { %2533 = vmatmul.mubr.msk.bf16.vlgmr.msra.gmra.mxu1 %vm701_vm0, %v1608_v40  ;;  %v1792_v40 = vld [vmem:[%s3637_s8 + $0x148] sm:$0xff]  ;;  %v1766_v39 = vld [vmem:[%s3637_s8 + $0x78] sm:$0xff] }
 0xadb   : > { %1954 = vmatprep.mubr.bf16.mxu1 %v2648_v60  ;;  %1923 = vmatpush1.bf16.msra.mxu1 %v1845_v4  ;;  %v1775_v4 = vld [vmem:[%s3637_s8 + $0xc0] sm:$0xff] }
 0xb9a   : > { %v2534_v0 = vpop.f32.mrf.mxu1 }
 0xb9b   : > { %v1666_v47 = vadd.f32 %v2534_v0, %v1421_v30  ;;  %v1796_v0 = vld [vmem:[%s3637_s8 + $0x168] sm:$0xff] }
 0xb9c   : > { %v1649_v15 = vpop.f32.mrf.mxu1 }
 0xb9d   : > { %v1664_v1 = vadd.f32 %v1649_v15, %v1419_v3  ;;  %v1670_v55 = vadd.f32 %v2639_v54, %v1666_v47  ;;  %v1804_v3 = vld [vmem:[%s3637_s8 + $0x1a8] sm:$0xff]  ;;  %v1794_v15 = vld [vmem:[%s3637_s8 + $0x158] sm:$0xff]  ;;  %v1797_v47 = vld [vmem:[%s3637_s8 + $0x170] sm:$0xff] }
 0xb9e   : > { %v2535_v41 = vpop.f32.mrf.mxu1  ;;  %v1840_v19 = vpack.c.bf16 %v1804_v3, %v1800_v31  ;;  %v1790_v54 = vld [vmem:[%s3637_s8 + $0x138] sm:$0xff]  ;;  %v1767_v31 = vld [vmem:[%s3637_s8 + $0x80] sm:$0xff] }
 0xb9f   : > { %v1668_v43 = vadd.f32 %v2636_v42, %v1664_v1  ;;  %v1667_v44 = vadd.f32 %v2535_v41, %v1422_v33  ;;  %v3188_v14 = vadd.f32 %v2298_v46, %v1670_v55  ;;  %v1806_v33 = vld [vmem:[%s3637_s8 + $0x1b8] sm:$0xff]  ;;  %v1836_v1 = vpack.c.bf16 %v1796_v0, %v1792_v40  ;;  %v1791_v42 = vld [vmem:[%s3637_s8 + $0x140] sm:$0xff] }
 0xba0   : > { %v1652_v45 = vpop.f32.mrf.mxu1  ;;  %v1842_v36 = vpack.c.bf16 %v1806_v33, %v1802_v16  ;;  %1871 = vmatprep.subr.bf16.mxu0 %v1840_v19  ;;  %v1798_v41 = vld [vmem:[%s3637_s8 + $0x178] sm:$0xff]  ;;  %v1783_v55 = vld [vmem:[%s3637_s8 + $0x100] sm:$0xff]  ;;  %v1769_v16 = vld [vmem:[%s3637_s8 + $0x90] sm:$0xff]  ;;  %v1822_v40 = vpack.c.bf16 %v1766_v39, %v1762_v38 }
 0xba1   : > { %v1671_v49 = vadd.f32 %v2637_v48, %v1667_v44  ;;  %v1665_v50 = vadd.f32 %v1652_v45, %v1420_v35  ;;  %v3177_v51 = vadd.f32 %v2298_v46, %v1668_v43  ;;  %v1803_v35 = vld [vmem:[%s3637_s8 + $0x1a0] sm:$0xff]  ;;  %v1838_v44 = vpack.c.bf16 %v1798_v41, %v1794_v15  ;;  %v1773_v33 = vld [vmem:[%s3637_s8 + $0xb0] sm:$0xff]  ;;  %v2028_v39 = vld [vmem:[%s3639_s10 + $0xe8] sm:$0xff] }
 0xba2   : > { %v1839_v37 = vpack.c.bf16 %v1803_v35, %v1799_v34  ;;  %1924 = vmatprep.subr.bf16.mxu1 %v1842_v36  ;;  %v1795_v43 = vld [vmem:[%s3637_s8 + $0x160] sm:$0xff]  ;;  %v1831_v61 = vpack.c.bf16 %v1787_v58, %v1783_v55  ;;  %v1760_v34 = vld [vmem:[%s3637_s8 + $0x48] sm:$0xff]  ;;  %v1825_v36 = vpack.c.bf16 %v1773_v33, %v1769_v16  ;;  %v1761_v15 = vld [vmem:[%s3637_s8 + $0x50] sm:$0xff] }
 0xba3   : > { %v1669_v53 = vadd.f32 %v2638_v52, %v1665_v50  ;;  %1685 = vadd.xlane.f32.xlu1 %v3177_v51  ;;  %v3182_v56 = vadd.f32 %v2298_v46, %v1671_v49  ;;  %1925 = vmatpush1.bf16.msra.mxu1 %v1841_v63  ;;  %v1835_v45 = vpack.c.bf16 %v1795_v43, %v1791_v42  ;;  %v1784_v49 = vld [vmem:[%s3637_s8 + $0x108] sm:$0xff]  ;;  %v1786_v52 = vld [vmem:[%s3637_s8 + $0x118] sm:$0xff]  ;;  %v1771_v3 = vld [vmem:[%s3637_s8 + $0xa0] sm:$0xff] }
 0xba4   : > { %1872 = vmatpush1.bf16.msra.mxu0 %v1839_v37  ;;  %1926 = vmatprep.subr.bf16.mxu1 %v1838_v44  ;;  %v1788_v50 = vld [vmem:[%s3637_s8 + $0x128] sm:$0xff]  ;;  %v1834_v59 = vpack.c.bf16 %v1790_v54, %v1786_v52  ;;  %v1823_v19 = vpack.c.bf16 %v1771_v3, %v1767_v31  ;;  %v1759_v63 = vld [vmem:[%s3637_s8 + $0x40] sm:$0xff]  ;;  %v1754_v44 = vld [vmem:[%s3637_s8 + $0x18] sm:$0xff] }
 0xba5   : > { %v3184_v57 = vadd.f32 %v2298_v46, %v1669_v53  ;;  %v1793_v46 = vld [vmem:[%s3637_s8 + $0x150] sm:$0xff]  ;;  %1873 = vmatprep.subr.bf16.mxu0 %v1836_v1  ;;  %v1832_v53 = vpack.c.bf16 %v1788_v50, %v1784_v49  ;;  %v1764_v35 = vld [vmem:[%s3637_s8 + $0x68] sm:$0xff]  ;;  %v1763_v0 = vld [vmem:[%s3637_s8 + $0x60] sm:$0xff] }
 0xba6   : > { %v1837_v48 = vpack.c.bf16 %v1797_v47, %v1793_v46  ;;  %v1820_v37 = vpack.c.bf16 %v1764_v35, %v1760_v34  ;;  %v1765_v1 = vld [vmem:[%s3637_s8 + $0x70] sm:$0xff]  ;;  %v1819_v41 = vpack.c.bf16 %v1763_v0, %v1759_v63  ;;  %v1752_v42 = vld [vmem:[%s3637_s8 + $0x8] sm:$0xff]  ;;  %v1758_v47 = vld [vmem:[%s3637_s8 + $0x38] sm:$0xff] }
 0xba7   : > { %1691 = vadd.xlane.f32.xlu1 %v3182_v56  ;;  %1687 = vadd.xlane.f32.xlu0 %v3184_v57  ;;  %v1756_v43 = vld [vmem:[%s3637_s8 + $0x28] sm:$0xff]  ;;  %v1755_v49 = vld [vmem:[%s3637_s8 + $0x20] sm:$0xff]  ;;  %v1818_v50 = vpack.c.bf16 %v1758_v47, %v1754_v44  ;;  %v1753_v52 = vld [vmem:[%s3637_s8 + $0x10] sm:$0xff] }
 0xba8   : > { %1874 = vmatpush1.bf16.msra.mxu0 %v1835_v45  ;;  %1927 = vmatpush1.bf16.msra.mxu1 %v1837_v48  ;;  %v1821_v45 = vpack.c.bf16 %v1765_v1, %v1761_v15  ;;  %v1816_v46 = vpack.c.bf16 %v1756_v43, %v1752_v42  ;;  %v1751_v48 = vld [vmem:[%s3637_s8] sm:$0xff]  ;;  %v2029_v58 = vld [vmem:[%s3639_s10 + $0xf0] sm:$0xff]  ;;  %v2012_v43 = vld [vmem:[%s3639_s10 + $0x68] sm:$0xff] }
 0xba9   : > { %1875 = vmatprep.subr.bf16.mxu0 %v1832_v53  ;;  %1928 = vmatprep.subr.bf16.mxu1 %v1834_v59  ;;  %v1757_v53 = vld [vmem:[%s3637_s8 + $0x30] sm:$0xff]  ;;  %v1815_v54 = vpack.c.bf16 %v1755_v49, %v1751_v48  ;;  %v2030_v59 = vld [vmem:[%s3639_s10 + $0xf8] sm:$0xff]  ;;  %v2300_v31 = vld [vmem:[%s3636_s7] ss:$0 sm:$0xff] }
 0xbaa   : > { %v1817_v55 = vpack.c.bf16 %v1757_v53, %v1753_v52  ;;  %v2078_v28 = vpack.c.bf16 %v2030_v59, %v2029_v58  ;;  %v2013_v16 = vld [vmem:[%s3639_s10 + $0x70] sm:$0xff]  ;;  %v2027_v34 = vld [vmem:[%s3639_s10 + $0xe0] sm:$0xff]  ;;  %v2026_v49 = vld [vmem:[%s3639_s10 + $0xd8] sm:$0xff] }
 0xbab   : > { %1689 = vadd.xlane.f32.xlu0 %v3188_v14  ;;  %v2045_v33 = vld [vmem:[%s3639_s10 + $0x170] sm:$0xff]  ;;  %v2059_v63 = vld [vmem:[%s3639_s10 + $0x1e0] sm:$0xff]  ;;  %v2058_v52 = vld [vmem:[%s3639_s10 + $0x1d8] sm:$0xff] }
 0xbac   : > { %1876 = vmatpush1.bf16.msra.mxu0 %v1831_v61  ;;  %1929 = vmatpush1.bf16.msra.mxu1 %v1833_v62  ;;  %v2061_v61 = vld [vmem:[%s3639_s10 + $0x1f0] sm:$0xff]  ;;  %v2043_v47 = vld [vmem:[%s3639_s10 + $0x160] sm:$0xff] }
 0xbad   : > { %1877 = vmatprep.subr.bf16.mxu0 %v1828_v2  ;;  %v2094_v62 = vpack.c.bf16 %v2062_v10, %v2061_v61  ;;  %v2025_v48 = vld [vmem:[%s3639_s10 + $0xd0] sm:$0xff]  ;;  %v2010_v61 = vld [vmem:[%s3639_s10 + $0x58] sm:$0xff] }
 0xbae   : > { %v2009_v59 = vld [vmem:[%s3639_s10 + $0x50] sm:$0xff] }
 0xc2c   : > { %v1686_v5 = vpop.xlane.xlu1 %1685 }
 0xc2d   : > { %v1693_v6 = vmul.f32 0.0078125, %v1686_v5  ;;  %v1779_v5 = vld [vmem:[%s3637_s8 + $0xe0] sm:$0xff] }
 0xc2f   : > { %v3216_v25 = vsub.f32 %v3177_v51, %v1693_v6  ;;  %v1830_v6 = vpack.c.bf16 %v1782_v22, %v1778_v26 }
 0xc30   : > { %v1692_v32 = vpop.xlane.xlu1 %1691  ;;  %v1688_v8 = vpop.xlane.xlu0 %1687 }
 0xc31   : > { %v1696_v9 = vmul.f32 0.0078125, %v1692_v32  ;;  %v1694_v11 = vmul.f32 0.0078125, %v1688_v8  ;;  %v1701_v12 = vmul.f32 %v3216_v25, %v3216_v25  ;;  %v1827_v32 = vpack.c.bf16 %v1779_v5, %v1775_v4  ;;  %v1777_v8 = vld [vmem:[%s3637_s8 + $0xd0] sm:$0xff]  ;;  %1930 = vmatprep.subr.bf16.mxu1 %v1830_v6 }
 0xc33   : > { %v3221_v17 = vsub.f32 %v3184_v57, %v1694_v11  ;;  %1705 = vadd.xlane.f32.xlu0 %v1701_v12  ;;  %v3224_v20 = vsub.f32 %v3182_v56, %v1696_v9  ;;  %v1781_v9 = vld [vmem:[%s3637_s8 + $0xf0] sm:$0xff]  ;;  %v1768_v11 = vld [vmem:[%s3637_s8 + $0x88] sm:$0xff]  ;;  %1878 = vmatpush1.bf16.msra.mxu0 %v1827_v32 }
 0xc34   : > { %v1690_v18 = vpop.xlane.xlu0 %1689  ;;  %v1829_v12 = vpack.c.bf16 %v1781_v9, %v1777_v8 }
 0xc35   : > { %v1695_v24 = vmul.f32 0.0078125, %v1690_v18  ;;  %v1702_v27 = vmul.f32 %v3221_v17, %v3221_v17  ;;  %v1704_v30 = vmul.f32 %v3224_v20, %v3224_v20  ;;  %v1772_v18 = vld [vmem:[%s3637_s8 + $0xa8] sm:$0xff] }
 0xc36   : > { %1931 = vmatpush1.bf16.msra.mxu1 %v1829_v12 }
 0xc37   : > { %v3229_v29 = vsub.f32 %v3188_v14, %v1695_v24  ;;  %1707 = vadd.xlane.f32.xlu1 %v1702_v27  ;;  %v1770_v24 = vld [vmem:[%s3637_s8 + $0x98] sm:$0xff] }
 0xc38   : > { %v1774_v27 = vld [vmem:[%s3637_s8 + $0xb8] sm:$0xff] }
 0xc39   : > { %v1703_v13 = vmul.f32 %v3229_v29, %v3229_v29 }
 0xc3b   : > { %1711 = vadd.xlane.f32.xlu1 %v1704_v30  ;;  %1709 = vadd.xlane.f32.xlu0 %v1703_v13  ;;  %v1824_v30 = vpack.c.bf16 %v1772_v18, %v1768_v11  ;;  %v1826_v13 = vpack.c.bf16 %v1774_v27, %v1770_v24  ;;  %v2299_v24 = vld [vmem:[%s3635_s6] ss:$0 sm:$0xff] }
 0xc3d   : > { %1879 = vmatprep.subr.bf16.mxu0 %v1824_v30  ;;  %1932 = vmatprep.subr.bf16.mxu1 %v1826_v13 }
 0xc3e   : > { %1880 = vmatpush1.bf16.msra.mxu0 %v1823_v19  ;;  %1933 = vmatpush1.bf16.msra.mxu1 %v1825_v36 }
 0xc3f   : > { %1881 = vmatprep.subr.bf16.mxu0 %v1820_v37  ;;  %1934 = vmatprep.subr.bf16.mxu1 %v1822_v40  ;;  %v2060_v40 = vld [vmem:[%s3639_s10 + $0x1e8] sm:$0xff] }
 0xc42   : > { %1882 = vmatpush1.bf16.msra.mxu0 %v1819_v41  ;;  %1935 = vmatpush1.bf16.msra.mxu1 %v1821_v45  ;;  %v2077_v45 = vpack.c.bf16 %v2028_v39, %v2027_v34 }
 0xc43   : > { %1883 = vmatprep.subr.bf16.mxu0 %v1816_v46  ;;  %1936 = vmatprep.subr.bf16.mxu1 %v1818_v50  ;;  %v2093_v46 = vpack.c.bf16 %v2060_v40, %v2059_v63  ;;  %v2057_v50 = vld [vmem:[%s3639_s10 + $0x1d0] sm:$0xff]  ;;  %v2052_v63 = vld [vmem:[%s3639_s10 + $0x1a8] sm:$0xff]  ;;  %v2003_v40 = vld [vmem:[%s3639_s10 + $0x20] sm:$0xff] }
 0xc44   : > { %v2092_v10 = vpack.c.bf16 %v2058_v52, %v2057_v50  ;;  %v2033_v52 = vld [vmem:[%s3639_s10 + $0x110] sm:$0xff] }
 0xc46   : > { %1884 = vmatpush1.bf16.msra.mxu0 %v1815_v54  ;;  %1937 = vmatpush1.bf16.msra.mxu1 %v1817_v55 }
 0xc47   : > { %2364 = vmatprep.subr.bf16.mxu0 %v2078_v28  ;;  %2392 = vmatprep.subr.bf16.mxu1 %v2094_v62  ;;  %v2076_v28 = vpack.c.bf16 %v2026_v49, %v2025_v48  ;;  %v2042_v62 = vld [vmem:[%s3639_s10 + $0x158] sm:$0xff] }
 0xc48   : > { %v2002_v48 = vld [vmem:[%s3639_s10 + $0x18] sm:$0xff] }
 0xcbc   : > { %v1706_v7 = vpop.xlane.xlu0 %1705 }
 0xcbd   : > { %v1713_v21 = vmul.f32 0.0078125, %v1706_v7  ;;  %v2023_v7 = vld [vmem:[%s3639_s10 + $0xc0] sm:$0xff] }
 0xcbf   : > { %v1717_v26 = vadd.f32 1e-05, %v1713_v21  ;;  %v2024_v21 = vld [vmem:[%s3639_s10 + $0xc8] sm:$0xff] }
 0xcc0   : > { %v1708_v2 = vpop.xlane.xlu1 %1707 }
 0xcc1   : > { %2628 = vrsqrt.f32 %v1717_v26  ;;  %v1714_v22 = vmul.f32 0.0078125, %v1708_v2  ;;  %v2055_v26 = vld [vmem:[%s3639_s10 + $0x1c0] sm:$0xff]  ;;  %v2056_v2 = vld [vmem:[%s3639_s10 + $0x1c8] sm:$0xff] }
 0xcc3   : > { %v1718_v4 = vadd.f32 1e-05, %v1714_v22 }
 0xcc4   : > { %v1712_v5 = vpop.xlane.xlu1 %1711  ;;  %v1710_v6 = vpop.xlane.xlu0 %1709 }
 0xcc5   : > { %2630 = vrsqrt.f32 %v1718_v4  ;;  %v1716_v32 = vmul.f32 0.0078125, %v1712_v5  ;;  %v1715_v8 = vmul.f32 0.0078125, %v1710_v6  ;;  %v2068_v4 = vpack.c.bf16 %v2010_v61, %v2009_v59  ;;  %v2007_v6 = vld [vmem:[%s3639_s10 + $0x40] sm:$0xff] }
 0xcc6   : > { %v2047_v59 = vld [vmem:[%s3639_s10 + $0x180] sm:$0xff] }
 0xcc7   : > { %v1720_v9 = vadd.f32 1e-05, %v1716_v32  ;;  %v1719_v11 = vadd.f32 1e-05, %v1715_v8  ;;  %v2008_v32 = vld [vmem:[%s3639_s10 + $0x48] sm:$0xff]  ;;  %v2075_v8 = vpack.c.bf16 %v2024_v21, %v2023_v7  ;;  %v2031_v21 = vld [vmem:[%s3639_s10 + $0x100] sm:$0xff] }
 0xcc9   : > { %2632 = vrsqrt.f32 %v1720_v9  ;;  %v2091_v9 = vpack.c.bf16 %v2056_v2, %v2055_v26  ;;  %v2032_v26 = vld [vmem:[%s3639_s10 + $0x108] sm:$0xff] }
 0xcca   : > { %2634 = vrsqrt.f32 %v1719_v11  ;;  %v2039_v11 = vld [vmem:[%s3639_s10 + $0x140] sm:$0xff]  ;;  %v2079_v2 = vpack.c.bf16 %v2032_v26, %v2031_v21 }
 0xcce   : > { %v2629_v12 = vpop.eup %2628 }
 0xccf   : > { %v1725_v18 = vmul.f32 %v2629_v12, %v3216_v25  ;;  %v2014_v25 = vld [vmem:[%s3639_s10 + $0x78] sm:$0xff]  ;;  %v2040_v12 = vld [vmem:[%s3639_s10 + $0x148] sm:$0xff] }
 0xcd0   : > { %v2070_v41 = vpack.c.bf16 %v2014_v25, %v2013_v16 }
 0xcd1   : > { %v1735_v13 = vmul.f32 %v2299_v24, %v1725_v18  ;;  %v2021_v18 = vld [vmem:[%s3639_s10 + $0xb0] sm:$0xff] }
 0xcd2   : > { %v2631_v27 = vpop.eup %2630 }
 0xcd3   : > { %v1726_v30 = vmul.f32 %v2631_v27, %v3221_v17  ;;  %v2046_v17 = vld [vmem:[%s3639_s10 + $0x178] sm:$0xff]  ;;  %v1745_v36 = vadd.f32 %v2300_v31, %v1735_v13  ;;  %v2053_v27 = vld [vmem:[%s3639_s10 + $0x1b0] sm:$0xff]  ;;  %v2067_v13 = vpack.c.bf16 %v2008_v32, %v2007_v6  ;;  %v1859_v6 = vsub.s32 2, %v2939_v23  ;;  %v1847_v32 = vld [vmem:[%s3638_s9] sm:$0xf] }
 0xcd4   : > { %v2086_v42 = vpack.c.bf16 %v2046_v17, %v2045_v33  ;;  %v2037_v33 = vld [vmem:[%s3639_s10 + $0x130] sm:$0xff]  ;;  %v2038_v17 = vld [vmem:[%s3639_s10 + $0x138] sm:$0xff] }
 0xcd5   : > { %v1736_v3 = vmul.f32 %v2299_v24, %v1726_v30  ;;  %v2054_v30 = vld [vmem:[%s3639_s10 + $0x1b8] sm:$0xff] }
 0xcd6   : > { %v2633_v19 = vpop.eup %2632  ;;  %v2090_v25 = vpack.c.bf16 %v2054_v30, %v2053_v27 }
 0xcd7   : > { %v2635_v35 = vpop.eup %2634  ;;  %v1746_v37 = vadd.f32 %v2300_v31, %v1736_v3  ;;  %v1728_v38 = vmul.f32 %v2633_v19, %v3224_v20  ;;  %v2011_v20 = vld [vmem:[%s3639_s10 + $0x60] sm:$0xff]  ;;  %v2005_v3 = vld [vmem:[%s3639_s10 + $0x30] sm:$0xff]  ;;  %v2006_v19 = vld [vmem:[%s3639_s10 + $0x38] sm:$0xff] }
 0xcd8   : > { %v1727_v0 = vmul.f32 %v2635_v35, %v3229_v29  ;;  %v2044_v29 = vld [vmem:[%s3639_s10 + $0x168] sm:$0xff]  ;;  %v2069_v53 = vpack.c.bf16 %v2012_v43, %v2011_v20  ;;  %v2066_v34 = vpack.c.bf16 %v2006_v19, %v2005_v3  ;;  %v2082_v35 = vpack.c.bf16 %v2038_v17, %v2037_v33  ;;  %v2017_v43 = vld [vmem:[%s3639_s10 + $0x90] sm:$0xff] }
 0xcd9   : > { %v1749_v15 = vpack.c.bf16 %v1746_v37, %v1745_v36  ;;  %v1738_v1 = vmul.f32 %v2299_v24, %v1728_v38  ;;  %v2085_v58 = vpack.c.bf16 %v2044_v29, %v2043_v47  ;;  %v2019_v36 = vld [vmem:[%s3639_s10 + $0xa0] sm:$0xff]  ;;  %v2020_v37 = vld [vmem:[%s3639_s10 + $0xa8] sm:$0xff]  ;;  %v2050_v47 = vld [vmem:[%s3639_s10 + $0x198] sm:$0xff] }
 0xcda   : > { %v1737_v44 = vmul.f32 %v2299_v24, %v1727_v0  ;;  %v2022_v24 = vld [vmem:[%s3639_s10 + $0xb8] sm:$0xff]  ;;  %v2051_v38 = vld [vmem:[%s3639_s10 + $0x1a0] sm:$0xff]  ;;  %v2073_v39 = vpack.c.bf16 %v2020_v37, %v2019_v36  ;;  %v2004_v0 = vld [vmem:[%s3639_s10 + $0x28] sm:$0xff] }
 0xcdb   : > { %1902 = vmatmul.mubr.bf16.vlgmr.msra.gmra.mxu0 %v1749_v15  ;;  %1955 = vmatmul.mubr.bf16.vlgmr.msra.gmra.mxu1 %v1749_v15  ;;  %v1748_v55 = vadd.f32 %v2300_v31, %v1738_v1  ;;  %v2074_v16 = vpack.c.bf16 %v2022_v24, %v2021_v18  ;;  %v2089_v15 = vpack.c.bf16 %v2052_v63, %v2051_v38  ;;  %v2001_v29 = vld [vmem:[%s3639_s10 + $0x10] sm:$0xff] }
 0xcdc   : > { %1911 = vmatprep.mubr.bf16.mxu0 %v2648_v60  ;;  %1964 = vmatprep.mubr.bf16.mxu1 %v2648_v60  ;;  %v1747_v54 = vadd.f32 %v2300_v31, %v1737_v44  ;;  %v2041_v60 = vld [vmem:[%s3639_s10 + $0x150] sm:$0xff]  ;;  %v2083_v31 = vpack.c.bf16 %v2040_v12, %v2039_v11  ;;  %v2065_v1 = vpack.c.bf16 %v2004_v0, %v2003_v40  ;;  %v2018_v44 = vld [vmem:[%s3639_s10 + $0x98] sm:$0xff] }
 0xcdd   : > { %2365 = vmatpush3.bf16.msra.mxu0 %v2070_v41  ;;  %2393 = vmatpush3.bf16.msra.mxu1 %v2086_v42  ;;  %v2084_v5 = vpack.c.bf16 %v2042_v62, %v2041_v60  ;;  %v2035_v41 = vld [vmem:[%s3639_s10 + $0x120] sm:$0xff]  ;;  %v2036_v42 = vld [vmem:[%s3639_s10 + $0x128] sm:$0xff]  ;;  %v2064_v50 = vpack.c.bf16 %v2002_v48, %v2001_v29  ;;  %v1860_v24 = vrot.slane %v1847_v32, %v1859_v6 }
 0xcde   : > { %2366 = vmatprep.subr.bf16.mxu0 %v2077_v45  ;;  %2394 = vmatprep.subr.bf16.mxu1 %v2093_v46  ;;  %v1750_v22 = vpack.c.bf16 %v1748_v55, %v1747_v54  ;;  %v2081_v20 = vpack.c.bf16 %v2036_v42, %v2035_v41  ;;  %v2049_v45 = vld [vmem:[%s3639_s10 + $0x190] sm:$0xff]  ;;  %v2072_v46 = vpack.c.bf16 %v2018_v44, %v2017_v43  ;;  %v2015_v55 = vld [vmem:[%s3639_s10 + $0x80] sm:$0xff]  ;;  %v2000_v60 = vld [vmem:[%s3639_s10 + $0x8] sm:$0xff] }
 0xcdf   : > { %v2088_v49 = vpack.c.bf16 %v2050_v47, %v2049_v45 }
 0xce1   : > { %2367 = vmatpush3.bf16.msra.mxu0 %v2069_v53  ;;  %2395 = vmatpush3.bf16.msra.mxu1 %v2085_v58  ;;  %v2034_v53 = vld [vmem:[%s3639_s10 + $0x118] sm:$0xff]  ;;  %v2016_v58 = vld [vmem:[%s3639_s10 + $0x88] sm:$0xff] }
 0xce2   : > { %2368 = vmatprep.subr.bf16.mxu0 %v2076_v28  ;;  %2396 = vmatprep.subr.bf16.mxu1 %v2092_v10  ;;  %v2080_v54 = vpack.c.bf16 %v2034_v53, %v2033_v52  ;;  %v2071_v61 = vpack.c.bf16 %v2016_v58, %v2015_v55  ;;  %v2048_v28 = vld [vmem:[%s3639_s10 + $0x188] sm:$0xff]  ;;  %v1999_v10 = vld [vmem:[%s3639_s10] sm:$0xff] }
 0xce3   : > { %1912 = vmatmul.mubr.bf16.gmra.mxu0 %v1750_v22  ;;  %1965 = vmatmul.mubr.bf16.gmra.mxu1 %v1750_v22  ;;  %v2087_v62 = vpack.c.bf16 %v2048_v28, %v2047_v59  ;;  %v2063_v7 = vpack.c.bf16 %v2000_v60, %v1999_v10  ;;  %v1855_v22 = vsub.s32 1, %v2939_v23 }
 0xce5   : > { %2369 = vmatpush3.bf16.msra.mxu0 %v2068_v4  ;;  %2397 = vmatpush3.bf16.msra.mxu1 %v2084_v5  ;;  %v1863_v4 = vsub.s32 3, %v2939_v23  ;;  %v1851_v5 = vsub.s32 0, %v2939_v23  ;;  %v1856_v11 = vrot.slane %v1847_v32, %v1855_v22 }
 0xce6   : > { %2370 = vmatprep.subr.bf16.mxu0 %v2075_v8  ;;  %2398 = vmatprep.subr.bf16.mxu1 %v2091_v9 }
 0xce7   : > { %v1864_v12 = vrot.slane %v1847_v32, %v1863_v4  ;;  %v1852_v18 = vrot.slane %v1847_v32, %v1851_v5 }
 0xce9   : > { %2371 = vmatpush3.bf16.msra.mxu0 %v2067_v13  ;;  %2399 = vmatpush3.bf16.msra.mxu1 %v2083_v31 }
 0xcea   : > { %2372 = vmatprep.subr.bf16.mxu0 %v2074_v16  ;;  %2400 = vmatprep.subr.bf16.mxu1 %v2090_v25 }
 0xced   : > { %2373 = vmatpush3.bf16.msra.mxu0 %v2066_v34  ;;  %2401 = vmatpush3.bf16.msra.mxu1 %v2082_v35 }
 0xcee   : > { %2374 = vmatprep.subr.bf16.mxu0 %v2073_v39  ;;  %2402 = vmatprep.subr.bf16.mxu1 %v2089_v15 }
 0xcf1   : > { %2375 = vmatpush3.bf16.msra.mxu0 %v2065_v1  ;;  %2403 = vmatpush3.bf16.msra.mxu1 %v2081_v20 }
 0xcf2   : > { %2376 = vmatprep.subr.bf16.mxu0 %v2072_v46  ;;  %2404 = vmatprep.subr.bf16.mxu1 %v2088_v49 }
 0xcf5   : > { %2377 = vmatpush3.bf16.msra.mxu0 %v2064_v50  ;;  %2405 = vmatpush3.bf16.msra.mxu1 %v2080_v54 }
 0xcf6   : > { %2378 = vmatprep.subr.bf16.mxu0 %v2071_v61  ;;  %2406 = vmatprep.subr.bf16.mxu1 %v2087_v62 }
 0xcf9   : > { %2379 = vmatpush3.bf16.msra.mxu0 %v2063_v7  ;;  %2407 = vmatpush3.bf16.msra.mxu1 %v2079_v2 }
 0xd9b   : > { %v1903_v8 = vpop.f32.mrf.mxu0  ;;  %v1956_v9 = vpop.f32.mrf.mxu1 }
 0xd9c   : > { %v1904_v33 = vadd.f32 %v1903_v8, %v1852_v18  ;;  %v1957_v23 = vadd.f32 %v1956_v9, %v1860_v24 }
 0xd9d   : > { %v1905_v27 = vpop.f32.mrf.mxu0  ;;  %v1958_v30 = vpop.f32.mrf.mxu1 }
 0xd9e   : > { %v1906_v3 = vadd.f32 %v1905_v27, %v1856_v11  ;;  %v1959_v16 = vadd.f32 %v1958_v30, %v1864_v12  ;;  %v1975_v41 = vmax.f32 %v1904_v33, 0.0  ;;  %v1977_v42 = vmax.f32 %v1957_v23, 0.0 }
 0xd9f   : > { %v1907_v13 = vpop.f32.mrf.mxu0  ;;  %v1960_v31 = vpop.f32.mrf.mxu1 }
 0xda0   : > { %v1908_v25 = vadd.f32 %v1907_v13, %v1852_v18  ;;  %v1961_v19 = vadd.f32 %v1960_v31, %v1860_v24  ;;  %v1976_v40 = vmax.f32 %v1906_v3, 0.0  ;;  %v1978_v0 = vmax.f32 %v1959_v16, 0.0 }
 0xda1   : > { %v1909_v17 = vpop.f32.mrf.mxu0  ;;  %v1962_v34 = vpop.f32.mrf.mxu1 }
 0xda2   : > { %v1910_v35 = vadd.f32 %v1909_v17, %v1856_v11  ;;  %v1963_v36 = vadd.f32 %v1962_v34, %v1864_v12  ;;  %v1979_v37 = vmax.f32 %v1908_v25, 0.0  ;;  %v1981_v38 = vmax.f32 %v1961_v19, 0.0 }
 0xda3   : > { %v1913_v39 = vpop.f32.mrf.mxu0  ;;  %v1966_v63 = vpop.f32.mrf.mxu1 }
 0xda4   : > { %v1980_v15 = vmax.f32 %v1910_v35, 0.0  ;;  %v1982_v1 = vmax.f32 %v1963_v36, 0.0  ;;  %v1991_v46 = vpack.c.bf16 %v1979_v37, %v1975_v41  ;;  %v1993_v47 = vpack.c.bf16 %v1981_v38, %v1977_v42 }
 0xda5   : > { %v1915_v20 = vpop.f32.mrf.mxu0  ;;  %v1968_v43 = vpop.f32.mrf.mxu1  ;;  %v1914_v54 = vadd.f32 %v1913_v39, %v1852_v18  ;;  %v1967_v55 = vadd.f32 %v1966_v63, %v1860_v24 }
 0xda6   : > { %v1992_v44 = vpack.c.bf16 %v1980_v15, %v1976_v40  ;;  %v1994_v45 = vpack.c.bf16 %v1982_v1, %v1978_v0  ;;  %v1916_v29 = vadd.f32 %v1915_v20, %v1856_v11  ;;  %v1969_v50 = vadd.f32 %v1968_v43, %v1864_v12 }
 0xda7   : > { %v1917_v48 = vpop.f32.mrf.mxu0  ;;  %v1970_v49 = vpop.f32.mrf.mxu1  ;;  %v1983_v2 = vmax.f32 %v1914_v54, 0.0  ;;  %v1985_v22 = vmax.f32 %v1967_v55, 0.0 }
 0xda8   : > { %v1918_v52 = vadd.f32 %v1917_v48, %v1852_v18  ;;  %v1971_v53 = vadd.f32 %v1970_v49, %v1860_v24  ;;  %2134 = vmatprep.mubr.bf16.mxu0 %v1992_v44  ;;  %2183 = vmatprep.mubr.bf16.mxu1 %v1994_v45  ;;  %v1984_v62 = vmax.f32 %v1916_v29, 0.0  ;;  %v1986_v7 = vmax.f32 %v1969_v50, 0.0 }
 0xda9   : > { %v1919_v58 = vpop.f32.mrf.mxu0  ;;  %v1972_v59 = vpop.f32.mrf.mxu1  ;;  %2135 = vmatmul.mubr.bf16.vlgmr.msra.gmra.mxu0 %v1991_v46  ;;  %2184 = vmatmul.mubr.bf16.vlgmr.msra.gmra.mxu1 %v1993_v47 }
 0xdaa   : > { %v1920_v61 = vadd.f32 %v1919_v58, %v1856_v11  ;;  %v1973_v28 = vadd.f32 %v1972_v59, %v1864_v12  ;;  %v1987_v10 = vmax.f32 %v1918_v52, 0.0  ;;  %v1989_v60 = vmax.f32 %v1971_v53, 0.0  ;;  %v2301_v11 = vld [vmem:[%s3640_s11] ss:$0 sm:$0xff] }
 0xdac   : > { %v1988_v21 = vmax.f32 %v1920_v61, 0.0  ;;  %v1990_v26 = vmax.f32 %v1973_v28, 0.0  ;;  %v1995_v6 = vpack.c.bf16 %v1987_v10, %v1983_v2  ;;  %v1997_v32 = vpack.c.bf16 %v1989_v60, %v1985_v22 }
 0xdae   : > { %v1996_v4 = vpack.c.bf16 %v1988_v21, %v1984_v62  ;;  %v1998_v5 = vpack.c.bf16 %v1990_v26, %v1986_v7 }
 0xdb0   : > { %2142 = vmatprep.mubr.bf16.mxu0 %v1996_v4  ;;  %2191 = vmatprep.mubr.bf16.mxu1 %v1998_v5 }
 0xdb1   : > { %2143 = vmatmul.mubr.bf16.gmra.mxu0 %v1995_v6  ;;  %2192 = vmatmul.mubr.bf16.gmra.mxu1 %v1997_v32 }
 0xe69   : > { %v2380_v8 = vpop.f32.mrf.mxu0  ;;  %v2408_v9 = vpop.f32.mrf.mxu1 }
 0xe6b   : > { %v2381_v12 = vpop.f32.mrf.mxu0  ;;  %v2409_v18 = vpop.f32.mrf.mxu1 }
 0xe6c   : > { %v2382_v24 = vadd.f32 %v2381_v12, %v2380_v8  ;;  %v2410_v31 = vadd.f32 %v2409_v18, %v2408_v9 }
 0xe6d   : > { %v2383_v27 = vpop.f32.mrf.mxu0  ;;  %v2411_v30 = vpop.f32.mrf.mxu1 }
 0xe6e   : > { %v2137_v13 = vadd.f32 %v2382_v24, %v2301_v11 }
 0xe6f   : > { %v2384_v3 = vpop.f32.mrf.mxu0  ;;  %v2412_v16 = vpop.f32.mrf.mxu1 }
 0xe70   : > { %v2186_v25 = vadd.f32 %v2410_v31, %v2137_v13  ;;  %v2385_v19 = vadd.f32 %v2384_v3, %v2383_v27  ;;  %v2413_v35 = vadd.f32 %v2412_v16, %v2411_v30 }
 0xe71   : > { %v2386_v33 = vpop.f32.mrf.mxu0  ;;  %v2414_v23 = vpop.f32.mrf.mxu1 }
 0xe72   : > { %v2200_v17 = vadd.f32 %v2186_v25, %v3177_v51  ;;  %v2140_v34 = vadd.f32 %v2385_v19, %v2301_v11 }
 0xe73   : > { %v2387_v36 = vpop.f32.mrf.mxu0  ;;  %v2415_v37 = vpop.f32.mrf.mxu1 }
 0xe74   : > { %2204 = vst [vmem:[%s413_s16] sm:$0xff] %v2200_v17  ;;  %v2189_v38 = vadd.f32 %v2413_v35, %v2140_v34  ;;  %v2388_v39 = vadd.f32 %v2387_v36, %v2386_v33  ;;  %v2416_v1 = vadd.f32 %v2415_v37, %v2414_v23 }
 0xe75   : > { %v2389_v63 = vpop.f32.mrf.mxu0  ;;  %v2417_v40 = vpop.f32.mrf.mxu1 }
 0xe76   : > { %v2201_v0 = vadd.f32 %v2189_v38, %v3184_v57  ;;  %v2145_v15 = vadd.f32 %v2388_v39, %v2301_v11 }
 0xe77   : > { %v2390_v41 = vpop.f32.mrf.mxu0  ;;  %v2418_v42 = vpop.f32.mrf.mxu1 }
 0xe78   : > { %2205 = vst [vmem:[%s413_s16 + $0x8] sm:$0xff] %v2201_v0  ;;  %v2194_v20 = vadd.f32 %v2416_v1, %v2145_v15  ;;  %v2391_v43 = vadd.f32 %v2390_v41, %v2389_v63  ;;  %v2419_v45 = vadd.f32 %v2418_v42, %v2417_v40 }
 0xe7a   : > { %v2202_v51 = vadd.f32 %v2194_v20, %v3188_v14  ;;  %v2148_v44 = vadd.f32 %v2391_v43, %v2301_v11 }
 0xe7c   : > { %2206 = vst [vmem:[%s413_s16 + $0x10] sm:$0xff] %v2202_v51  ;;  %v2197_v46 = vadd.f32 %v2419_v45, %v2148_v44 }
 0xe7e   : > { %v2203_v47 = vadd.f32 %v2197_v46, %v3182_v56 }
 0xe80   : > { %2207 = vst [vmem:[%s413_s16 + $0x18] sm:$0xff] %v2203_v47 }
 0xe81 PF: > { %s22_s21 = sadd.s32 1, %s2646_s21  }
 0xe82   : > { %p19_p4 = scmp.ge.s32.totalorder %s22_s21, 4  }
 0xe84   :  { %21 = sbr.rel (!%p19_p4) target bundleno = 1 (0x1), region = 98 }

</bundles_post_ra>
